<compile_context>
chip_gen: v7x
topology: tpu7x:2x2x1
jax: 0.10.0
libtpu: 0.0.40
codegen_flags: <defaults>
</compile_context>

<pallas_src>
import functools

import jax
import jax.numpy as jnp
from jax import lax
from jax.experimental import pallas as pl
from jax.experimental.pallas import tpu as pltpu

LN_EPS = 1e-5  # nn.LayerNorm default


def _gelu(x):
    # TODO(synk): PyTorch F.gelu defaults to the exact erf form; tanh approximation
    # is used here for a Mosaic/EUP-friendly lowering (the JAX reference matches it).
    return jax.nn.gelu(x, approximate=True)


def _layer_norm(x, w, b):
    # x: (L, D), w/b: (1, D)
    mu = jnp.mean(x, axis=-1, keepdims=True)
    var = jnp.mean(jnp.square(x - mu), axis=-1, keepdims=True)
    return (x - mu) * lax.rsqrt(var + LN_EPS) * w + b


def _encoder_layer_kernel(num_heads, head_dim,
                          x_ref, bias_ref, cos_ref, sin_ref,
                          ln1_w_ref, ln1_b_ref, ln2_w_ref, ln2_b_ref,
                          wq_ref, wk_ref, wv_ref, wo_ref,
                          fc1_ref, fc2_ref, out_ref, attn_acc):
    f32 = jnp.float32
    bf16 = jnp.bfloat16
    half = head_dim // 2

    x = x_ref[0]          # (L, D) f32

    # ---- residual = x ; x = top_layer_norm(x) ----
    xb = _layer_norm(x, ln1_w_ref[...], ln1_b_ref[...]).astype(bf16)

    # ---- q/k/v projections: bf16 weights pre-transposed to (D_in, D_out), f32 acc.
    # The 1/sqrt(head_dim) scaling is folded into wq on the host.
    q = jnp.dot(xb, wq_ref[...], preferred_element_type=f32)    # (L, D) f32
    k = jnp.dot(xb, wk_ref[...], preferred_element_type=f32)    # (L, D) f32
    v = jnp.dot(xb, wv_ref[...], preferred_element_type=f32).astype(bf16)

    # Per-head RoPE tables (L, hd).  rotate-half(t) == roll(t, hd/2, lanes) * sign,
    # and the sign pattern ([-1]*half + [+1]*half) is folded into the sin table once.
    cos_hd = cos_ref[0]                                          # (L, hd) f32
    lane = lax.broadcasted_iota(jnp.int32, (1, head_dim), 1)
    sin_signed = jnp.where(lane < half, -sin_ref[0], sin_ref[0])  # (L, hd) f32

    # Additive key-padding bias row; added with a stride-0 broadcast, never (L, L).
    bias_row = bias_ref[0]                                       # (1, L) f32

    # ---- per-head attention ----
    # TODO(synk): for large num_heads, replace the unrolled loop with lax.fori_loop
    # over an (H, L, hd)-staged layout to bound live ranges; kept static here so the
    # per-head lane slices stay static (head_dim may not be 128-aligned).
    # TODO(synk): for production L (>~1k) add a flash-style query-tile grid axis so
    # scores are (tq, L) and both v7x TensorCores get work.
    for h in range(num_heads):
        sl = slice(h * head_dim, (h + 1) * head_dim)
        qh = q[:, sl]                                            # (L, hd) f32
        kh = k[:, sl]                                            # (L, hd) f32
        # RoPE (single XLU roll per array), then bf16 for the MXU.
        qh = (qh * cos_hd + pltpu.roll(qh, half, axis=1) * sin_signed).astype(bf16)
        kh = (kh * cos_hd + pltpu.roll(kh, half, axis=1) * sin_signed).astype(bf16)
        # bf16 QK^T (native MXU inputs), f32 accumulation, contraction on last dims.
        s = lax.dot_general(qh, kh, (((1,), (1,)), ((), ())),
                            preferred_element_type=f32) + bias_row       # (L, L)
        s = s - jnp.max(s, axis=-1, keepdims=True)
        p = jnp.exp(s)
        inv = pl.reciprocal(jnp.sum(p, axis=-1, keepdims=True), approx=True)
        o = jnp.dot(p.astype(bf16), v[:, sl], preferred_element_type=f32) * inv
        # TODO(synk): for head_dim < 128 this is a masked partial store; process heads
        # in 128-lane groups (or use the (H, L, hd) staging above) at production scale.
        attn_acc[:, sl] = o.astype(bf16)

    attn = jnp.dot(attn_acc[...], wo_ref[...], preferred_element_type=f32)
    x = x + attn  # residual 1

    # ---- residual = x ; x = mid_layer_norm(x) ; FFN ----
    # TODO(synk): at production D/F, chunk the FFN over F (inner pipeline or grid axis)
    # so fc1/fc2 and the (L, F) gelu intermediate never need full VMEM residency (v7x).
    xn2 = _layer_norm(x, ln2_w_ref[...], ln2_b_ref[...]).astype(bf16)
    h1 = _gelu(jnp.dot(xn2, fc1_ref[...], preferred_element_type=f32))
    h2 = jnp.dot(h1.astype(bf16), fc2_ref[...], preferred_element_type=f32)

    out_ref[0] = x + h2  # residual 2


def msagen_encoder_layer(x, padding_mask, position_ids, params, num_heads):
    """x: (B, L, D) f32; padding_mask: (B, L) bool (True = pad); position_ids: (B, L) int."""
    B, L, D = x.shape
    hd = D // num_heads
    F = params["fc1_w"].shape[0]
    scaling = hd ** -0.5  # ((head_dim/d_tilde)**0.5)/head_dim with d_tilde=1
    bf16 = jnp.bfloat16

    # RoPE tables at (B, L, hd) — single-head width; the kernel applies them per head.
    inv_freq = 1.0 / (10000.0 ** (jnp.arange(0, hd, 2, dtype=jnp.float32) / hd))
    ang = position_ids.astype(jnp.float32)[:, :, None] * inv_freq[None, None, :]  # (B, L, hd/2)
    emb = jnp.concatenate([ang, ang], axis=-1)                                    # (B, L, hd)
    cos = jnp.cos(emb)
    sin = jnp.sin(emb)

    # Pre-transposed (in_dim, out_dim) bf16 weights; q scaling folded in host-side.
    wq_t = (params["wq"].T * scaling).astype(bf16)
    wk_t = params["wk"].T.astype(bf16)
    wv_t = params["wv"].T.astype(bf16)
    wo_t = params["wo"].T.astype(bf16)
    fc1_t = params["fc1_w"].T.astype(bf16)   # (D, F)
    fc2_t = params["fc2_w"].T.astype(bf16)   # (F, D)

    # additive key-padding bias (masked_fill(-inf) semantics approximated with -1e9)
    bias = jnp.where(padding_mask, -1e9, 0.0).astype(jnp.float32).reshape(B, 1, L)

    kernel = functools.partial(_encoder_layer_kernel, num_heads, hd)
    shared = lambda b: (0, 0)

    # Generation-aware VMEM limit: never claim the full 64 MiB on v7x, allow ~100 MiB
    # of headroom for bigger tiles on v5e/v6e (128 MiB physical).
    try:
        cap = pltpu.get_tpu_info().vmem_capacity_bytes
        vmem_limit = min(int(cap * 0.8), 100 * 1024 * 1024)
    except Exception:
        vmem_limit = None
    cp_kwargs = dict(dimension_semantics=("parallel",))
    if vmem_limit is not None:
        cp_kwargs["vmem_limit_bytes"] = vmem_limit
    compiler_params = pltpu.CompilerParams(**cp_kwargs)

    def _call(single_buffer_weights):
        def shared_spec(shape):
            # Grid-invariant operand: constant index_map, so single-buffer it to halve
            # its VMEM residency (critical on v7x's 64 MiB).
            if single_buffer_weights:
                return pl.BlockSpec(shape, shared, pipeline_mode=pl.Buffered(1))
            return pl.BlockSpec(shape, shared)

        grid_spec = pltpu.PrefetchScalarGridSpec(
            num_scalar_prefetch=0,
            grid=(B,),
            in_specs=[
                pl.BlockSpec((1, L, D), lambda b: (b, 0, 0)),      # x
                pl.BlockSpec((1, 1, L), lambda b: (b, 0, 0)),      # key-padding bias
                pl.BlockSpec((1, L, hd), lambda b: (b, 0, 0)),     # cos (per-head width)
                pl.BlockSpec((1, L, hd), lambda b: (b, 0, 0)),     # sin (per-head width)
                shared_spec((1, D)),                               # ln1 weight
                shared_spec((1, D)),                               # ln1 bias
                shared_spec((1, D)),                               # ln2 weight
                shared_spec((1, D)),                               # ln2 bias
                shared_spec((D, D)),                               # Wq^T * scaling
                shared_spec((D, D)),                               # Wk^T
                shared_spec((D, D)),                               # Wv^T
                shared_spec((D, D)),                               # Wo^T
                shared_spec((D, F)),                               # fc1^T
                shared_spec((F, D)),                               # fc2^T
            ],
            out_specs=pl.BlockSpec((1, L, D), lambda b: (b, 0, 0)),
            scratch_shapes=[pltpu.VMEM((L, D), jnp.bfloat16)],     # bf16 attn accumulator
        )

        return pl.pallas_call(
            kernel,
            out_shape=jax.ShapeDtypeStruct((B, L, D), jnp.float32),
            grid_spec=grid_spec,
            compiler_params=compiler_params,
        )(x, bias, cos, sin,
          params["ln1_w"], params["ln1_b"], params["ln2_w"], params["ln2_b"],
          wq_t, wk_t, wv_t, wo_t, fc1_t, fc2_t)

    try:
        return _call(True)
    except Exception:
        # TODO(synk): this JAX build rejected pipeline_mode=pl.Buffered(1); fall back
        # to default double-buffering of the grid-invariant operands.
        return _call(False)


def reference_forward(x, padding_mask, position_ids, params, num_heads):
    """Plain-JAX f32 reference of the same forward pass (for a sanity check)."""
    B, L, D = x.shape
    hd = D // num_heads

    def ln(v, w, b):
        mu = v.mean(-1, keepdims=True)
        var = ((v - mu) ** 2).mean(-1, keepdims=True)
        return (v - mu) / jnp.sqrt(var + LN_EPS) * w.reshape(-1) + b.reshape(-1)

    inv_freq = 1.0 / (10000.0 ** (jnp.arange(0, hd, 2, dtype=jnp.float32) / hd))
    ang = position_ids.astype(jnp.float32)[..., None] * inv_freq
    emb = jnp.concatenate([ang, ang], -1)
    cos, sin = jnp.cos(emb), jnp.sin(emb)  # (B, L, hd)

    xn = ln(x, params["ln1_w"], params["ln1_b"])
    q = (xn @ params["wq"].T) * hd ** -0.5
    k = xn @ params["wk"].T
    v = xn @ params["wv"].T

    def split(t):
        return t.reshape(B, L, num_heads, hd).transpose(0, 2, 1, 3)

    q, k, v = split(q), split(k), split(v)

    def rope(t):
        t1, t2 = t[..., : hd // 2], t[..., hd // 2:]
        rot = jnp.concatenate([-t2, t1], -1)
        return t * cos[:, None] + rot * sin[:, None]

    q, k = rope(q), rope(k)
    s = jnp.einsum("bhqd,bhkd->bhqk", q, k)
    s = s + jnp.where(padding_mask, -1e9, 0.0)[:, None, None, :]
    p = jax.nn.softmax(s, -1)
    o = jnp.einsum("bhqk,bhkd->bhqd", p, v).transpose(0, 2, 1, 3).reshape(B, L, D)
    o = o @ params["wo"].T
    x = x + o
    xn2 = ln(x, params["ln2_w"], params["ln2_b"])
    h = jax.nn.gelu(xn2 @ params["fc1_w"].T, approximate=True)
    h = h @ params["fc2_w"].T
    return x + h


if __name__ == "__main__":
    B, L, D, H, FFN = 2, 8, 32, 4, 64

    key = jax.random.PRNGKey(0)
    keys = jax.random.split(key, 8)

    def linear_w(k, out_dim, in_dim):  # nn.Linear-style uniform(-1/sqrt(fan_in), 1/sqrt(fan_in))
        bound = 1.0 / (in_dim ** 0.5)
        return jax.random.uniform(k, (out_dim, in_dim), jnp.float32, -bound, bound)

    params = dict(
        wq=linear_w(keys[0], D, D),
        wk=linear_w(keys[1], D, D),
        wv=linear_w(keys[2], D, D),
        wo=linear_w(keys[3], D, D),
        fc1_w=linear_w(keys[4], FFN, D),
        fc2_w=linear_w(keys[5], D, FFN),
        ln1_w=jnp.ones((1, D), jnp.float32),
        ln1_b=jnp.zeros((1, D), jnp.float32),
        ln2_w=jnp.ones((1, D), jnp.float32),
        ln2_b=jnp.zeros((1, D), jnp.float32),
    )

    x = jax.random.normal(keys[6], (B, L, D), jnp.float32)
    padding_mask = jnp.zeros((B, L), dtype=bool).at[1, L - 2:].set(True)  # pad tail of batch 1
    position_ids = jnp.broadcast_to(jnp.arange(L, dtype=jnp.int32), (B, L))

    out = msagen_encoder_layer(x, padding_mask, position_ids, params, H)
    out = jax.block_until_ready(out)

    ref = reference_forward(x, padding_mask, position_ids, params, H)
    assert out.shape == (B, L, D)
    # tolerance accounts for bf16 weight/activation storage (MXU-friendly) vs f32 reference
    assert bool(jnp.allclose(out, ref, atol=5e-2, rtol=5e-2)), float(jnp.max(jnp.abs(out - ref)))

    print("KERNEL_OK")
</pallas_src>

<mosaic_0001>
module attributes {stable_mosaic.version = 11 : i64} {
  func.func @_encoder_layer_kernel(%arg0: i32, %arg1: memref<1x8x32xf32, #tpu.memory_space<vmem>>, %arg2: memref<1x1x8xf32, #tpu.memory_space<vmem>>, %arg3: memref<1x8x8xf32, #tpu.memory_space<vmem>>, %arg4: memref<1x8x8xf32, #tpu.memory_space<vmem>>, %arg5: memref<1x32xf32, #tpu.memory_space<vmem>>, %arg6: memref<1x32xf32, #tpu.memory_space<vmem>>, %arg7: memref<1x32xf32, #tpu.memory_space<vmem>>, %arg8: memref<1x32xf32, #tpu.memory_space<vmem>>, %arg9: memref<32x32xbf16, #tpu.memory_space<vmem>>, %arg10: memref<32x32xbf16, #tpu.memory_space<vmem>>, %arg11: memref<32x32xbf16, #tpu.memory_space<vmem>>, %arg12: memref<32x32xbf16, #tpu.memory_space<vmem>>, %arg13: memref<32x64xbf16, #tpu.memory_space<vmem>>, %arg14: memref<64x32xbf16, #tpu.memory_space<vmem>>, %arg15: memref<1x8x32xf32, #tpu.memory_space<vmem>>, %arg16: memref<8x32xbf16, #tpu.memory_space<vmem>>) attributes {dimension_semantics = [#tpu.dimension_semantics<parallel>], iteration_bounds = array<i64: 2>, scalar_prefetch = 0 : i64, scratch_operands = 1 : i64, tpu.core_type = #tpu.core_type<tc>, window_params = [{transform_indices = @transform_0, window_bounds = array<i64: 1, 8, 32>}, {transform_indices = @transform_1, window_bounds = array<i64: 1, 1, 8>}, {transform_indices = @transform_2, window_bounds = array<i64: 1, 8, 8>}, {transform_indices = @transform_3, window_bounds = array<i64: 1, 8, 8>}, {pipeline_mode = #tpu.pipeline_mode<synchronous>, transform_indices = @transform_4, window_bounds = array<i64: 1, 32>}, {pipeline_mode = #tpu.pipeline_mode<synchronous>, transform_indices = @transform_5, window_bounds = array<i64: 1, 32>}, {pipeline_mode = #tpu.pipeline_mode<synchronous>, transform_indices = @transform_6, window_bounds = array<i64: 1, 32>}, {pipeline_mode = #tpu.pipeline_mode<synchronous>, transform_indices = @transform_7, window_bounds = array<i64: 1, 32>}, {pipeline_mode = #tpu.pipeline_mode<synchronous>, transform_indices = @transform_8, window_bounds = array<i64: 32, 32>}, {pipeline_mode = #tpu.pipeline_mode<synchronous>, transform_indices = @transform_9, window_bounds = array<i64: 32, 32>}, {pipeline_mode = #tpu.pipeline_mode<synchronous>, transform_indices = @transform_10, window_bounds = array<i64: 32, 32>}, {pipeline_mode = #tpu.pipeline_mode<synchronous>, transform_indices = @transform_11, window_bounds = array<i64: 32, 32>}, {pipeline_mode = #tpu.pipeline_mode<synchronous>, transform_indices = @transform_12, window_bounds = array<i64: 32, 64>}, {pipeline_mode = #tpu.pipeline_mode<synchronous>, transform_indices = @transform_13, window_bounds = array<i64: 64, 32>}, {transform_indices = @transform_14, window_bounds = array<i64: 1, 8, 32>}]} {
    %c0 = arith.constant 0 : index
    %c0_0 = arith.constant 0 : index
    %c0_1 = arith.constant 0 : index
    %0 = vector.load %arg1[%c0, %c0_0, %c0_1] : memref<1x8x32xf32, #tpu.memory_space<vmem>>, vector<1x8x32xf32>
    %1 = vector.shape_cast %0 : vector<1x8x32xf32> to vector<8x32xf32>
    %c0_2 = arith.constant 0 : index
    %c0_3 = arith.constant 0 : index
    %2 = vector.load %arg5[%c0_2, %c0_3] : memref<1x32xf32, #tpu.memory_space<vmem>>, vector<1x32xf32>
    %c0_4 = arith.constant 0 : index
    %c0_5 = arith.constant 0 : index
    %3 = vector.load %arg6[%c0_4, %c0_5] : memref<1x32xf32, #tpu.memory_space<vmem>>, vector<1x32xf32>
    %cst = arith.constant dense<0.000000e+00> : vector<8xf32>
    %4 = vector.multi_reduction <add>, %1, %cst [1] : vector<8x32xf32> to vector<8xf32>
    %5 = vector.shape_cast %4 : vector<8xf32> to vector<8x1xf32>
    %cst_6 = arith.constant 3.200000e+01 : f32
    %6 = vector.broadcast %cst_6 : f32 to vector<8x1xf32>
    %7 = arith.divf %5, %6 : vector<8x1xf32>
    %8 = vector.broadcast %7 : vector<8x1xf32> to vector<8x32xf32>
    %9 = arith.subf %1, %8 : vector<8x32xf32>
    %10 = arith.mulf %9, %9 : vector<8x32xf32>
    %cst_7 = arith.constant dense<0.000000e+00> : vector<8xf32>
    %11 = vector.multi_reduction <add>, %10, %cst_7 [1] : vector<8x32xf32> to vector<8xf32>
    %12 = vector.shape_cast %11 : vector<8xf32> to vector<8x1xf32>
    %cst_8 = arith.constant 3.200000e+01 : f32
    %13 = vector.broadcast %cst_8 : f32 to vector<8x1xf32>
    %14 = arith.divf %12, %13 : vector<8x1xf32>
    %15 = vector.broadcast %7 : vector<8x1xf32> to vector<8x32xf32>
    %16 = arith.subf %1, %15 : vector<8x32xf32>
    %cst_9 = arith.constant 9.99999974E-6 : f32
    %17 = vector.broadcast %cst_9 : f32 to vector<8x1xf32>
    %18 = arith.addf %14, %17 : vector<8x1xf32>
    %19 = math.rsqrt %18 : vector<8x1xf32>
    %20 = vector.broadcast %19 : vector<8x1xf32> to vector<8x32xf32>
    %21 = arith.mulf %16, %20 : vector<8x32xf32>
    %22 = vector.broadcast %2 : vector<1x32xf32> to vector<8x32xf32>
    %23 = arith.mulf %21, %22 : vector<8x32xf32>
    %24 = vector.broadcast %3 : vector<1x32xf32> to vector<8x32xf32>
    %25 = arith.addf %23, %24 : vector<8x32xf32>
    %26 = arith.truncf %25 : vector<8x32xf32> to vector<8x32xbf16>
    %c0_10 = arith.constant 0 : index
    %c0_11 = arith.constant 0 : index
    %27 = vector.load %arg9[%c0_10, %c0_11] : memref<32x32xbf16, #tpu.memory_space<vmem>>, vector<32x32xbf16>
    %cst_12 = arith.constant dense<0.000000e+00> : vector<8x32xf32>
    %28 = tpu.matmul %26, %27, %cst_12 {dimension_numbers = #tpu.dot_dimension_numbers<[1], [0], [0], [1], [0, 0, 1, 1], [], []>} : vector<8x32xbf16>, vector<32x32xbf16>, vector<8x32xf32> -> vector<8x32xf32>
    %c0_13 = arith.constant 0 : index
    %c0_14 = arith.constant 0 : index
    %29 = vector.load %arg10[%c0_13, %c0_14] : memref<32x32xbf16, #tpu.memory_space<vmem>>, vector<32x32xbf16>
    %cst_15 = arith.constant dense<0.000000e+00> : vector<8x32xf32>
    %30 = tpu.matmul %26, %29, %cst_15 {dimension_numbers = #tpu.dot_dimension_numbers<[1], [0], [0], [1], [0, 0, 1, 1], [], []>} : vector<8x32xbf16>, vector<32x32xbf16>, vector<8x32xf32> -> vector<8x32xf32>
    %c0_16 = arith.constant 0 : index
    %c0_17 = arith.constant 0 : index
    %31 = vector.load %arg11[%c0_16, %c0_17] : memref<32x32xbf16, #tpu.memory_space<vmem>>, vector<32x32xbf16>
    %cst_18 = arith.constant dense<0.000000e+00> : vector<8x32xf32>
    %32 = tpu.matmul %26, %31, %cst_18 {dimension_numbers = #tpu.dot_dimension_numbers<[1], [0], [0], [1], [0, 0, 1, 1], [], []>} : vector<8x32xbf16>, vector<32x32xbf16>, vector<8x32xf32> -> vector<8x32xf32>
    %33 = arith.truncf %32 : vector<8x32xf32> to vector<8x32xbf16>
    %c0_19 = arith.constant 0 : index
    %c0_20 = arith.constant 0 : index
    %c0_21 = arith.constant 0 : index
    %34 = vector.load %arg3[%c0_19, %c0_20, %c0_21] : memref<1x8x8xf32, #tpu.memory_space<vmem>>, vector<1x8x8xf32>
    %35 = vector.shape_cast %34 : vector<1x8x8xf32> to vector<8x8xf32>
    %36 = tpu.iota {dimensions = array<i32: 1>} : vector<1x8xi32>
    %c4_i32 = arith.constant 4 : i32
    %37 = vector.broadcast %c4_i32 : i32 to vector<1x8xi32>
    %38 = arith.cmpi slt, %36, %37 : vector<1x8xi32>
    %c0_22 = arith.constant 0 : index
    %c0_23 = arith.constant 0 : index
    %c0_24 = arith.constant 0 : index
    %39 = vector.load %arg4[%c0_22, %c0_23, %c0_24] : memref<1x8x8xf32, #tpu.memory_space<vmem>>, vector<1x8x8xf32>
    %40 = vector.shape_cast %39 : vector<1x8x8xf32> to vector<8x8xf32>
    %cst_25 = arith.constant 0.000000e+00 : f32
    %41 = vector.broadcast %cst_25 : f32 to vector<8x8xf32>
    %42 = arith.subf %41, %40 : vector<8x8xf32>
    %c0_26 = arith.constant 0 : index
    %c0_27 = arith.constant 0 : index
    %c0_28 = arith.constant 0 : index
    %43 = vector.load %arg4[%c0_26, %c0_27, %c0_28] : memref<1x8x8xf32, #tpu.memory_space<vmem>>, vector<1x8x8xf32>
    %44 = vector.shape_cast %43 : vector<1x8x8xf32> to vector<8x8xf32>
    %45 = vector.shape_cast %38 : vector<1x8xi1> to vector<1x8xi1>
    %46 = vector.broadcast %45 : vector<1x8xi1> to vector<8x8xi1>
    %47 = arith.select %46, %42, %44 : vector<8x8xi1>, vector<8x8xf32>
    %c0_29 = arith.constant 0 : index
    %c0_30 = arith.constant 0 : index
    %c0_31 = arith.constant 0 : index
    %48 = vector.load %arg2[%c0_29, %c0_30, %c0_31] : memref<1x1x8xf32, #tpu.memory_space<vmem>>, vector<1x1x8xf32>
    %49 = vector.shape_cast %48 : vector<1x1x8xf32> to vector<1x8xf32>
    %50 = vector.extract_strided_slice %28 {offsets = [0, 0], sizes = [8, 8], strides = [1, 1]} : vector<8x32xf32> to vector<8x8xf32>
    %51 = vector.extract_strided_slice %30 {offsets = [0, 0], sizes = [8, 8], strides = [1, 1]} : vector<8x32xf32> to vector<8x8xf32>
    %52 = arith.mulf %50, %35 : vector<8x8xf32>
    %c4_i32_32 = arith.constant 4 : i32
    %53 = tpu.dynamic_rotate %50 by %c4_i32_32 dim 1 : vector<8x8xf32>, i32 -> vector<8x8xf32>
    %54 = arith.mulf %53, %47 : vector<8x8xf32>
    %55 = arith.addf %52, %54 : vector<8x8xf32>
    %56 = arith.truncf %55 : vector<8x8xf32> to vector<8x8xbf16>
    %57 = arith.mulf %51, %35 : vector<8x8xf32>
    %c4_i32_33 = arith.constant 4 : i32
    %58 = tpu.dynamic_rotate %51 by %c4_i32_33 dim 1 : vector<8x8xf32>, i32 -> vector<8x8xf32>
    %59 = arith.mulf %58, %47 : vector<8x8xf32>
    %60 = arith.addf %57, %59 : vector<8x8xf32>
    %61 = arith.truncf %60 : vector<8x8xf32> to vector<8x8xbf16>
    %cst_34 = arith.constant dense<0.000000e+00> : vector<8x8xf32>
    %62 = tpu.matmul %56, %61, %cst_34 {dimension_numbers = #tpu.dot_dimension_numbers<[1], [1], [0], [0], [0, 0, 1, 0], [], []>} : vector<8x8xbf16>, vector<8x8xbf16>, vector<8x8xf32> -> vector<8x8xf32>
    %63 = vector.broadcast %49 : vector<1x8xf32> to vector<8x8xf32>
    %64 = arith.addf %62, %63 : vector<8x8xf32>
    %cst_35 = arith.constant dense<0xFF800000> : vector<8xf32>
    %65 = vector.multi_reduction <maximumf>, %64, %cst_35 [1] : vector<8x8xf32> to vector<8xf32>
    %66 = vector.shape_cast %65 : vector<8xf32> to vector<8x1xf32>
    %67 = vector.broadcast %66 : vector<8x1xf32> to vector<8x8xf32>
    %68 = arith.subf %64, %67 : vector<8x8xf32>
    %69 = math.exp %68 : vector<8x8xf32>
    %cst_36 = arith.constant dense<0.000000e+00> : vector<8xf32>
    %70 = vector.multi_reduction <add>, %69, %cst_36 [1] : vector<8x8xf32> to vector<8xf32>
    %71 = vector.shape_cast %70 : vector<8xf32> to vector<8x1xf32>
    %72 = tpu.reciprocal %71 {approx = true} : vector<8x1xf32> -> vector<8x1xf32>
    %73 = arith.truncf %69 : vector<8x8xf32> to vector<8x8xbf16>
    %74 = vector.extract_strided_slice %33 {offsets = [0, 0], sizes = [8, 8], strides = [1, 1]} : vector<8x32xbf16> to vector<8x8xbf16>
    %cst_37 = arith.constant dense<0.000000e+00> : vector<8x8xf32>
    %75 = tpu.matmul %73, %74, %cst_37 {dimension_numbers = #tpu.dot_dimension_numbers<[1], [0], [0], [1], [0, 0, 1, 1], [], []>} : vector<8x8xbf16>, vector<8x8xbf16>, vector<8x8xf32> -> vector<8x8xf32>
    %76 = vector.broadcast %72 : vector<8x1xf32> to vector<8x8xf32>
    %77 = arith.mulf %75, %76 : vector<8x8xf32>
    %78 = arith.truncf %77 : vector<8x8xf32> to vector<8x8xbf16>
    %c0_38 = arith.constant 0 : index
    %c0_39 = arith.constant 0 : index
    %79 = vector.load %arg16[%c0_38, %c0_39] : memref<8x32xbf16, #tpu.memory_space<vmem>>, vector<8x8xbf16>
    tpu.vector_store %arg16[%c0_38, %c0_39], %78 {strides = array<i32>} : memref<8x32xbf16, #tpu.memory_space<vmem>>, vector<8x8xbf16>,
    %80 = vector.extract_strided_slice %28 {offsets = [0, 8], sizes = [8, 8], strides = [1, 1]} : vector<8x32xf32> to vector<8x8xf32>
    %81 = vector.extract_strided_slice %30 {offsets = [0, 8], sizes = [8, 8], strides = [1, 1]} : vector<8x32xf32> to vector<8x8xf32>
    %82 = arith.mulf %80, %35 : vector<8x8xf32>
    %c4_i32_40 = arith.constant 4 : i32
    %83 = tpu.dynamic_rotate %80 by %c4_i32_40 dim 1 : vector<8x8xf32>, i32 -> vector<8x8xf32>
    %84 = arith.mulf %83, %47 : vector<8x8xf32>
    %85 = arith.addf %82, %84 : vector<8x8xf32>
    %86 = arith.truncf %85 : vector<8x8xf32> to vector<8x8xbf16>
    %87 = arith.mulf %81, %35 : vector<8x8xf32>
    %c4_i32_41 = arith.constant 4 : i32
    %88 = tpu.dynamic_rotate %81 by %c4_i32_41 dim 1 : vector<8x8xf32>, i32 -> vector<8x8xf32>
    %89 = arith.mulf %88, %47 : vector<8x8xf32>
    %90 = arith.addf %87, %89 : vector<8x8xf32>
    %91 = arith.truncf %90 : vector<8x8xf32> to vector<8x8xbf16>
    %cst_42 = arith.constant dense<0.000000e+00> : vector<8x8xf32>
    %92 = tpu.matmul %86, %91, %cst_42 {dimension_numbers = #tpu.dot_dimension_numbers<[1], [1], [0], [0], [0, 0, 1, 0], [], []>} : vector<8x8xbf16>, vector<8x8xbf16>, vector<8x8xf32> -> vector<8x8xf32>
    %93 = vector.broadcast %49 : vector<1x8xf32> to vector<8x8xf32>
    %94 = arith.addf %92, %93 : vector<8x8xf32>
    %cst_43 = arith.constant dense<0xFF800000> : vector<8xf32>
    %95 = vector.multi_reduction <maximumf>, %94, %cst_43 [1] : vector<8x8xf32> to vector<8xf32>
    %96 = vector.shape_cast %95 : vector<8xf32> to vector<8x1xf32>
    %97 = vector.broadcast %96 : vector<8x1xf32> to vector<8x8xf32>
    %98 = arith.subf %94, %97 : vector<8x8xf32>
    %99 = math.exp %98 : vector<8x8xf32>
    %cst_44 = arith.constant dense<0.000000e+00> : vector<8xf32>
    %100 = vector.multi_reduction <add>, %99, %cst_44 [1] : vector<8x8xf32> to vector<8xf32>
    %101 = vector.shape_cast %100 : vector<8xf32> to vector<8x1xf32>
    %102 = tpu.reciprocal %101 {approx = true} : vector<8x1xf32> -> vector<8x1xf32>
    %103 = arith.truncf %99 : vector<8x8xf32> to vector<8x8xbf16>
    %104 = vector.extract_strided_slice %33 {offsets = [0, 8], sizes = [8, 8], strides = [1, 1]} : vector<8x32xbf16> to vector<8x8xbf16>
    %cst_45 = arith.constant dense<0.000000e+00> : vector<8x8xf32>
    %105 = tpu.matmul %103, %104, %cst_45 {dimension_numbers = #tpu.dot_dimension_numbers<[1], [0], [0], [1], [0, 0, 1, 1], [], []>} : vector<8x8xbf16>, vector<8x8xbf16>, vector<8x8xf32> -> vector<8x8xf32>
    %106 = vector.broadcast %102 : vector<8x1xf32> to vector<8x8xf32>
    %107 = arith.mulf %105, %106 : vector<8x8xf32>
    %108 = arith.truncf %107 : vector<8x8xf32> to vector<8x8xbf16>
    %c0_46 = arith.constant 0 : index
    %c8 = arith.constant 8 : index
    %109 = vector.load %arg16[%c0_46, %c8] : memref<8x32xbf16, #tpu.memory_space<vmem>>, vector<8x8xbf16>
    tpu.vector_store %arg16[%c0_46, %c8], %108 {strides = array<i32>} : memref<8x32xbf16, #tpu.memory_space<vmem>>, vector<8x8xbf16>,
    %110 = vector.extract_strided_slice %28 {offsets = [0, 16], sizes = [8, 8], strides = [1, 1]} : vector<8x32xf32> to vector<8x8xf32>
    %111 = vector.extract_strided_slice %30 {offsets = [0, 16], sizes = [8, 8], strides = [1, 1]} : vector<8x32xf32> to vector<8x8xf32>
    %112 = arith.mulf %110, %35 : vector<8x8xf32>
    %c4_i32_47 = arith.constant 4 : i32
    %113 = tpu.dynamic_rotate %110 by %c4_i32_47 dim 1 : vector<8x8xf32>, i32 -> vector<8x8xf32>
    %114 = arith.mulf %113, %47 : vector<8x8xf32>
    %115 = arith.addf %112, %114 : vector<8x8xf32>
    %116 = arith.truncf %115 : vector<8x8xf32> to vector<8x8xbf16>
    %117 = arith.mulf %111, %35 : vector<8x8xf32>
    %c4_i32_48 = arith.constant 4 : i32
    %118 = tpu.dynamic_rotate %111 by %c4_i32_48 dim 1 : vector<8x8xf32>, i32 -> vector<8x8xf32>
    %119 = arith.mulf %118, %47 : vector<8x8xf32>
    %120 = arith.addf %117, %119 : vector<8x8xf32>
    %121 = arith.truncf %120 : vector<8x8xf32> to vector<8x8xbf16>
    %cst_49 = arith.constant dense<0.000000e+00> : vector<8x8xf32>
    %122 = tpu.matmul %116, %121, %cst_49 {dimension_numbers = #tpu.dot_dimension_numbers<[1], [1], [0], [0], [0, 0, 1, 0], [], []>} : vector<8x8xbf16>, vector<8x8xbf16>, vector<8x8xf32> -> vector<8x8xf32>
    %123 = vector.broadcast %49 : vector<1x8xf32> to vector<8x8xf32>
    %124 = arith.addf %122, %123 : vector<8x8xf32>
    %cst_50 = arith.constant dense<0xFF800000> : vector<8xf32>
    %125 = vector.multi_reduction <maximumf>, %124, %cst_50 [1] : vector<8x8xf32> to vector<8xf32>
    %126 = vector.shape_cast %125 : vector<8xf32> to vector<8x1xf32>
    %127 = vector.broadcast %126 : vector<8x1xf32> to vector<8x8xf32>
    %128 = arith.subf %124, %127 : vector<8x8xf32>
    %129 = math.exp %128 : vector<8x8xf32>
    %cst_51 = arith.constant dense<0.000000e+00> : vector<8xf32>
    %130 = vector.multi_reduction <add>, %129, %cst_51 [1] : vector<8x8xf32> to vector<8xf32>
    %131 = vector.shape_cast %130 : vector<8xf32> to vector<8x1xf32>
    %132 = tpu.reciprocal %131 {approx = true} : vector<8x1xf32> -> vector<8x1xf32>
    %133 = arith.truncf %129 : vector<8x8xf32> to vector<8x8xbf16>
    %134 = vector.extract_strided_slice %33 {offsets = [0, 16], sizes = [8, 8], strides = [1, 1]} : vector<8x32xbf16> to vector<8x8xbf16>
    %cst_52 = arith.constant dense<0.000000e+00> : vector<8x8xf32>
    %135 = tpu.matmul %133, %134, %cst_52 {dimension_numbers = #tpu.dot_dimension_numbers<[1], [0], [0], [1], [0, 0, 1, 1], [], []>} : vector<8x8xbf16>, vector<8x8xbf16>, vector<8x8xf32> -> vector<8x8xf32>
    %136 = vector.broadcast %132 : vector<8x1xf32> to vector<8x8xf32>
    %137 = arith.mulf %135, %136 : vector<8x8xf32>
    %138 = arith.truncf %137 : vector<8x8xf32> to vector<8x8xbf16>
    %c0_53 = arith.constant 0 : index
    %c16 = arith.constant 16 : index
    %139 = vector.load %arg16[%c0_53, %c16] : memref<8x32xbf16, #tpu.memory_space<vmem>>, vector<8x8xbf16>
    tpu.vector_store %arg16[%c0_53, %c16], %138 {strides = array<i32>} : memref<8x32xbf16, #tpu.memory_space<vmem>>, vector<8x8xbf16>,
    %140 = vector.extract_strided_slice %28 {offsets = [0, 24], sizes = [8, 8], strides = [1, 1]} : vector<8x32xf32> to vector<8x8xf32>
    %141 = vector.extract_strided_slice %30 {offsets = [0, 24], sizes = [8, 8], strides = [1, 1]} : vector<8x32xf32> to vector<8x8xf32>
    %142 = arith.mulf %140, %35 : vector<8x8xf32>
    %c4_i32_54 = arith.constant 4 : i32
    %143 = tpu.dynamic_rotate %140 by %c4_i32_54 dim 1 : vector<8x8xf32>, i32 -> vector<8x8xf32>
    %144 = arith.mulf %143, %47 : vector<8x8xf32>
    %145 = arith.addf %142, %144 : vector<8x8xf32>
    %146 = arith.truncf %145 : vector<8x8xf32> to vector<8x8xbf16>
    %147 = arith.mulf %141, %35 : vector<8x8xf32>
    %c4_i32_55 = arith.constant 4 : i32
    %148 = tpu.dynamic_rotate %141 by %c4_i32_55 dim 1 : vector<8x8xf32>, i32 -> vector<8x8xf32>
    %149 = arith.mulf %148, %47 : vector<8x8xf32>
    %150 = arith.addf %147, %149 : vector<8x8xf32>
    %151 = arith.truncf %150 : vector<8x8xf32> to vector<8x8xbf16>
    %cst_56 = arith.constant dense<0.000000e+00> : vector<8x8xf32>
    %152 = tpu.matmul %146, %151, %cst_56 {dimension_numbers = #tpu.dot_dimension_numbers<[1], [1], [0], [0], [0, 0, 1, 0], [], []>} : vector<8x8xbf16>, vector<8x8xbf16>, vector<8x8xf32> -> vector<8x8xf32>
    %153 = vector.broadcast %49 : vector<1x8xf32> to vector<8x8xf32>
    %154 = arith.addf %152, %153 : vector<8x8xf32>
    %cst_57 = arith.constant dense<0xFF800000> : vector<8xf32>
    %155 = vector.multi_reduction <maximumf>, %154, %cst_57 [1] : vector<8x8xf32> to vector<8xf32>
    %156 = vector.shape_cast %155 : vector<8xf32> to vector<8x1xf32>
    %157 = vector.broadcast %156 : vector<8x1xf32> to vector<8x8xf32>
    %158 = arith.subf %154, %157 : vector<8x8xf32>
    %159 = math.exp %158 : vector<8x8xf32>
    %cst_58 = arith.constant dense<0.000000e+00> : vector<8xf32>
    %160 = vector.multi_reduction <add>, %159, %cst_58 [1] : vector<8x8xf32> to vector<8xf32>
    %161 = vector.shape_cast %160 : vector<8xf32> to vector<8x1xf32>
    %162 = tpu.reciprocal %161 {approx = true} : vector<8x1xf32> -> vector<8x1xf32>
    %163 = arith.truncf %159 : vector<8x8xf32> to vector<8x8xbf16>
    %164 = vector.extract_strided_slice %33 {offsets = [0, 24], sizes = [8, 8], strides = [1, 1]} : vector<8x32xbf16> to vector<8x8xbf16>
    %cst_59 = arith.constant dense<0.000000e+00> : vector<8x8xf32>
    %165 = tpu.matmul %163, %164, %cst_59 {dimension_numbers = #tpu.dot_dimension_numbers<[1], [0], [0], [1], [0, 0, 1, 1], [], []>} : vector<8x8xbf16>, vector<8x8xbf16>, vector<8x8xf32> -> vector<8x8xf32>
    %166 = vector.broadcast %162 : vector<8x1xf32> to vector<8x8xf32>
    %167 = arith.mulf %165, %166 : vector<8x8xf32>
    %168 = arith.truncf %167 : vector<8x8xf32> to vector<8x8xbf16>
    %c0_60 = arith.constant 0 : index
    %c24 = arith.constant 24 : index
    %169 = vector.load %arg16[%c0_60, %c24] : memref<8x32xbf16, #tpu.memory_space<vmem>>, vector<8x8xbf16>
    tpu.vector_store %arg16[%c0_60, %c24], %168 {strides = array<i32>} : memref<8x32xbf16, #tpu.memory_space<vmem>>, vector<8x8xbf16>,
    %c0_61 = arith.constant 0 : index
    %c0_62 = arith.constant 0 : index
    %170 = vector.load %arg16[%c0_61, %c0_62] : memref<8x32xbf16, #tpu.memory_space<vmem>>, vector<8x32xbf16>
    %c0_63 = arith.constant 0 : index
    %c0_64 = arith.constant 0 : index
    %171 = vector.load %arg12[%c0_63, %c0_64] : memref<32x32xbf16, #tpu.memory_space<vmem>>, vector<32x32xbf16>
    %cst_65 = arith.constant dense<0.000000e+00> : vector<8x32xf32>
    %172 = tpu.matmul %170, %171, %cst_65 {dimension_numbers = #tpu.dot_dimension_numbers<[1], [0], [0], [1], [0, 0, 1, 1], [], []>} : vector<8x32xbf16>, vector<32x32xbf16>, vector<8x32xf32> -> vector<8x32xf32>
    %173 = arith.addf %1, %172 : vector<8x32xf32>
    %c0_66 = arith.constant 0 : index
    %c0_67 = arith.constant 0 : index
    %174 = vector.load %arg7[%c0_66, %c0_67] : memref<1x32xf32, #tpu.memory_space<vmem>>, vector<1x32xf32>
    %c0_68 = arith.constant 0 : index
    %c0_69 = arith.constant 0 : index
    %175 = vector.load %arg8[%c0_68, %c0_69] : memref<1x32xf32, #tpu.memory_space<vmem>>, vector<1x32xf32>
    %cst_70 = arith.constant dense<0.000000e+00> : vector<8xf32>
    %176 = vector.multi_reduction <add>, %173, %cst_70 [1] : vector<8x32xf32> to vector<8xf32>
    %177 = vector.shape_cast %176 : vector<8xf32> to vector<8x1xf32>
    %cst_71 = arith.constant 3.200000e+01 : f32
    %178 = vector.broadcast %cst_71 : f32 to vector<8x1xf32>
    %179 = arith.divf %177, %178 : vector<8x1xf32>
    %180 = vector.broadcast %179 : vector<8x1xf32> to vector<8x32xf32>
    %181 = arith.subf %173, %180 : vector<8x32xf32>
    %182 = arith.mulf %181, %181 : vector<8x32xf32>
    %cst_72 = arith.constant dense<0.000000e+00> : vector<8xf32>
    %183 = vector.multi_reduction <add>, %182, %cst_72 [1] : vector<8x32xf32> to vector<8xf32>
    %184 = vector.shape_cast %183 : vector<8xf32> to vector<8x1xf32>
    %cst_73 = arith.constant 3.200000e+01 : f32
    %185 = vector.broadcast %cst_73 : f32 to vector<8x1xf32>
    %186 = arith.divf %184, %185 : vector<8x1xf32>
    %187 = vector.broadcast %179 : vector<8x1xf32> to vector<8x32xf32>
    %188 = arith.subf %173, %187 : vector<8x32xf32>
    %cst_74 = arith.constant 9.99999974E-6 : f32
    %189 = vector.broadcast %cst_74 : f32 to vector<8x1xf32>
    %190 = arith.addf %186, %189 : vector<8x1xf32>
    %191 = math.rsqrt %190 : vector<8x1xf32>
    %192 = vector.broadcast %191 : vector<8x1xf32> to vector<8x32xf32>
    %193 = arith.mulf %188, %192 : vector<8x32xf32>
    %194 = vector.broadcast %174 : vector<1x32xf32> to vector<8x32xf32>
    %195 = arith.mulf %193, %194 : vector<8x32xf32>
    %196 = vector.broadcast %175 : vector<1x32xf32> to vector<8x32xf32>
    %197 = arith.addf %195, %196 : vector<8x32xf32>
    %198 = arith.truncf %197 : vector<8x32xf32> to vector<8x32xbf16>
    %c0_75 = arith.constant 0 : index
    %c0_76 = arith.constant 0 : index
    %199 = vector.load %arg13[%c0_75, %c0_76] : memref<32x64xbf16, #tpu.memory_space<vmem>>, vector<32x64xbf16>
    %cst_77 = arith.constant dense<0.000000e+00> : vector<8x64xf32>
    %200 = tpu.matmul %198, %199, %cst_77 {dimension_numbers = #tpu.dot_dimension_numbers<[1], [0], [0], [1], [0, 0, 1, 1], [], []>} : vector<8x32xbf16>, vector<32x64xbf16>, vector<8x64xf32> -> vector<8x64xf32>
    %201 = arith.mulf %200, %200 : vector<8x64xf32>
    %202 = arith.mulf %200, %201 : vector<8x64xf32>
    %cst_78 = arith.constant 4.471500e-02 : f32
    %203 = vector.broadcast %cst_78 : f32 to vector<8x64xf32>
    %204 = arith.mulf %203, %202 : vector<8x64xf32>
    %205 = arith.addf %200, %204 : vector<8x64xf32>
    %cst_79 = arith.constant 0.797884583 : f32
    %206 = vector.broadcast %cst_79 : f32 to vector<8x64xf32>
    %207 = arith.mulf %206, %205 : vector<8x64xf32>
    %208 = math.tanh %207 : vector<8x64xf32>
    %cst_80 = arith.constant 1.000000e+00 : f32
    %209 = vector.broadcast %cst_80 : f32 to vector<8x64xf32>
    %210 = arith.addf %209, %208 : vector<8x64xf32>
    %cst_81 = arith.constant 5.000000e-01 : f32
    %211 = vector.broadcast %cst_81 : f32 to vector<8x64xf32>
    %212 = arith.mulf %211, %210 : vector<8x64xf32>
    %213 = arith.mulf %200, %212 : vector<8x64xf32>
    %214 = arith.truncf %213 : vector<8x64xf32> to vector<8x64xbf16>
    %c0_82 = arith.constant 0 : index
    %c0_83 = arith.constant 0 : index
    %215 = vector.load %arg14[%c0_82, %c0_83] : memref<64x32xbf16, #tpu.memory_space<vmem>>, vector<64x32xbf16>
    %cst_84 = arith.constant dense<0.000000e+00> : vector<8x32xf32>
    %216 = tpu.matmul %214, %215, %cst_84 {dimension_numbers = #tpu.dot_dimension_numbers<[1], [0], [0], [1], [0, 0, 1, 1], [], []>} : vector<8x64xbf16>, vector<64x32xbf16>, vector<8x32xf32> -> vector<8x32xf32>
    %217 = arith.addf %173, %216 : vector<8x32xf32>
    %c0_85 = arith.constant 0 : index
    %c0_86 = arith.constant 0 : index
    %c0_87 = arith.constant 0 : index
    %218 = vector.load %arg15[%c0_85, %c0_86, %c0_87] : memref<1x8x32xf32, #tpu.memory_space<vmem>>, vector<1x8x32xf32>
    %219 = vector.shape_cast %218 : vector<1x8x32xf32> to vector<8x32xf32>
    %220 = vector.shape_cast %217 : vector<8x32xf32> to vector<1x8x32xf32>
    tpu.vector_store %arg15[%c0_85, %c0_86, %c0_87], %220 {strides = array<i32>} : memref<1x8x32xf32, #tpu.memory_space<vmem>>, vector<1x8x32xf32>,
    return
  }
  func.func @transform_0(%arg0: i32) -> (i32, i32, i32) {
    %c0_i32 = arith.constant 0 : i32
    %c0_i32_0 = arith.constant 0 : i32
    %c0_i32_1 = arith.constant 0 : i32
    return %arg0, %c0_i32, %c0_i32_0 : i32, i32, i32
  }
  func.func @transform_1(%arg0: i32) -> (i32, i32, i32) {
    %c0_i32 = arith.constant 0 : i32
    %c0_i32_0 = arith.constant 0 : i32
    %c0_i32_1 = arith.constant 0 : i32
    return %arg0, %c0_i32, %c0_i32_0 : i32, i32, i32
  }
  func.func @transform_2(%arg0: i32) -> (i32, i32, i32) {
    %c0_i32 = arith.constant 0 : i32
    %c0_i32_0 = arith.constant 0 : i32
    %c0_i32_1 = arith.constant 0 : i32
    return %arg0, %c0_i32, %c0_i32_0 : i32, i32, i32
  }
  func.func @transform_3(%arg0: i32) -> (i32, i32, i32) {
    %c0_i32 = arith.constant 0 : i32
    %c0_i32_0 = arith.constant 0 : i32
    %c0_i32_1 = arith.constant 0 : i32
    return %arg0, %c0_i32, %c0_i32_0 : i32, i32, i32
  }
  func.func @transform_4(%arg0: i32) -> (i32, i32) {
    %c0_i32 = arith.constant 0 : i32
    %c0_i32_0 = arith.constant 0 : i32
    %c0_i32_1 = arith.constant 0 : i32
    return %c0_i32, %c0_i32_0 : i32, i32
  }
  func.func @transform_5(%arg0: i32) -> (i32, i32) {
    %c0_i32 = arith.constant 0 : i32
    %c0_i32_0 = arith.constant 0 : i32
    %c0_i32_1 = arith.constant 0 : i32
    return %c0_i32, %c0_i32_0 : i32, i32
  }
  func.func @transform_6(%arg0: i32) -> (i32, i32) {
    %c0_i32 = arith.constant 0 : i32
    %c0_i32_0 = arith.constant 0 : i32
    %c0_i32_1 = arith.constant 0 : i32
    return %c0_i32, %c0_i32_0 : i32, i32
  }
  func.func @transform_7(%arg0: i32) -> (i32, i32) {
    %c0_i32 = arith.constant 0 : i32
    %c0_i32_0 = arith.constant 0 : i32
    %c0_i32_1 = arith.constant 0 : i32
    return %c0_i32, %c0_i32_0 : i32, i32
  }
  func.func @transform_8(%arg0: i32) -> (i32, i32) {
    %c0_i32 = arith.constant 0 : i32
    %c0_i32_0 = arith.constant 0 : i32
    %c0_i32_1 = arith.constant 0 : i32
    return %c0_i32, %c0_i32_0 : i32, i32
  }
  func.func @transform_9(%arg0: i32) -> (i32, i32) {
    %c0_i32 = arith.constant 0 : i32
    %c0_i32_0 = arith.constant 0 : i32
    %c0_i32_1 = arith.constant 0 : i32
    return %c0_i32, %c0_i32_0 : i32, i32
  }
  func.func @transform_10(%arg0: i32) -> (i32, i32) {
    %c0_i32 = arith.constant 0 : i32
    %c0_i32_0 = arith.constant 0 : i32
    %c0_i32_1 = arith.constant 0 : i32
    return %c0_i32, %c0_i32_0 : i32, i32
  }
  func.func @transform_11(%arg0: i32) -> (i32, i32) {
    %c0_i32 = arith.constant 0 : i32
    %c0_i32_0 = arith.constant 0 : i32
    %c0_i32_1 = arith.constant 0 : i32
    return %c0_i32, %c0_i32_0 : i32, i32
  }
  func.func @transform_12(%arg0: i32) -> (i32, i32) {
    %c0_i32 = arith.constant 0 : i32
    %c0_i32_0 = arith.constant 0 : i32
    %c0_i32_1 = arith.constant 0 : i32
    return %c0_i32, %c0_i32_0 : i32, i32
  }
  func.func @transform_13(%arg0: i32) -> (i32, i32) {
    %c0_i32 = arith.constant 0 : i32
    %c0_i32_0 = arith.constant 0 : i32
    %c0_i32_1 = arith.constant 0 : i32
    return %c0_i32, %c0_i32_0 : i32, i32
  }
  func.func @transform_14(%arg0: i32) -> (i32, i32, i32) {
    %c0_i32 = arith.constant 0 : i32
    %c0_i32_0 = arith.constant 0 : i32
    %c0_i32_1 = arith.constant 0 : i32
    return %arg0, %c0_i32, %c0_i32_0 : i32, i32, i32
  }
}

module attributes {stable_mosaic.version = 11 : i64} {
  func.func @_encoder_layer_kernel(%arg0: i32, %arg1: memref<1x8x32xf32, #tpu.memory_space<vmem>>, %arg2: memref<1x1x8xf32, #tpu.memory_space<vmem>>, %arg3: memref<1x8x8xf32, #tpu.memory_space<vmem>>, %arg4: memref<1x8x8xf32, #tpu.memory_space<vmem>>, %arg5: memref<1x32xf32, #tpu.memory_space<vmem>>, %arg6: memref<1x32xf32, #tpu.memory_space<vmem>>, %arg7: memref<1x32xf32, #tpu.memory_space<vmem>>, %arg8: memref<1x32xf32, #tpu.memory_space<vmem>>, %arg9: memref<32x32xbf16, #tpu.memory_space<vmem>>, %arg10: memref<32x32xbf16, #tpu.memory_space<vmem>>, %arg11: memref<32x32xbf16, #tpu.memory_space<vmem>>, %arg12: memref<32x32xbf16, #tpu.memory_space<vmem>>, %arg13: memref<32x64xbf16, #tpu.memory_space<vmem>>, %arg14: memref<64x32xbf16, #tpu.memory_space<vmem>>, %arg15: memref<1x8x32xf32, #tpu.memory_space<vmem>>, %arg16: memref<8x32xbf16, #tpu.memory_space<vmem>>) attributes {dimension_semantics = [#tpu.dimension_semantics<parallel>], iteration_bounds = array<i64: 2>, scalar_prefetch = 0 : i64, scratch_operands = 1 : i64, tpu.core_type = #tpu.core_type<tc>, window_params = [{transform_indices = @transform_0, window_bounds = array<i64: 1, 8, 32>}, {transform_indices = @transform_1, window_bounds = array<i64: 1, 1, 8>}, {transform_indices = @transform_2, window_bounds = array<i64: 1, 8, 8>}, {transform_indices = @transform_3, window_bounds = array<i64: 1, 8, 8>}, {pipeline_mode = #tpu.pipeline_mode<synchronous>, transform_indices = @transform_4, window_bounds = array<i64: 1, 32>}, {pipeline_mode = #tpu.pipeline_mode<synchronous>, transform_indices = @transform_5, window_bounds = array<i64: 1, 32>}, {pipeline_mode = #tpu.pipeline_mode<synchronous>, transform_indices = @transform_6, window_bounds = array<i64: 1, 32>}, {pipeline_mode = #tpu.pipeline_mode<synchronous>, transform_indices = @transform_7, window_bounds = array<i64: 1, 32>}, {pipeline_mode = #tpu.pipeline_mode<synchronous>, transform_indices = @transform_8, window_bounds = array<i64: 32, 32>}, {pipeline_mode = #tpu.pipeline_mode<synchronous>, transform_indices = @transform_9, window_bounds = array<i64: 32, 32>}, {pipeline_mode = #tpu.pipeline_mode<synchronous>, transform_indices = @transform_10, window_bounds = array<i64: 32, 32>}, {pipeline_mode = #tpu.pipeline_mode<synchronous>, transform_indices = @transform_11, window_bounds = array<i64: 32, 32>}, {pipeline_mode = #tpu.pipeline_mode<synchronous>, transform_indices = @transform_12, window_bounds = array<i64: 32, 64>}, {pipeline_mode = #tpu.pipeline_mode<synchronous>, transform_indices = @transform_13, window_bounds = array<i64: 64, 32>}, {transform_indices = @transform_14, window_bounds = array<i64: 1, 8, 32>}]} {
    %c0 = arith.constant 0 : index
    %c0_0 = arith.constant 0 : index
    %c0_1 = arith.constant 0 : index
    %0 = vector.load %arg1[%c0, %c0_0, %c0_1] : memref<1x8x32xf32, #tpu.memory_space<vmem>>, vector<1x8x32xf32>
    %1 = vector.shape_cast %0 : vector<1x8x32xf32> to vector<8x32xf32>
    %c0_2 = arith.constant 0 : index
    %c0_3 = arith.constant 0 : index
    %2 = vector.load %arg5[%c0_2, %c0_3] : memref<1x32xf32, #tpu.memory_space<vmem>>, vector<1x32xf32>
    %c0_4 = arith.constant 0 : index
    %c0_5 = arith.constant 0 : index
    %3 = vector.load %arg6[%c0_4, %c0_5] : memref<1x32xf32, #tpu.memory_space<vmem>>, vector<1x32xf32>
    %cst = arith.constant dense<0.000000e+00> : vector<8xf32>
    %4 = vector.multi_reduction <add>, %1, %cst [1] : vector<8x32xf32> to vector<8xf32>
    %5 = vector.shape_cast %4 : vector<8xf32> to vector<8x1xf32>
    %cst_6 = arith.constant 3.200000e+01 : f32
    %6 = vector.broadcast %cst_6 : f32 to vector<8x1xf32>
    %7 = arith.divf %5, %6 : vector<8x1xf32>
    %8 = vector.broadcast %7 : vector<8x1xf32> to vector<8x32xf32>
    %9 = arith.subf %1, %8 : vector<8x32xf32>
    %10 = arith.mulf %9, %9 : vector<8x32xf32>
    %cst_7 = arith.constant dense<0.000000e+00> : vector<8xf32>
    %11 = vector.multi_reduction <add>, %10, %cst_7 [1] : vector<8x32xf32> to vector<8xf32>
    %12 = vector.shape_cast %11 : vector<8xf32> to vector<8x1xf32>
    %cst_8 = arith.constant 3.200000e+01 : f32
    %13 = vector.broadcast %cst_8 : f32 to vector<8x1xf32>
    %14 = arith.divf %12, %13 : vector<8x1xf32>
    %15 = vector.broadcast %7 : vector<8x1xf32> to vector<8x32xf32>
    %16 = arith.subf %1, %15 : vector<8x32xf32>
    %cst_9 = arith.constant 9.99999974E-6 : f32
    %17 = vector.broadcast %cst_9 : f32 to vector<8x1xf32>
    %18 = arith.addf %14, %17 : vector<8x1xf32>
    %19 = math.rsqrt %18 : vector<8x1xf32>
    %20 = vector.broadcast %19 : vector<8x1xf32> to vector<8x32xf32>
    %21 = arith.mulf %16, %20 : vector<8x32xf32>
    %22 = vector.broadcast %2 : vector<1x32xf32> to vector<8x32xf32>
    %23 = arith.mulf %21, %22 : vector<8x32xf32>
    %24 = vector.broadcast %3 : vector<1x32xf32> to vector<8x32xf32>
    %25 = arith.addf %23, %24 : vector<8x32xf32>
    %26 = arith.truncf %25 : vector<8x32xf32> to vector<8x32xbf16>
    %c0_10 = arith.constant 0 : index
    %c0_11 = arith.constant 0 : index
    %27 = vector.load %arg9[%c0_10, %c0_11] : memref<32x32xbf16, #tpu.memory_space<vmem>>, vector<32x32xbf16>
    %cst_12 = arith.constant dense<0.000000e+00> : vector<8x32xf32>
    %28 = tpu.matmul %26, %27, %cst_12 {dimension_numbers = #tpu.dot_dimension_numbers<[1], [0], [0], [1], [0, 0, 1, 1], [], []>} : vector<8x32xbf16>, vector<32x32xbf16>, vector<8x32xf32> -> vector<8x32xf32>
    %c0_13 = arith.constant 0 : index
    %c0_14 = arith.constant 0 : index
    %29 = vector.load %arg10[%c0_13, %c0_14] : memref<32x32xbf16, #tpu.memory_space<vmem>>, vector<32x32xbf16>
    %cst_15 = arith.constant dense<0.000000e+00> : vector<8x32xf32>
    %30 = tpu.matmul %26, %29, %cst_15 {dimension_numbers = #tpu.dot_dimension_numbers<[1], [0], [0], [1], [0, 0, 1, 1], [], []>} : vector<8x32xbf16>, vector<32x32xbf16>, vector<8x32xf32> -> vector<8x32xf32>
    %c0_16 = arith.constant 0 : index
    %c0_17 = arith.constant 0 : index
    %31 = vector.load %arg11[%c0_16, %c0_17] : memref<32x32xbf16, #tpu.memory_space<vmem>>, vector<32x32xbf16>
    %cst_18 = arith.constant dense<0.000000e+00> : vector<8x32xf32>
    %32 = tpu.matmul %26, %31, %cst_18 {dimension_numbers = #tpu.dot_dimension_numbers<[1], [0], [0], [1], [0, 0, 1, 1], [], []>} : vector<8x32xbf16>, vector<32x32xbf16>, vector<8x32xf32> -> vector<8x32xf32>
    %33 = arith.truncf %32 : vector<8x32xf32> to vector<8x32xbf16>
    %c0_19 = arith.constant 0 : index
    %c0_20 = arith.constant 0 : index
    %c0_21 = arith.constant 0 : index
    %34 = vector.load %arg3[%c0_19, %c0_20, %c0_21] : memref<1x8x8xf32, #tpu.memory_space<vmem>>, vector<1x8x8xf32>
    %35 = vector.shape_cast %34 : vector<1x8x8xf32> to vector<8x8xf32>
    %36 = tpu.iota {dimensions = array<i32: 1>} : vector<1x8xi32>
    %c4_i32 = arith.constant 4 : i32
    %37 = vector.broadcast %c4_i32 : i32 to vector<1x8xi32>
    %38 = arith.cmpi slt, %36, %37 : vector<1x8xi32>
    %c0_22 = arith.constant 0 : index
    %c0_23 = arith.constant 0 : index
    %c0_24 = arith.constant 0 : index
    %39 = vector.load %arg4[%c0_22, %c0_23, %c0_24] : memref<1x8x8xf32, #tpu.memory_space<vmem>>, vector<1x8x8xf32>
    %40 = vector.shape_cast %39 : vector<1x8x8xf32> to vector<8x8xf32>
    %cst_25 = arith.constant 0.000000e+00 : f32
    %41 = vector.broadcast %cst_25 : f32 to vector<8x8xf32>
    %42 = arith.subf %41, %40 : vector<8x8xf32>
    %c0_26 = arith.constant 0 : index
    %c0_27 = arith.constant 0 : index
    %c0_28 = arith.constant 0 : index
    %43 = vector.load %arg4[%c0_26, %c0_27, %c0_28] : memref<1x8x8xf32, #tpu.memory_space<vmem>>, vector<1x8x8xf32>
    %44 = vector.shape_cast %43 : vector<1x8x8xf32> to vector<8x8xf32>
    %45 = vector.shape_cast %38 : vector<1x8xi1> to vector<1x8xi1>
    %46 = vector.broadcast %45 : vector<1x8xi1> to vector<8x8xi1>
    %47 = arith.select %46, %42, %44 : vector<8x8xi1>, vector<8x8xf32>
    %c0_29 = arith.constant 0 : index
    %c0_30 = arith.constant 0 : index
    %c0_31 = arith.constant 0 : index
    %48 = vector.load %arg2[%c0_29, %c0_30, %c0_31] : memref<1x1x8xf32, #tpu.memory_space<vmem>>, vector<1x1x8xf32>
    %49 = vector.shape_cast %48 : vector<1x1x8xf32> to vector<1x8xf32>
    %50 = vector.extract_strided_slice %28 {offsets = [0, 0], sizes = [8, 8], strides = [1, 1]} : vector<8x32xf32> to vector<8x8xf32>
    %51 = vector.extract_strided_slice %30 {offsets = [0, 0], sizes = [8, 8], strides = [1, 1]} : vector<8x32xf32> to vector<8x8xf32>
    %52 = arith.mulf %50, %35 : vector<8x8xf32>
    %c4_i32_32 = arith.constant 4 : i32
    %53 = tpu.dynamic_rotate %50 by %c4_i32_32 dim 1 : vector<8x8xf32>, i32 -> vector<8x8xf32>
    %54 = arith.mulf %53, %47 : vector<8x8xf32>
    %55 = arith.addf %52, %54 : vector<8x8xf32>
    %56 = arith.truncf %55 : vector<8x8xf32> to vector<8x8xbf16>
    %57 = arith.mulf %51, %35 : vector<8x8xf32>
    %c4_i32_33 = arith.constant 4 : i32
    %58 = tpu.dynamic_rotate %51 by %c4_i32_33 dim 1 : vector<8x8xf32>, i32 -> vector<8x8xf32>
    %59 = arith.mulf %58, %47 : vector<8x8xf32>
    %60 = arith.addf %57, %59 : vector<8x8xf32>
    %61 = arith.truncf %60 : vector<8x8xf32> to vector<8x8xbf16>
    %cst_34 = arith.constant dense<0.000000e+00> : vector<8x8xf32>
    %62 = tpu.matmul %56, %61, %cst_34 {dimension_numbers = #tpu.dot_dimension_numbers<[1], [1], [0], [0], [0, 0, 1, 0], [], []>} : vector<8x8xbf16>, vector<8x8xbf16>, vector<8x8xf32> -> vector<8x8xf32>
    %63 = vector.broadcast %49 : vector<1x8xf32> to vector<8x8xf32>
    %64 = arith.addf %62, %63 : vector<8x8xf32>
    %cst_35 = arith.constant dense<0xFF800000> : vector<8xf32>
    %65 = vector.multi_reduction <maximumf>, %64, %cst_35 [1] : vector<8x8xf32> to vector<8xf32>
    %66 = vector.shape_cast %65 : vector<8xf32> to vector<8x1xf32>
    %67 = vector.broadcast %66 : vector<8x1xf32> to vector<8x8xf32>
    %68 = arith.subf %64, %67 : vector<8x8xf32>
    %69 = math.exp %68 : vector<8x8xf32>
    %cst_36 = arith.constant dense<0.000000e+00> : vector<8xf32>
    %70 = vector.multi_reduction <add>, %69, %cst_36 [1] : vector<8x8xf32> to vector<8xf32>
    %71 = vector.shape_cast %70 : vector<8xf32> to vector<8x1xf32>
    %72 = tpu.reciprocal %71 {approx = true} : vector<8x1xf32> -> vector<8x1xf32>
    %73 = arith.truncf %69 : vector<8x8xf32> to vector<8x8xbf16>
    %74 = vector.extract_strided_slice %33 {offsets = [0, 0], sizes = [8, 8], strides = [1, 1]} : vector<8x32xbf16> to vector<8x8xbf16>
    %cst_37 = arith.constant dense<0.000000e+00> : vector<8x8xf32>
    %75 = tpu.matmul %73, %74, %cst_37 {dimension_numbers = #tpu.dot_dimension_numbers<[1], [0], [0], [1], [0, 0, 1, 1], [], []>} : vector<8x8xbf16>, vector<8x8xbf16>, vector<8x8xf32> -> vector<8x8xf32>
    %76 = vector.broadcast %72 : vector<8x1xf32> to vector<8x8xf32>
    %77 = arith.mulf %75, %76 : vector<8x8xf32>
    %78 = arith.truncf %77 : vector<8x8xf32> to vector<8x8xbf16>
    %c0_38 = arith.constant 0 : index
    %c0_39 = arith.constant 0 : index
    %79 = vector.load %arg16[%c0_38, %c0_39] : memref<8x32xbf16, #tpu.memory_space<vmem>>, vector<8x8xbf16>
    tpu.vector_store %arg16[%c0_38, %c0_39], %78 {strides = array<i32>} : memref<8x32xbf16, #tpu.memory_space<vmem>>, vector<8x8xbf16>,
    %80 = vector.extract_strided_slice %28 {offsets = [0, 8], sizes = [8, 8], strides = [1, 1]} : vector<8x32xf32> to vector<8x8xf32>
    %81 = vector.extract_strided_slice %30 {offsets = [0, 8], sizes = [8, 8], strides = [1, 1]} : vector<8x32xf32> to vector<8x8xf32>
    %82 = arith.mulf %80, %35 : vector<8x8xf32>
    %c4_i32_40 = arith.constant 4 : i32
    %83 = tpu.dynamic_rotate %80 by %c4_i32_40 dim 1 : vector<8x8xf32>, i32 -> vector<8x8xf32>
    %84 = arith.mulf %83, %47 : vector<8x8xf32>
    %85 = arith.addf %82, %84 : vector<8x8xf32>
    %86 = arith.truncf %85 : vector<8x8xf32> to vector<8x8xbf16>
    %87 = arith.mulf %81, %35 : vector<8x8xf32>
    %c4_i32_41 = arith.constant 4 : i32
    %88 = tpu.dynamic_rotate %81 by %c4_i32_41 dim 1 : vector<8x8xf32>, i32 -> vector<8x8xf32>
    %89 = arith.mulf %88, %47 : vector<8x8xf32>
    %90 = arith.addf %87, %89 : vector<8x8xf32>
    %91 = arith.truncf %90 : vector<8x8xf32> to vector<8x8xbf16>
    %cst_42 = arith.constant dense<0.000000e+00> : vector<8x8xf32>
    %92 = tpu.matmul %86, %91, %cst_42 {dimension_numbers = #tpu.dot_dimension_numbers<[1], [1], [0], [0], [0, 0, 1, 0], [], []>} : vector<8x8xbf16>, vector<8x8xbf16>, vector<8x8xf32> -> vector<8x8xf32>
    %93 = vector.broadcast %49 : vector<1x8xf32> to vector<8x8xf32>
    %94 = arith.addf %92, %93 : vector<8x8xf32>
    %cst_43 = arith.constant dense<0xFF800000> : vector<8xf32>
    %95 = vector.multi_reduction <maximumf>, %94, %cst_43 [1] : vector<8x8xf32> to vector<8xf32>
    %96 = vector.shape_cast %95 : vector<8xf32> to vector<8x1xf32>
    %97 = vector.broadcast %96 : vector<8x1xf32> to vector<8x8xf32>
    %98 = arith.subf %94, %97 : vector<8x8xf32>
    %99 = math.exp %98 : vector<8x8xf32>
    %cst_44 = arith.constant dense<0.000000e+00> : vector<8xf32>
    %100 = vector.multi_reduction <add>, %99, %cst_44 [1] : vector<8x8xf32> to vector<8xf32>
    %101 = vector.shape_cast %100 : vector<8xf32> to vector<8x1xf32>
    %102 = tpu.reciprocal %101 {approx = true} : vector<8x1xf32> -> vector<8x1xf32>
    %103 = arith.truncf %99 : vector<8x8xf32> to vector<8x8xbf16>
    %104 = vector.extract_strided_slice %33 {offsets = [0, 8], sizes = [8, 8], strides = [1, 1]} : vector<8x32xbf16> to vector<8x8xbf16>
    %cst_45 = arith.constant dense<0.000000e+00> : vector<8x8xf32>
    %105 = tpu.matmul %103, %104, %cst_45 {dimension_numbers = #tpu.dot_dimension_numbers<[1], [0], [0], [1], [0, 0, 1, 1], [], []>} : vector<8x8xbf16>, vector<8x8xbf16>, vector<8x8xf32> -> vector<8x8xf32>
    %106 = vector.broadcast %102 : vector<8x1xf32> to vector<8x8xf32>
    %107 = arith.mulf %105, %106 : vector<8x8xf32>
    %108 = arith.truncf %107 : vector<8x8xf32> to vector<8x8xbf16>
    %c0_46 = arith.constant 0 : index
    %c8 = arith.constant 8 : index
    %109 = vector.load %arg16[%c0_46, %c8] : memref<8x32xbf16, #tpu.memory_space<vmem>>, vector<8x8xbf16>
    tpu.vector_store %arg16[%c0_46, %c8], %108 {strides = array<i32>} : memref<8x32xbf16, #tpu.memory_space<vmem>>, vector<8x8xbf16>,
    %110 = vector.extract_strided_slice %28 {offsets = [0, 16], sizes = [8, 8], strides = [1, 1]} : vector<8x32xf32> to vector<8x8xf32>
    %111 = vector.extract_strided_slice %30 {offsets = [0, 16], sizes = [8, 8], strides = [1, 1]} : vector<8x32xf32> to vector<8x8xf32>
    %112 = arith.mulf %110, %35 : vector<8x8xf32>
    %c4_i32_47 = arith.constant 4 : i32
    %113 = tpu.dynamic_rotate %110 by %c4_i32_47 dim 1 : vector<8x8xf32>, i32 -> vector<8x8xf32>
    %114 = arith.mulf %113, %47 : vector<8x8xf32>
    %115 = arith.addf %112, %114 : vector<8x8xf32>
    %116 = arith.truncf %115 : vector<8x8xf32> to vector<8x8xbf16>
    %117 = arith.mulf %111, %35 : vector<8x8xf32>
    %c4_i32_48 = arith.constant 4 : i32
    %118 = tpu.dynamic_rotate %111 by %c4_i32_48 dim 1 : vector<8x8xf32>, i32 -> vector<8x8xf32>
    %119 = arith.mulf %118, %47 : vector<8x8xf32>
    %120 = arith.addf %117, %119 : vector<8x8xf32>
    %121 = arith.truncf %120 : vector<8x8xf32> to vector<8x8xbf16>
    %cst_49 = arith.constant dense<0.000000e+00> : vector<8x8xf32>
    %122 = tpu.matmul %116, %121, %cst_49 {dimension_numbers = #tpu.dot_dimension_numbers<[1], [1], [0], [0], [0, 0, 1, 0], [], []>} : vector<8x8xbf16>, vector<8x8xbf16>, vector<8x8xf32> -> vector<8x8xf32>
    %123 = vector.broadcast %49 : vector<1x8xf32> to vector<8x8xf32>
    %124 = arith.addf %122, %123 : vector<8x8xf32>
    %cst_50 = arith.constant dense<0xFF800000> : vector<8xf32>
    %125 = vector.multi_reduction <maximumf>, %124, %cst_50 [1] : vector<8x8xf32> to vector<8xf32>
    %126 = vector.shape_cast %125 : vector<8xf32> to vector<8x1xf32>
    %127 = vector.broadcast %126 : vector<8x1xf32> to vector<8x8xf32>
    %128 = arith.subf %124, %127 : vector<8x8xf32>
    %129 = math.exp %128 : vector<8x8xf32>
    %cst_51 = arith.constant dense<0.000000e+00> : vector<8xf32>
    %130 = vector.multi_reduction <add>, %129, %cst_51 [1] : vector<8x8xf32> to vector<8xf32>
    %131 = vector.shape_cast %130 : vector<8xf32> to vector<8x1xf32>
    %132 = tpu.reciprocal %131 {approx = true} : vector<8x1xf32> -> vector<8x1xf32>
    %133 = arith.truncf %129 : vector<8x8xf32> to vector<8x8xbf16>
    %134 = vector.extract_strided_slice %33 {offsets = [0, 16], sizes = [8, 8], strides = [1, 1]} : vector<8x32xbf16> to vector<8x8xbf16>
    %cst_52 = arith.constant dense<0.000000e+00> : vector<8x8xf32>
    %135 = tpu.matmul %133, %134, %cst_52 {dimension_numbers = #tpu.dot_dimension_numbers<[1], [0], [0], [1], [0, 0, 1, 1], [], []>} : vector<8x8xbf16>, vector<8x8xbf16>, vector<8x8xf32> -> vector<8x8xf32>
    %136 = vector.broadcast %132 : vector<8x1xf32> to vector<8x8xf32>
    %137 = arith.mulf %135, %136 : vector<8x8xf32>
    %138 = arith.truncf %137 : vector<8x8xf32> to vector<8x8xbf16>
    %c0_53 = arith.constant 0 : index
    %c16 = arith.constant 16 : index
    %139 = vector.load %arg16[%c0_53, %c16] : memref<8x32xbf16, #tpu.memory_space<vmem>>, vector<8x8xbf16>
    tpu.vector_store %arg16[%c0_53, %c16], %138 {strides = array<i32>} : memref<8x32xbf16, #tpu.memory_space<vmem>>, vector<8x8xbf16>,
    %140 = vector.extract_strided_slice %28 {offsets = [0, 24], sizes = [8, 8], strides = [1, 1]} : vector<8x32xf32> to vector<8x8xf32>
    %141 = vector.extract_strided_slice %30 {offsets = [0, 24], sizes = [8, 8], strides = [1, 1]} : vector<8x32xf32> to vector<8x8xf32>
    %142 = arith.mulf %140, %35 : vector<8x8xf32>
    %c4_i32_54 = arith.constant 4 : i32
    %143 = tpu.dynamic_rotate %140 by %c4_i32_54 dim 1 : vector<8x8xf32>, i32 -> vector<8x8xf32>
    %144 = arith.mulf %143, %47 : vector<8x8xf32>
    %145 = arith.addf %142, %144 : vector<8x8xf32>
    %146 = arith.truncf %145 : vector<8x8xf32> to vector<8x8xbf16>
    %147 = arith.mulf %141, %35 : vector<8x8xf32>
    %c4_i32_55 = arith.constant 4 : i32
    %148 = tpu.dynamic_rotate %141 by %c4_i32_55 dim 1 : vector<8x8xf32>, i32 -> vector<8x8xf32>
    %149 = arith.mulf %148, %47 : vector<8x8xf32>
    %150 = arith.addf %147, %149 : vector<8x8xf32>
    %151 = arith.truncf %150 : vector<8x8xf32> to vector<8x8xbf16>
    %cst_56 = arith.constant dense<0.000000e+00> : vector<8x8xf32>
    %152 = tpu.matmul %146, %151, %cst_56 {dimension_numbers = #tpu.dot_dimension_numbers<[1], [1], [0], [0], [0, 0, 1, 0], [], []>} : vector<8x8xbf16>, vector<8x8xbf16>, vector<8x8xf32> -> vector<8x8xf32>
    %153 = vector.broadcast %49 : vector<1x8xf32> to vector<8x8xf32>
    %154 = arith.addf %152, %153 : vector<8x8xf32>
    %cst_57 = arith.constant dense<0xFF800000> : vector<8xf32>
    %155 = vector.multi_reduction <maximumf>, %154, %cst_57 [1] : vector<8x8xf32> to vector<8xf32>
    %156 = vector.shape_cast %155 : vector<8xf32> to vector<8x1xf32>
    %157 = vector.broadcast %156 : vector<8x1xf32> to vector<8x8xf32>
    %158 = arith.subf %154, %157 : vector<8x8xf32>
    %159 = math.exp %158 : vector<8x8xf32>
    %cst_58 = arith.constant dense<0.000000e+00> : vector<8xf32>
    %160 = vector.multi_reduction <add>, %159, %cst_58 [1] : vector<8x8xf32> to vector<8xf32>
    %161 = vector.shape_cast %160 : vector<8xf32> to vector<8x1xf32>
    %162 = tpu.reciprocal %161 {approx = true} : vector<8x1xf32> -> vector<8x1xf32>
    %163 = arith.truncf %159 : vector<8x8xf32> to vector<8x8xbf16>
    %164 = vector.extract_strided_slice %33 {offsets = [0, 24], sizes = [8, 8], strides = [1, 1]} : vector<8x32xbf16> to vector<8x8xbf16>
    %cst_59 = arith.constant dense<0.000000e+00> : vector<8x8xf32>
    %165 = tpu.matmul %163, %164, %cst_59 {dimension_numbers = #tpu.dot_dimension_numbers<[1], [0], [0], [1], [0, 0, 1, 1], [], []>} : vector<8x8xbf16>, vector<8x8xbf16>, vector<8x8xf32> -> vector<8x8xf32>
    %166 = vector.broadcast %162 : vector<8x1xf32> to vector<8x8xf32>
    %167 = arith.mulf %165, %166 : vector<8x8xf32>
    %168 = arith.truncf %167 : vector<8x8xf32> to vector<8x8xbf16>
    %c0_60 = arith.constant 0 : index
    %c24 = arith.constant 24 : index
    %169 = vector.load %arg16[%c0_60, %c24] : memref<8x32xbf16, #tpu.memory_space<vmem>>, vector<8x8xbf16>
    tpu.vector_store %arg16[%c0_60, %c24], %168 {strides = array<i32>} : memref<8x32xbf16, #tpu.memory_space<vmem>>, vector<8x8xbf16>,
    %c0_61 = arith.constant 0 : index
    %c0_62 = arith.constant 0 : index
    %170 = vector.load %arg16[%c0_61, %c0_62] : memref<8x32xbf16, #tpu.memory_space<vmem>>, vector<8x32xbf16>
    %c0_63 = arith.constant 0 : index
    %c0_64 = arith.constant 0 : index
    %171 = vector.load %arg12[%c0_63, %c0_64] : memref<32x32xbf16, #tpu.memory_space<vmem>>, vector<32x32xbf16>
    %cst_65 = arith.constant dense<0.000000e+00> : vector<8x32xf32>
    %172 = tpu.matmul %170, %171, %cst_65 {dimension_numbers = #tpu.dot_dimension_numbers<[1], [0], [0], [1], [0, 0, 1, 1], [], []>} : vector<8x32xbf16>, vector<32x32xbf16>, vector<8x32xf32> -> vector<8x32xf32>
    %173 = arith.addf %1, %172 : vector<8x32xf32>
    %c0_66 = arith.constant 0 : index
    %c0_67 = arith.constant 0 : index
    %174 = vector.load %arg7[%c0_66, %c0_67] : memref<1x32xf32, #tpu.memory_space<vmem>>, vector<1x32xf32>
    %c0_68 = arith.constant 0 : index
    %c0_69 = arith.constant 0 : index
    %175 = vector.load %arg8[%c0_68, %c0_69] : memref<1x32xf32, #tpu.memory_space<vmem>>, vector<1x32xf32>
    %cst_70 = arith.constant dense<0.000000e+00> : vector<8xf32>
    %176 = vector.multi_reduction <add>, %173, %cst_70 [1] : vector<8x32xf32> to vector<8xf32>
    %177 = vector.shape_cast %176 : vector<8xf32> to vector<8x1xf32>
    %cst_71 = arith.constant 3.200000e+01 : f32
    %178 = vector.broadcast %cst_71 : f32 to vector<8x1xf32>
    %179 = arith.divf %177, %178 : vector<8x1xf32>
    %180 = vector.broadcast %179 : vector<8x1xf32> to vector<8x32xf32>
    %181 = arith.subf %173, %180 : vector<8x32xf32>
    %182 = arith.mulf %181, %181 : vector<8x32xf32>
    %cst_72 = arith.constant dense<0.000000e+00> : vector<8xf32>
    %183 = vector.multi_reduction <add>, %182, %cst_72 [1] : vector<8x32xf32> to vector<8xf32>
    %184 = vector.shape_cast %183 : vector<8xf32> to vector<8x1xf32>
    %cst_73 = arith.constant 3.200000e+01 : f32
    %185 = vector.broadcast %cst_73 : f32 to vector<8x1xf32>
    %186 = arith.divf %184, %185 : vector<8x1xf32>
    %187 = vector.broadcast %179 : vector<8x1xf32> to vector<8x32xf32>
    %188 = arith.subf %173, %187 : vector<8x32xf32>
    %cst_74 = arith.constant 9.99999974E-6 : f32
    %189 = vector.broadcast %cst_74 : f32 to vector<8x1xf32>
    %190 = arith.addf %186, %189 : vector<8x1xf32>
    %191 = math.rsqrt %190 : vector<8x1xf32>
    %192 = vector.broadcast %191 : vector<8x1xf32> to vector<8x32xf32>
    %193 = arith.mulf %188, %192 : vector<8x32xf32>
    %194 = vector.broadcast %174 : vector<1x32xf32> to vector<8x32xf32>
    %195 = arith.mulf %193, %194 : vector<8x32xf32>
    %196 = vector.broadcast %175 : vector<1x32xf32> to vector<8x32xf32>
    %197 = arith.addf %195, %196 : vector<8x32xf32>
    %198 = arith.truncf %197 : vector<8x32xf32> to vector<8x32xbf16>
    %c0_75 = arith.constant 0 : index
    %c0_76 = arith.constant 0 : index
    %199 = vector.load %arg13[%c0_75, %c0_76] : memref<32x64xbf16, #tpu.memory_space<vmem>>, vector<32x64xbf16>
    %cst_77 = arith.constant dense<0.000000e+00> : vector<8x64xf32>
    %200 = tpu.matmul %198, %199, %cst_77 {dimension_numbers = #tpu.dot_dimension_numbers<[1], [0], [0], [1], [0, 0, 1, 1], [], []>} : vector<8x32xbf16>, vector<32x64xbf16>, vector<8x64xf32> -> vector<8x64xf32>
    %201 = arith.mulf %200, %200 : vector<8x64xf32>
    %202 = arith.mulf %200, %201 : vector<8x64xf32>
    %cst_78 = arith.constant 4.471500e-02 : f32
    %203 = vector.broadcast %cst_78 : f32 to vector<8x64xf32>
    %204 = arith.mulf %203, %202 : vector<8x64xf32>
    %205 = arith.addf %200, %204 : vector<8x64xf32>
    %cst_79 = arith.constant 0.797884583 : f32
    %206 = vector.broadcast %cst_79 : f32 to vector<8x64xf32>
    %207 = arith.mulf %206, %205 : vector<8x64xf32>
    %208 = math.tanh %207 : vector<8x64xf32>
    %cst_80 = arith.constant 1.000000e+00 : f32
    %209 = vector.broadcast %cst_80 : f32 to vector<8x64xf32>
    %210 = arith.addf %209, %208 : vector<8x64xf32>
    %cst_81 = arith.constant 5.000000e-01 : f32
    %211 = vector.broadcast %cst_81 : f32 to vector<8x64xf32>
    %212 = arith.mulf %211, %210 : vector<8x64xf32>
    %213 = arith.mulf %200, %212 : vector<8x64xf32>
    %214 = arith.truncf %213 : vector<8x64xf32> to vector<8x64xbf16>
    %c0_82 = arith.constant 0 : index
    %c0_83 = arith.constant 0 : index
    %215 = vector.load %arg14[%c0_82, %c0_83] : memref<64x32xbf16, #tpu.memory_space<vmem>>, vector<64x32xbf16>
    %cst_84 = arith.constant dense<0.000000e+00> : vector<8x32xf32>
    %216 = tpu.matmul %214, %215, %cst_84 {dimension_numbers = #tpu.dot_dimension_numbers<[1], [0], [0], [1], [0, 0, 1, 1], [], []>} : vector<8x64xbf16>, vector<64x32xbf16>, vector<8x32xf32> -> vector<8x32xf32>
    %217 = arith.addf %173, %216 : vector<8x32xf32>
    %c0_85 = arith.constant 0 : index
    %c0_86 = arith.constant 0 : index
    %c0_87 = arith.constant 0 : index
    %218 = vector.load %arg15[%c0_85, %c0_86, %c0_87] : memref<1x8x32xf32, #tpu.memory_space<vmem>>, vector<1x8x32xf32>
    %219 = vector.shape_cast %218 : vector<1x8x32xf32> to vector<8x32xf32>
    %220 = vector.shape_cast %217 : vector<8x32xf32> to vector<1x8x32xf32>
    tpu.vector_store %arg15[%c0_85, %c0_86, %c0_87], %220 {strides = array<i32>} : memref<1x8x32xf32, #tpu.memory_space<vmem>>, vector<1x8x32xf32>,
    return
  }
  func.func @transform_0(%arg0: i32) -> (i32, i32, i32) {
    %c0_i32 = arith.constant 0 : i32
    %c0_i32_0 = arith.constant 0 : i32
    %c0_i32_1 = arith.constant 0 : i32
    return %arg0, %c0_i32, %c0_i32_0 : i32, i32, i32
  }
  func.func @transform_1(%arg0: i32) -> (i32, i32, i32) {
    %c0_i32 = arith.constant 0 : i32
    %c0_i32_0 = arith.constant 0 : i32
    %c0_i32_1 = arith.constant 0 : i32
    return %arg0, %c0_i32, %c0_i32_0 : i32, i32, i32
  }
  func.func @transform_2(%arg0: i32) -> (i32, i32, i32) {
    %c0_i32 = arith.constant 0 : i32
    %c0_i32_0 = arith.constant 0 : i32
    %c0_i32_1 = arith.constant 0 : i32
    return %arg0, %c0_i32, %c0_i32_0 : i32, i32, i32
  }
  func.func @transform_3(%arg0: i32) -> (i32, i32, i32) {
    %c0_i32 = arith.constant 0 : i32
    %c0_i32_0 = arith.constant 0 : i32
    %c0_i32_1 = arith.constant 0 : i32
    return %arg0, %c0_i32, %c0_i32_0 : i32, i32, i32
  }
  func.func @transform_4(%arg0: i32) -> (i32, i32) {
    %c0_i32 = arith.constant 0 : i32
    %c0_i32_0 = arith.constant 0 : i32
    %c0_i32_1 = arith.constant 0 : i32
    return %c0_i32, %c0_i32_0 : i32, i32
  }
  func.func @transform_5(%arg0: i32) -> (i32, i32) {
    %c0_i32 = arith.constant 0 : i32
    %c0_i32_0 = arith.constant 0 : i32
    %c0_i32_1 = arith.constant 0 : i32
    return %c0_i32, %c0_i32_0 : i32, i32
  }
  func.func @transform_6(%arg0: i32) -> (i32, i32) {
    %c0_i32 = arith.constant 0 : i32
    %c0_i32_0 = arith.constant 0 : i32
    %c0_i32_1 = arith.constant 0 : i32
    return %c0_i32, %c0_i32_0 : i32, i32
  }
  func.func @transform_7(%arg0: i32) -> (i32, i32) {
    %c0_i32 = arith.constant 0 : i32
    %c0_i32_0 = arith.constant 0 : i32
    %c0_i32_1 = arith.constant 0 : i32
    return %c0_i32, %c0_i32_0 : i32, i32
  }
  func.func @transform_8(%arg0: i32) -> (i32, i32) {
    %c0_i32 = arith.constant 0 : i32
    %c0_i32_0 = arith.constant 0 : i32
    %c0_i32_1 = arith.constant 0 : i32
    return %c0_i32, %c0_i32_0 : i32, i32
  }
  func.func @transform_9(%arg0: i32) -> (i32, i32) {
    %c0_i32 = arith.constant 0 : i32
    %c0_i32_0 = arith.constant 0 : i32
    %c0_i32_1 = arith.constant 0 : i32
    return %c0_i32, %c0_i32_0 : i32, i32
  }
  func.func @transform_10(%arg0: i32) -> (i32, i32) {
    %c0_i32 = arith.constant 0 : i32
    %c0_i32_0 = arith.constant 0 : i32
    %c0_i32_1 = arith.constant 0 : i32
    return %c0_i32, %c0_i32_0 : i32, i32
  }
  func.func @transform_11(%arg0: i32) -> (i32, i32) {
    %c0_i32 = arith.constant 0 : i32
    %c0_i32_0 = arith.constant 0 : i32
    %c0_i32_1 = arith.constant 0 : i32
    return %c0_i32, %c0_i32_0 : i32, i32
  }
  func.func @transform_12(%arg0: i32) -> (i32, i32) {
    %c0_i32 = arith.constant 0 : i32
    %c0_i32_0 = arith.constant 0 : i32
    %c0_i32_1 = arith.constant 0 : i32
    return %c0_i32, %c0_i32_0 : i32, i32
  }
  func.func @transform_13(%arg0: i32) -> (i32, i32) {
    %c0_i32 = arith.constant 0 : i32
    %c0_i32_0 = arith.constant 0 : i32
    %c0_i32_1 = arith.constant 0 : i32
    return %c0_i32, %c0_i32_0 : i32, i32
  }
  func.func @transform_14(%arg0: i32) -> (i32, i32, i32) {
    %c0_i32 = arith.constant 0 : i32
    %c0_i32_0 = arith.constant 0 : i32
    %c0_i32_1 = arith.constant 0 : i32
    return %arg0, %c0_i32, %c0_i32_0 : i32, i32, i32
  }
}

</mosaic_0001>

<bundles_post_ra>
// kernel: tpu_custom_call.1
= control target key start
LH: loop header
LB: loop body
LE: loop exit
PB: predicated region body
PF: predicated region fallthrough
CT: control target
= control target key end

     0   :  { %s3205_s0 = inlined_call_operand.vmem [shape: f32[2,8,32], index: 0, kind: input, shape index: {}]   ;;  %s3206_s1 = inlined_call_operand.vmem [shape: f32[2,1,8], index: 1, kind: input, shape index: {}]   ;;  %s3207_s2 = inlined_call_operand.vmem [shape: f32[2,8,8], index: 2, kind: input, shape index: {}]   ;;  %s3208_s3 = inlined_call_operand.vmem [shape: f32[2,8,8], index: 3, kind: input, shape index: {}]   ;;  %s3209_s4 = inlined_call_operand.hbm [shape: f32[1,32], index: 4, kind: input, shape index: {}]   ;;  %s3210_s5 = inlined_call_operand.hbm [shape: f32[1,32], index: 5, kind: input, shape index: {}]   ;;  %s3211_s6 = inlined_call_operand.hbm [shape: f32[1,32], index: 6, kind: input, shape index: {}]   ;;  %s3212_s7 = inlined_call_operand.hbm [shape: f32[1,32], index: 7, kind: input, shape index: {}]   ;;  %s3213_s8 = inlined_call_operand.hbm [shape: bf16[32,32], index: 8, kind: input, shape index: {}]   ;;  %s3214_s9 = inlined_call_operand.vmem [shape: bf16[32,32], index: 9, kind: input, shape index: {}]   ;;  %s3215_s10 = inlined_call_operand.hbm [shape: bf16[32,32], index: 10, kind: input, shape index: {}]   ;;  %s3216_s11 = inlined_call_operand.hbm [shape: bf16[32,32], index: 11, kind: input, shape index: {}]   ;;  %s3217_s12 = inlined_call_operand.hbm [shape: bf16[32,64], index: 12, kind: input, shape index: {}]   ;;  %s3218_s13 = inlined_call_operand.vmem [shape: bf16[64,32], index: 13, kind: input, shape index: {}]   ;;  %s3219_s14 = inlined_call_operand.hbm [shape: f32[2,8,32], index: 14, kind: output, shape index: {}]  }
   0x1   :  { %3234 = sst [smem:[#allocation32_spill]] %s3210_s5 }
   0x2   :  { %3235 = sst [smem:[#allocation33_spill]] %s3212_s7 }
   0x3   :  { %3236 = sst [smem:[#allocation34_spill]] %s3218_s13 }
   0x4   :  { %3237 = sst [smem:[#allocation35_spill]] %s3219_s14 }
   0x5   :  { %19 = vsyncpa [#allocation4], 0 }
   0x6   :  { %20 = vsyncpa [#allocation7], 0 }
   0x7   :  { %21 = vsyncpa [#allocation10], 0 }
   0x8   :  { %22 = vsyncpa [#allocation13], 0 }
   0x9   :  { %23 = vsyncpa [#allocation16], 0 }
   0xa   :  { %24 = vsyncpa [#allocation5], 0 }
   0xb   :  { %26 = vsyncpa [#allocation5 + $0x1], 0  ;;  %s2664_s29 = smov 0   ;;  %s2666_s30 = smov 0  }
   0xc   :  { %s2668_s15 = smov 0   ;;  %s2670_s16 = smov 0  }
   0xd LB: > { %3238 = sst [smem:[#allocation24_spill]] %s2552_s29  ;;  %s2685_s17 = sadd.s32 4294967295, %s2564_s16   ;;  %s2564_s16 = sphi %s2670_s16, %s3274_s16   ;;  %s2560_s15 = sphi %s2668_s15, %s3277_s15   ;;  %s2556_s30 = sphi %s2666_s30, %s3276_s30   ;;  %s2552_s29 = sphi %s2664_s29, %s3275_s29  }
   0xe   : > { %3239 = sst [smem:[#allocation25_spill]] %s2556_s30  ;;  %s1885_s18 = sadd.s32 4294967294, %s2564_s16  }
   0xf   : > { %3240 = sst [smem:[#allocation26_spill]] %s2560_s15  ;;  %s2689_s19 = sadd.s32 1, %s2564_s16  }
  0x10   : > { %3241 = sst [smem:[#allocation27_spill]] %s2564_s16  ;;  %s353_s20 = sadd.s32 1, %s2560_s15 }
  0x11   : > { %3242 = sst [smem:[#allocation28_spill]] %s2689_s19  ;;  %s350_s21 = ssub.s32 %s2564_s16, %s2689_s19 }
  0x12   : > { %p363_p0 = scmp.ne.s32.totalorder %s2560_s15, %s2556_s30  ;;  %p351_p1 = scmp.eq.s32.totalorder %s350_s21, 0 }
  0x13   : > { %p364_p2 = scmp.eq.s32.totalorder %s2685_s17, 1  ;;  %p369_p3 = scmp.ne.s32.totalorder %s2556_s30, %s2552_s29 }
  0x14   : > { %p370_p4 = scmp.eq.s32.totalorder %s1885_s18, 1  ;;  %p1886_p7 = scmp.ge.s32.totalorder %s2564_s16, 1 }
  0x15   : > { %s2700_s22 = scalar_select %p351_p1, %s2560_s15, %s353_s20  }
  0x16   : > { %p2702_p5 = por %p364_p2, %p363_p0  ;;  %p2706_p6 = por %p370_p4, %p369_p3 }
  0x17   : > { %3243 = sst [smem:[#allocation29_spill]] %s2700_s22  ;;  %p377_p8 = scmp.lt.s32.totalorder %s2564_s16, 3 }
  0x18   : > { %s3244_s23 = scalar_select %p2702_p5, 1, 0 }
  0x19   : > { %s3246_s24 = scalar_select %p2706_p6, 1, 0 }
  0x1a   : > { %3245 = sst [smem:[#allocation30_spill]] %s3244_s23  ;;  %p3226_p9 = scmp.eq.s32.totalorder %s2685_s17, 0 }
  0x1b   : > { %3247 = sst [smem:[#allocation31_spill]] %s3246_s24  ;;  %p2713_p10 = pnand %p1886_p7, %p377_p8 }
  0x1c   : > { %s2566_s26 = smov [#allocation6]   ;;  %s2567_s28 = smov [#allocation9]  }
  0x1d   : > { %s3248_s25 = scalar_select %p2713_p10, 1, 0 }
  0x1e   : > { %s401_s27 = sshll.u32 %s2566_s26, 4  ;;  %p2122_p11 = pneg %p2713_p10  ;;  %s402_s27 = int_to_ptr.vmem [resolvable:$true] %s401_s27 }
  0x1f   : > { %s423_s18 = sshll.u32 %s2567_s28, 4  ;;  %s2568_s21 = smov [#allocation12]   ;;  %s2725_s18 = int_to_ptr.vmem [resolvable:$true] %s423_s18 }
  0x20   : > { %p2721_p12 = pnand %p3226_p9, %p2122_p11  ;;  %s2727_s22 = sshll.u32 %s2568_s21, 4  ;;  %s450_s22 = int_to_ptr.vmem [resolvable:$true] %s2727_s22 }
  0x21   : > { %s3250_s5 = sld [smem:[#allocation32_spill]] }
  0x22   : > { %p2737_p0 = pneg %p2721_p12 }
  0x27   : > { %s2258_s26 = scalar_lea.hbm %s3250_s5, 16 }
  0x28   : > { %p2259_p13 = scmp.ne.s32.totalorder %s3250_s5, %s2258_s26  ;;  %p2265_p3 = scmp.lt.u32.totalorder %s2258_s26, %s3250_s5 }
  0x2a   : > { %p2261_p1 = pnand %p2737_p0, %p2259_p13 }
  0x2c   : > { %p2262_p2 = pneg %p2261_p1 }
  0x2e   : > { %p2267_p4 = pnand %p2265_p3, %p2262_p2 }
  0x30   : > { %2270 = shalt.err (!%p2267_p4)
}
  0x31   : > { %s2271_s15 = scalar_lea.vmem %s402_s27, 16  ;;  %s2278_s29 = scalar_lea.vmem %s402_s27, 32 }
  0x32   : > { %p2272_p7 = scmp.ne.s32.totalorder %s402_s27, %s2271_s15  ;;  %p2279_p9 = scmp.lt.s32.totalorder %s402_s27, %s402_s27 }
  0x33   : > { %p2280_p6 = scmp.lt.s32.totalorder %s2278_s29, %s2271_s15 }
  0x34   : > { %p2274_p8 = pnand %p2272_p7, %p2737_p0 }
  0x35   : > { %p2281_p5 = por %p2280_p6, %p2279_p9 }
  0x36   : > { %p2275_p11 = pneg %p2274_p8 }
  0x38   : > { %p2282_p10 = pnand %p2281_p5, %p2275_p11 }
  0x3a   : > { %2285 = shalt.err (!%p2282_p10)
}
  0x3b   : > { %2128 = dma.hbm_to_vmem [thread:$0]  (!%p2721_p12), %s3250_s5, 16, %s402_s27, [#allocation7]  }
  0x3c   : > { %s3252_s7 = sld [smem:[#allocation33_spill]] }
  0x42   : > { %s2286_s21 = scalar_lea.hbm %s3252_s7, 16 }
  0x43   : > { %p2287_p13 = scmp.ne.s32.totalorder %s3252_s7, %s2286_s21  ;;  %p2293_p5 = scmp.lt.u32.totalorder %s2286_s21, %s3252_s7 }
  0x45   : > { %p2289_p1 = pnand %p2287_p13, %p2737_p0 }
  0x47   : > { %p2290_p6 = pneg %p2289_p1 }
  0x49   : > { %p2295_p9 = pnand %p2293_p5, %p2290_p6 }
  0x4b   : > { %2298 = shalt.err (!%p2295_p9)
}
  0x4c   : > { %s2299_s27 = scalar_lea.vmem %s2725_s18, 16  ;;  %s2306_s14 = scalar_lea.vmem %s2725_s18, 32 }
  0x4d   : > { %p2300_p10 = scmp.ne.s32.totalorder %s2725_s18, %s2299_s27  ;;  %p2307_p4 = scmp.lt.s32.totalorder %s2725_s18, %s2725_s18 }
  0x4e   : > { %p2308_p7 = scmp.lt.s32.totalorder %s2306_s14, %s2299_s27 }
  0x4f   : > { %p2302_p2 = pnand %p2300_p10, %p2737_p0 }
  0x50   : > { %p2309_p8 = por %p2308_p7, %p2307_p4 }
  0x51   : > { %p2303_p3 = pneg %p2302_p2 }
  0x53   : > { %p2310_p11 = pnand %p2309_p8, %p2303_p3 }
  0x55   : > { %2313 = shalt.err (!%p2310_p11)
}
  0x56   : > { %2134 = dma.hbm_to_vmem [thread:$0]  (!%p2721_p12), %s3252_s7, 16, %s2725_s18, [#allocation10]  }
  0x57   : > { %s2314_s26 = scalar_lea.hbm %s3215_s10, 256 }
  0x58   : > { %p2315_p13 = scmp.ne.s32.totalorder %s3215_s10, %s2314_s26  ;;  %p2321_p5 = scmp.lt.u32.totalorder %s2314_s26, %s3215_s10 }
  0x5a   : > { %p2317_p1 = pnand %p2315_p13, %p2737_p0 }
  0x5c   : > { %p2318_p6 = pneg %p2317_p1 }
  0x5e   : > { %p2323_p9 = pnand %p2321_p5, %p2318_p6 }
  0x60   : > { %2326 = shalt.err (!%p2323_p9)
}
  0x61   : > { %s2327_s14 = scalar_lea.vmem %s450_s22, 256  ;;  %p2335_p4 = scmp.lt.s32.totalorder %s450_s22, %s450_s22 }
  0x62   : > { %p2328_p10 = scmp.ne.s32.totalorder %s450_s22, %s2327_s14  ;;  %p2336_p7 = scmp.lt.s32.totalorder %s2327_s14, %s2327_s14 }
  0x64   : > { %p2330_p2 = pnand %p2328_p10, %p2737_p0  ;;  %p2337_p8 = por %p2336_p7, %p2335_p4 }
  0x66   : > { %p2331_p3 = pneg %p2330_p2 }
  0x68   : > { %p2338_p11 = pnand %p2337_p8, %p2331_p3 }
  0x6a   : > { %2341 = shalt.err (!%p2338_p11)
}
  0x6b   : > { %s2569_s18 = smov 64   ;;  %s2570_s23 = smov 4  }
  0x6c   : > { %2140 = dma.hbm_to_vmem [thread:$0]  (!%p2721_p12), %s3215_s10, 256, %s450_s22, [#allocation13], %s2569_s18, %s2569_s18, %s2570_s23  }
  0x6d   : > { %s2571_s16 = smov [#allocation3]   ;;  %s2572_s21 = smov [#allocation8]  }
  0x6e   : > { %s390_s26 = sshll.u32 %s2571_s16, 4  ;;  %s412_s15 = sshll.u32 %s2572_s21, 4  ;;  %s391_s26 = int_to_ptr.vmem [resolvable:$true] %s390_s26  ;;  %s413_s15 = int_to_ptr.vmem [resolvable:$true] %s412_s15 }
  0x6f   : > { %s2342_s14 = scalar_lea.hbm %s3209_s4, 16 }
  0x70   : > { %p2343_p13 = scmp.ne.s32.totalorder %s3209_s4, %s2342_s14  ;;  %p2349_p5 = scmp.lt.u32.totalorder %s2342_s14, %s3209_s4 }
  0x72   : > { %p2345_p1 = pnand %p2343_p13, %p2737_p0 }
  0x74   : > { %p2346_p6 = pneg %p2345_p1 }
  0x76   : > { %p2351_p9 = pnand %p2349_p5, %p2346_p6 }
  0x78   : > { %2354 = shalt.err (!%p2351_p9)
}
  0x79   : > { %s2355_s22 = scalar_lea.vmem %s391_s26, 16  ;;  %s2362_s19 = scalar_lea.vmem %s391_s26, 32 }
  0x7a   : > { %p2356_p10 = scmp.ne.s32.totalorder %s391_s26, %s2355_s22  ;;  %p2363_p4 = scmp.lt.s32.totalorder %s391_s26, %s391_s26 }
  0x7b   : > { %p2364_p7 = scmp.lt.s32.totalorder %s2362_s19, %s2355_s22 }
  0x7c   : > { %p2358_p2 = pnand %p2356_p10, %p2737_p0 }
  0x7d   : > { %p2365_p8 = por %p2364_p7, %p2363_p4 }
  0x7e   : > { %p2359_p3 = pneg %p2358_p2 }
  0x80   : > { %p2366_p11 = pnand %p2365_p8, %p2359_p3 }
  0x82   : > { %2369 = shalt.err (!%p2366_p11)
}
  0x83   : > { %2125 = dma.hbm_to_vmem [thread:$0]  (!%p2721_p12), %s3209_s4, 16, %s391_s26, [#allocation4]  }
  0x84   : > { %s2370_s24 = scalar_lea.hbm %s3211_s6, 16 }
  0x85   : > { %p2371_p13 = scmp.ne.s32.totalorder %s3211_s6, %s2370_s24  ;;  %p2377_p5 = scmp.lt.u32.totalorder %s2370_s24, %s3211_s6 }
  0x87   : > { %p2373_p1 = pnand %p2371_p13, %p2737_p0 }
  0x89   : > { %p2374_p6 = pneg %p2373_p1 }
  0x8b   : > { %p2379_p9 = pnand %p2377_p5, %p2374_p6 }
  0x8d   : > { %2382 = shalt.err (!%p2379_p9)
}
  0x8e   : > { %s2383_s14 = scalar_lea.vmem %s413_s15, 16  ;;  %s2390_s26 = scalar_lea.vmem %s413_s15, 32 }
  0x8f   : > { %p2384_p10 = scmp.ne.s32.totalorder %s413_s15, %s2383_s14  ;;  %p2391_p4 = scmp.lt.s32.totalorder %s413_s15, %s413_s15 }
  0x90   : > { %p2392_p7 = scmp.lt.s32.totalorder %s2390_s26, %s2383_s14 }
  0x91   : > { %p2386_p2 = pnand %p2384_p10, %p2737_p0 }
  0x92   : > { %p2393_p8 = por %p2392_p7, %p2391_p4 }
  0x93   : > { %p2387_p3 = pneg %p2386_p2 }
  0x95   : > { %p2394_p11 = pnand %p2393_p8, %p2387_p3 }
  0x97   : > { %2397 = shalt.err (!%p2394_p11)
}
  0x98   : > { %2131 = dma.hbm_to_vmem [thread:$0]  (!%p2721_p12), %s3211_s6, 16, %s413_s15, [#allocation7]  }
  0x99   : > { %s2573_s5 = smov [#allocation11]   ;;  %s2574_s13 = smov [#allocation14]  }
  0x9a   : > { %s433_s7 = sshll.u32 %s2573_s5, 4  ;;  %s462_s30 = sshll.u32 %s2574_s13, 4  ;;  %s434_s7 = int_to_ptr.vmem [resolvable:$true] %s433_s7  ;;  %s463_s30 = int_to_ptr.vmem [resolvable:$true] %s462_s30 }
  0x9b   : > { %s2398_s21 = scalar_lea.hbm %s3213_s8, 256 }
  0x9c   : > { %p2399_p13 = scmp.ne.s32.totalorder %s3213_s8, %s2398_s21  ;;  %p2405_p5 = scmp.lt.u32.totalorder %s2398_s21, %s3213_s8 }
  0x9e   : > { %p2401_p1 = pnand %p2399_p13, %p2737_p0 }
  0xa0   : > { %p2402_p6 = pneg %p2401_p1 }
  0xa2   : > { %p2407_p9 = pnand %p2405_p5, %p2402_p6 }
  0xa4   : > { %2410 = shalt.err (!%p2407_p9)
}
  0xa5   : > { %s2411_s15 = scalar_lea.vmem %s434_s7, 256  ;;  %p2419_p4 = scmp.lt.s32.totalorder %s434_s7, %s434_s7 }
  0xa6   : > { %p2412_p10 = scmp.ne.s32.totalorder %s434_s7, %s2411_s15  ;;  %p2420_p7 = scmp.lt.s32.totalorder %s2411_s15, %s2411_s15 }
  0xa8   : > { %p2414_p2 = pnand %p2412_p10, %p2737_p0  ;;  %p2421_p8 = por %p2420_p7, %p2419_p4 }
  0xaa   : > { %p2415_p3 = pneg %p2414_p2 }
  0xac   : > { %p2422_p11 = pnand %p2421_p8, %p2415_p3 }
  0xae   : > { %2425 = shalt.err (!%p2422_p11)
}
  0xaf   : > { %2137 = dma.hbm_to_vmem [thread:$0]  (!%p2721_p12), %s3213_s8, 256, %s434_s7, [#allocation10], %s2569_s18, %s2569_s18, %s2570_s23  }
  0xb0   : > { %s2426_s24 = scalar_lea.hbm %s3216_s11, 256 }
  0xb1   : > { %p2427_p13 = scmp.ne.s32.totalorder %s3216_s11, %s2426_s24  ;;  %p2433_p5 = scmp.lt.u32.totalorder %s2426_s24, %s3216_s11 }
  0xb3   : > { %p2429_p1 = pnand %p2427_p13, %p2737_p0 }
  0xb5   : > { %p2430_p6 = pneg %p2429_p1 }
  0xb7   : > { %p2435_p9 = pnand %p2433_p5, %p2430_p6 }
  0xb9   : > { %2438 = shalt.err (!%p2435_p9)
}
  0xba   : > { %s2439_s14 = scalar_lea.vmem %s463_s30, 256  ;;  %p2447_p4 = scmp.lt.s32.totalorder %s463_s30, %s463_s30 }
  0xbb   : > { %p2440_p10 = scmp.ne.s32.totalorder %s463_s30, %s2439_s14  ;;  %p2448_p7 = scmp.lt.s32.totalorder %s2439_s14, %s2439_s14 }
  0xbd   : > { %p2442_p2 = pnand %p2440_p10, %p2737_p0  ;;  %p2449_p8 = por %p2448_p7, %p2447_p4 }
  0xbf   : > { %p2443_p3 = pneg %p2442_p2 }
  0xc1   : > { %p2450_p11 = pnand %p2449_p8, %p2443_p3 }
  0xc3   : > { %2453 = shalt.err (!%p2450_p11)
}
  0xc4   : > { %2143 = dma.hbm_to_vmem [thread:$0]  (!%p2721_p12), %s3216_s11, 256, %s463_s30, [#allocation13], %s2569_s18, %s2569_s18, %s2570_s23  }
  0xc5   : > { %s2575_s15 = smov [#allocation15]   ;;  %s2454_s13 = scalar_lea.hbm %s3217_s12, 256 }
  0xc6   : > { %s475_s22 = sshll.u32 %s2575_s15, 4  ;;  %p2455_p13 = scmp.ne.s32.totalorder %s3217_s12, %s2454_s13  ;;  %s476_s22 = int_to_ptr.vmem [resolvable:$true] %s475_s22 }
  0xc7   : > { %p2461_p5 = scmp.lt.u32.totalorder %s2454_s13, %s3217_s12 }
  0xc8   : > { %p2457_p1 = pnand %p2455_p13, %p2737_p0 }
  0xca   : > { %p2458_p6 = pneg %p2457_p1 }
  0xcc   : > { %p2463_p9 = pnand %p2461_p5, %p2458_p6 }
  0xce   : > { %2466 = shalt.err (!%p2463_p9)
}
  0xcf   : > { %s2467_s30 = scalar_lea.vmem %s476_s22, 256  ;;  %p2475_p4 = scmp.lt.s32.totalorder %s476_s22, %s476_s22 }
  0xd0   : > { %p2468_p10 = scmp.ne.s32.totalorder %s476_s22, %s2467_s30  ;;  %p2476_p7 = scmp.lt.s32.totalorder %s2467_s30, %s2467_s30 }
  0xd2   : > { %p2470_p2 = pnand %p2468_p10, %p2737_p0  ;;  %p2477_p8 = por %p2476_p7, %p2475_p4 }
  0xd4   : > { %p2471_p3 = pneg %p2470_p2 }
  0xd6   : > { %p2478_p11 = pnand %p2477_p8, %p2471_p3 }
  0xd8   : > { %2481 = shalt.err (!%p2478_p11)
}
  0xd9   : > { %2146 = dma.hbm_to_vmem [thread:$0]  (!%p2721_p12), %s3217_s12, 256, %s476_s22, [#allocation16], %s2569_s18, %s2569_s18, %s2570_s23  }
  0xda   : > { %p3253_p13 = scmp.ne.s32.totalorder %s3248_s25, 0 }
  0xdb   : > { %p3254_p0 = scmp.eq.s32.totalorder (!%p3253_p13), %s2685_s17, 0 }
  0xdc   : > { %521 = sbr.rel (%p3253_p13) target bundleno = 3092 (0xc14), region = 76 }
  0xe3   : > { %2527 = dma.done.wait (%p3254_p0), [#allocation4], 16   ;;  %p3255_p1 = pmov %p3254_p0 }
  0xe4   : > { %p3256_p6 = pmov %p3254_p0 }
  0xe5   : > { %2529 = vsyncadd (%p3255_p1), [#allocation4], 4294967280 }
  0xe6   : > { %2531 = dma.done.wait (%p3256_p6), [#allocation7], 32   ;;  %p3257_p5 = pmov %p3254_p0 }
  0xe7   : > { %p3258_p9 = pmov %p3254_p0 }
  0xe8   : > { %2533 = vsyncadd (%p3257_p5), [#allocation7], 4294967264 }
  0xe9   : > { %2535 = dma.done.wait (%p3258_p9), [#allocation10], 272   ;;  %p3259_p12 = pmov %p3254_p0 }
  0xea   : > { %p3260_p10 = pmov %p3254_p0 }
  0xeb   : > { %2537 = vsyncadd (%p3259_p12), [#allocation10], 4294967024 }
  0xec   : > { %2539 = dma.done.wait (%p3260_p10), [#allocation13], 512   ;;  %p3261_p2 = pmov %p3254_p0 }
  0xed   : > { %p3262_p3 = pmov %p3254_p0 }
  0xee   : > { %2541 = vsyncadd (%p3261_p2), [#allocation13], 4294966784 }
  0xef   : > { %2543 = dma.done.wait (%p3262_p3), [#allocation16], 256   ;;  %p3263_p4 = pmov %p3254_p0 }
  0xf0   : > { %p605_p7 = scmp.lt.s32.totalorder %s2685_s17, 1  ;;  %vm624_vm0 = vcmask 261120   ;;  %v2222_v7 = vld [vmem:[#allocation11] sm:$0xff]   ;;  %v2223_v8 = vld [vmem:[%s3214_s9] sm:$0xff]   ;;  %v2576_v9 = vmov 0.0   ;;  %v2224_v10 = vld [vmem:[#allocation11 + $0x8] sm:$0xff]   ;;  %v827_v42 = vlaneseq }
  0xf1   : > { %2545 = vsyncadd (%p3263_p4), [#allocation16], 4294967040  ;;  %1988 = vmatprep.subr.bf16.mxu0 %v2576_v9  ;;  %1996 = vmatprep.subr.bf16.mxu1 %v2576_v9  ;;  %v2225_v11 = vld [vmem:[%s3214_s9 + $0x8] sm:$0xff]   ;;  %vm2577_vm1 = vmmov 0   ;;  %v1909_v16 = vld [vmem:[#allocation3] ss:$0 sm:$0xff] }
  0xf2   : > { %s2922_s25 = scalar_select %p605_p7, %s2685_s17, 1  ;;  %1989 = vmatpush3.bf16.msra.mxu0 %v2222_v7  ;;  %1997 = vmatpush3.bf16.msra.mxu1 %v2223_v8  ;;  %v1910_v18 = vld [vmem:[#allocation6] ss:$0 sm:$0xff]  ;;  %v2226_v21 = vld [vmem:[#allocation12] sm:$0xff]   ;;  %vm936_vm2 = vcmask 1043456   ;;  %v828_v44 = vand.u32 127, %v827_v42 }
  0xf3   : > { %1990 = vmatprep.subr.bf16.mxu0 %v2576_v9  ;;  %1998 = vmatprep.subr.bf16.mxu1 %v2576_v9  ;;  %v2227_v23 = vld [vmem:[#allocation12 + $0x8] sm:$0xff]   ;;  %s2578_s19 = smov 112   ;;  %s2579_s5 = smov 120   ;;  %vm837_vm4 = vcmask 1047616   ;;  %vm875_vm5 = vcmask 64512   ;;  %vm982_vm6 = vcmask 60416  }
  0xf4   : > { %s2925_s20 = sshll.u32 %s2922_s25, 3  ;;  %1992 = vmatprep.mubr.msk.bf16.mxu0 %vm2577_vm1, %v2576_v9  ;;  %2000 = vmatprep.mubr.msk.bf16.mxu1 %vm2577_vm1, %v2576_v9  ;;  %s2580_s13 = smov 104   ;;  %vm829_vm3 = vcmp.lt.s32.totalorder %v828_v44, 4  ;;  %vm1144_vm7 = vcmask 126016   ;;  %vm1302_vm8 = vcmask 191616   ;;  %vm1460_vm9 = vcmask 257216  }
  0xf5   : > { %s608_s23 = scalar_lea.vmem %s3205_s0, %s2925_s20  ;;  %s2581_s24 = smov 8   ;;  %vm1654_vm10 = vcmask 523264  }
  0xf6   : > { %v2931_v0 = vld [vmem:[%s608_s23] sm:$0xff]  ;;  %1991 = vmatpush3.bf16.msra.mxu0 %v2224_v10  ;;  %1999 = vmatpush3.bf16.msra.mxu1 %v2225_v11  ;;  %s619_s29 = scalar_lea.vmem %s3208_s3, %s2925_s20  ;;  %s2582_s30 = smov 4  }
  0xf7   : > { %v625_v1 = vsel %vm624_vm0, %v2931_v0, 0.0  ;;  %2004 = vmatprep.subr.bf16.mxu0 %v2576_v9  ;;  %2012 = vmatprep.subr.bf16.mxu1 %v2576_v9  ;;  %v830_v45 = vld [vmem:[%s619_s29] sm:$0xff]  ;;  %s615_s28 = scalar_lea.vmem %s3207_s2, %s2925_s20  ;;  %s2583_s18 = smov 16  }
  0xf8   : > { %626 = vadd.xlane.f32.xlu0 %v625_v1  ;;  %v831_v47 = vsub.f32 0.0, %v830_v45  ;;  %s2584_s20 = smov 12   ;;  %s2585_s23 = smov 24  }
  0xf9   : > { %s2586_s7 = smov 20   ;;  %s2587_s26 = smov 124  }
  0xfa   : > { %v834_v48 = vsel %vm829_vm3, %v831_v47, %v830_v45  ;;  %s611_s16 = scalar_lea.vmem %s3206_s1, %s2922_s25  ;;  %s3265_s14 = sld [smem:[#allocation25_spill]] }
 0x185   : > { %v627_v2 = vpop.xlane.xlu0 %626 }
 0x186   : > { %v629_v3 = vmul.f32 0.03125, %v627_v2  ;;  %v3029_v2 = vld [vmem:[%s615_s28] sm:$0xff]  ;;  %s602_s28 = sand.u32 1, %s3265_s14  }
 0x188   : > { %v630_v4 = vsub.f32 %v2931_v0, %v629_v3 }
 0x18a   : > { %v631_v5 = vmul.f32 %v630_v4, %v630_v4 }
 0x18c   : > { %v632_v6 = vsel %vm624_vm0, %v631_v5, 0.0 }
 0x18d   : > { %633 = vadd.xlane.f32.xlu0 %v632_v6 }
 0x21a   : > { %v634_v12 = vpop.xlane.xlu0 %633 }
 0x21b   : > { %v635_v13 = vmul.f32 0.03125, %v634_v12 }
 0x21d   : > { %v636_v14 = vadd.f32 1e-05, %v635_v13 }
 0x21f   : > { %2236 = vrsqrt.f32 %v636_v14 }
 0x229   : > { %v2237_v15 = vpop.eup %2236 }
 0x22a   : > { %v638_v17 = vmul.f32 %v2237_v15, %v630_v4 }
 0x22c   : > { %v645_v19 = vmul.f32 %v1909_v16, %v638_v17 }
 0x22e   : > { %v652_v20 = vadd.f32 %v1910_v18, %v645_v19 }
 0x230   : > { %v653_v22 = vpack.c.bf16 %v652_v20, %v652_v20 }
 0x232   : > { %1993 = vmatmul.mubr.msk.bf16.vlgmr.msra.gmra.mrb[0].mxu0 %vm624_vm0, %v653_v22  ;;  %2001 = vmatmul.mubr.msk.bf16.vlgmr.msra.gmra.mrb[0].mxu1 %vm624_vm0, %v653_v22 }
 0x233   : > { %2005 = vmatpush3.bf16.msra.mxu0 %v2226_v21  ;;  %2008 = vmatprep.mubr.msk.bf16.mxu0 %vm2577_vm1, %v2576_v9 }
 0x234   : > { %2006 = vmatprep.subr.bf16.mxu0 %v2576_v9  ;;  %2014 = vmatprep.mubr.msk.bf16.mxu1 %vm2577_vm1, %v2576_v9 }
 0x237   : > { %2007 = vmatpush3.bf16.msra.mxu0 %v2227_v23 }
 0x238   : > { %2018 = vmatprep.subr.bf16.mxu0 %v2576_v9 }
 0x23a   : > { %2009 = vmatmul.mubr.msk.bf16.vlgmr.msra.gmra.mrb[4].mxu0 %vm624_vm0, %v653_v22 }
 0x23b   : > { %2020 = vmatprep.mubr.msk.bf16.mxu0 %vm2577_vm1, %v2576_v9 }
 0x305   : > { %v2964_v24 = vpop.f32.mrb[0].mxu0  ;;  %v2966_v25 = vpop.f32.mrb[0].mxu1 }
 0x306   : > { %1167 = vrot.lane.b32.xlu0 %v2966_v25, %s2578_s19  ;;  %1008 = vrot.lane.b32.xlu1 %v2966_v25, %s2579_s5  ;;  %v1994_v26 = vpop.f32.mrb[1].mxu0  ;;  %v2002_v27 = vpop.f32.mrb[1].mxu1 }
 0x307   : > { %v710_v28 = vpop.f32.mrb[2].mxu0  ;;  %v766_v29 = vpop.f32.mrb[2].mxu1 }
 0x308   : > { %v1995_v30 = vpop.f32.mrb[3].mxu0  ;;  %v2003_v31 = vpop.f32.mrb[3].mxu1 }
 0x30a   : > { %990 = vrot.lane.b32.xlu1 %v2964_v24, %s2579_s5 }
 0x30d   : > { %v819_v32 = vpop.f32.mrb[4].mxu0 }
 0x30e   : > { %v2974_v33 = vpack.c.bf16 %v819_v32, %v819_v32  ;;  %1150 = vrot.lane.b32.xlu1 %v2964_v24, %s2578_s19  ;;  %v2010_v34 = vpop.f32.mrb[5].mxu0 }
 0x30f   : > { %v822_v35 = vpop.f32.mrb[6].mxu0 }
 0x310   : > { %v2011_v36 = vpop.f32.mrb[7].mxu0  ;;  %v938_v37 = vsel %vm936_vm2, %v2974_v33, 0 }
 0x311   : > { %2019 = vmatpush3.bf16.msra.mxu0 %v938_v37 }
 0x312   : > { %1325 = vrot.lane.b32.xlu1 %v2966_v25, %s2580_s13  ;;  %2030 = vmatprep.subr.bf16.mxu0 %v2576_v9 }
 0x316   : > { %1308 = vrot.lane.b32.xlu1 %v2964_v24, %s2580_s13 }
 0x378   : > { %v1009_v38 = vpop.permute.xlu1 %1008  ;;  %v1168_v40 = vpop.permute.xlu0 %1167 }
 0x379   : > { %1011 = vrot.lane.b32.xlu1 %v1009_v38, %s2581_s24 }
 0x37c   : > { %v991_v39 = vpop.permute.xlu1 %990 }
 0x37d   : > { %993 = vrot.lane.b32.xlu1 %v991_v39, %s2581_s24 }
 0x380   : > { %v1151_v41 = vpop.permute.xlu1 %1150 }
 0x381   : > { %1170 = vrot.lane.b32.xlu1 %v1168_v40, %s2581_s24  ;;  %1153 = vrot.lane.b32.xlu0 %v1151_v41, %s2581_s24 }
 0x384   : > { %v2989_v43 = vpop.permute.xlu1 %1325 }
 0x385   : > { %1328 = vrot.lane.b32.xlu1 %v2989_v43, %s2581_s24 }
 0x388   : > { %v2997_v46 = vpop.permute.xlu1 %1308 }
 0x389   : > { %856 = vrot.lane.b32.xlu1 %v2966_v25, %s2581_s24  ;;  %1311 = vrot.lane.b32.xlu0 %v2997_v46, %s2581_s24 }
 0x38d   : > { %838 = vrot.lane.b32.xlu0 %v2964_v24, %s2581_s24 }
 0x391   : > { %845 = vrot.lane.b32.xlu0 %v834_v48, %s2582_s30 }
 0x3eb   : > { %v1012_v49 = vpop.permute.xlu1 %1011 }
 0x3ec   : > { %v1013_v50 = vsel %vm837_vm4, %v1012_v49, %v1009_v38 }
 0x3ed   : > { %1014 = vrot.lane.b32.xlu1 %v1013_v50, %s2581_s24 }
 0x3ef   : > { %v994_v51 = vpop.permute.xlu1 %993 }
 0x3f0   : > { %v995_v52 = vsel %vm837_vm4, %v994_v51, %v991_v39 }
 0x3f1   : > { %996 = vrot.lane.b32.xlu1 %v995_v52, %s2581_s24 }
 0x3f3   : > { %v1154_v53 = vpop.permute.xlu0 %1153  ;;  %v1171_v54 = vpop.permute.xlu1 %1170 }
 0x3f4   : > { %v1155_v55 = vsel %vm837_vm4, %v1154_v53, %v1151_v41  ;;  %v1172_v56 = vsel %vm837_vm4, %v1171_v54, %v1168_v40 }
 0x3f5   : > { %1156 = vrot.lane.b32.xlu1 %v1155_v55, %s2581_s24  ;;  %1173 = vrot.lane.b32.xlu0 %v1172_v56, %s2581_s24  ;;  %v855_v56 = vmul.f32 %v3029_v2, %v2966_v25 }
 0x3f7   : > { %v1329_v57 = vpop.permute.xlu1 %1328 }
 0x3f8   : > { %v1330_v58 = vsel %vm837_vm4, %v1329_v57, %v2989_v43 }
 0x3f9   : > { %1331 = vrot.lane.b32.xlu0 %v1330_v58, %s2581_s24 }
 0x3fb   : > { %v1312_v59 = vpop.permute.xlu0 %1311  ;;  %v857_v60 = vpop.permute.xlu1 %856 }
 0x3fc   : > { %v1313_v61 = vsel %vm837_vm4, %v1312_v59, %v2997_v46  ;;  %v858_v62 = vsel %vm837_vm4, %v857_v60, %v2966_v25 }
 0x3fd   : > { %1314 = vrot.lane.b32.xlu1 %v1313_v61, %s2581_s24  ;;  %859 = vrot.lane.b32.xlu0 %v858_v62, %s2581_s24 }
 0x3ff   : > { %v839_v63 = vpop.permute.xlu0 %838 }
 0x400   : > { %v840_v1 = vsel %vm837_vm4, %v839_v63, %v2964_v24 }
 0x401   : > { %841 = vrot.lane.b32.xlu1 %v840_v1, %s2581_s24  ;;  %985 = vrot.lane.b32.xlu0 %v3029_v2, %s2581_s24 }
 0x403   : > { %v846_v3 = vpop.permute.xlu0 %845 }
 0x405   : > { %1146 = vrot.lane.b32.xlu0 %v3029_v2, %s2583_s18 }
 0x45f   : > { %v1015_v4 = vpop.permute.xlu1 %1014 }
 0x460   : > { %v1016_v5 = vsel %vm837_vm4, %v1015_v4, %v1009_v38 }
 0x461   : > { %v1017_v6 = vmul.f32 %v1016_v5, %v846_v3 }
 0x463   : > { %1019 = vrot.lane.b32.xlu1 %v1017_v6, %s2582_s30  ;;  %v997_v7 = vpop.permute.xlu1 %996 }
 0x464   : > { %v998_v8 = vsel %vm837_vm4, %v997_v7, %v991_v39 }
 0x465   : > { %v999_v10 = vmul.f32 %v998_v8, %v846_v3 }
 0x467   : > { %v1174_v11 = vpop.permute.xlu0 %1173  ;;  %1001 = vrot.lane.b32.xlu1 %v999_v10, %s2582_s30  ;;  %v1157_v12 = vpop.permute.xlu1 %1156 }
 0x468   : > { %v1175_v13 = vsel %vm837_vm4, %v1174_v11, %v1168_v40  ;;  %v1158_v15 = vsel %vm837_vm4, %v1157_v12, %v1151_v41 }
 0x469   : > { %v1176_v14 = vmul.f32 %v1175_v13, %v846_v3  ;;  %v1159_v18 = vmul.f32 %v1158_v15, %v846_v3  ;;  %v1920_v13 = vld [vmem:[%s611_s16] ss:$0 sm:$0xff]  ;;  %s3267_s16 = sld [smem:[#allocation35_spill]] }
 0x46b   : > { %v1332_v16 = vpop.permute.xlu0 %1331  ;;  %1178 = vrot.lane.b32.xlu0 %v1176_v14, %s2584_s20  ;;  %1304 = vrot.lane.b32.xlu1 %v3029_v2, %s2585_s23 }
 0x46c   : > { %v1333_v17 = vsel %vm837_vm4, %v1332_v16, %v2989_v43 }
 0x46d   : > { %v1334_v19 = vmul.f32 %v1333_v17, %v846_v3 }
 0x46f   : > { %v860_v20 = vpop.permute.xlu0 %859  ;;  %1336 = vrot.lane.b32.xlu1 %v1334_v19, %s2586_s7  ;;  %1161 = vrot.lane.b32.xlu0 %v1159_v18, %s2584_s20  ;;  %v1315_v21 = vpop.permute.xlu1 %1314  ;;  %s1905_s20 = sshll.u32 %s602_s28, 3  ;;  %s3268_s25 = smov %s3267_s16 }
 0x470   : > { %v861_v22 = vsel %vm837_vm4, %v860_v20, %v2966_v25  ;;  %v1316_v23 = vsel %vm837_vm4, %v1315_v21, %v2997_v46 }
 0x471   : > { %v862_v26 = vmul.f32 %v861_v22, %v846_v3  ;;  %v1317_v27 = vmul.f32 %v1316_v23, %v846_v3 }
 0x473   : > { %864 = vrot.lane.b32.xlu1 %v862_v26, %s2587_s26  ;;  %1319 = vrot.lane.b32.xlu0 %v1317_v27, %s2586_s7  ;;  %v842_v28 = vpop.permute.xlu1 %841  ;;  %v986_v31 = vpop.permute.xlu0 %985  ;;  %s604_s7 = scalar_lea.vmem [#allocation17], %s1905_s20 }
 0x474   : > { %v843_v29 = vsel %vm837_vm4, %v842_v28, %v2964_v24  ;;  %v1006_v32 = vmul.f32 %v986_v31, %v2966_v25  ;;  %v988_v36 = vmul.f32 %v986_v31, %v2964_v24 }
 0x475   : > { %v848_v30 = vmul.f32 %v846_v3, %v843_v29  ;;  %v836_v3 = vmul.f32 %v3029_v2, %v2964_v24 }
 0x477   : > { %850 = vrot.lane.b32.xlu0 %v848_v30, %s2587_s26  ;;  %v1147_v38 = vpop.permute.xlu0 %1146  ;;  %s1714_s26 = sshll.u32 %s604_s7, 4  ;;  %s3164_s26 = int_to_ptr.vmem [resolvable:$true] %s1714_s26 }
 0x478   : > { %v1166_v41 = vmul.f32 %v1147_v38, %v2966_v25  ;;  %v1149_v46 = vmul.f32 %v1147_v38, %v2964_v24 }
 0x4d5   : > { %v1020_v34 = vpop.permute.xlu1 %1019 }
 0x4d6   : > { %v1022_v35 = vadd.f32 %v1020_v34, %v1006_v32 }
 0x4d8   : > { %v1023_v37 = vpack.c.bf16 %v1022_v35, %v1022_v35 }
 0x4d9   : > { %v1002_v39 = vpop.permute.xlu1 %1001 }
 0x4da   : > { %v1004_v40 = vadd.f32 %v1002_v39, %v988_v36  ;;  %1028 = vrot.lane.b32.xlu1 %v1023_v37, %s2579_s5 }
 0x4dc   : > { %v1005_v42 = vpack.c.bf16 %v1004_v40, %v1004_v40 }
 0x4dd   : > { %v1179_v43 = vpop.permute.xlu0 %1178  ;;  %v1305_v44 = vpop.permute.xlu1 %1304 }
 0x4de   : > { %v1181_v45 = vadd.f32 %v1179_v43, %v1166_v41  ;;  %1025 = vrot.lane.b32.xlu0 %v1005_v42, %s2579_s5  ;;  %v1324_v48 = vmul.f32 %v1305_v44, %v2966_v25  ;;  %v1307_v53 = vmul.f32 %v1305_v44, %v2964_v24 }
 0x4e0   : > { %v1182_v47 = vpack.c.bf16 %v1181_v45, %v1181_v45 }
 0x4e1   : > { %v1162_v49 = vpop.permute.xlu0 %1161  ;;  %v1337_v50 = vpop.permute.xlu1 %1336 }
 0x4e2   : > { %v1164_v51 = vadd.f32 %v1162_v49, %v1149_v46  ;;  %v1339_v52 = vadd.f32 %v1337_v50, %v1324_v48  ;;  %1187 = vrot.lane.b32.xlu1 %v1182_v47, %s2578_s19 }
 0x4e4   : > { %v1165_v54 = vpack.c.bf16 %v1164_v51, %v1164_v51  ;;  %v1340_v55 = vpack.c.bf16 %v1339_v52, %v1339_v52 }
 0x4e5   : > { %v1320_v57 = vpop.permute.xlu0 %1319  ;;  %v865_v58 = vpop.permute.xlu1 %864 }
 0x4e6   : > { %v1322_v59 = vadd.f32 %v1320_v57, %v1307_v53  ;;  %v867_v60 = vadd.f32 %v865_v58, %v855_v56  ;;  %1184 = vrot.lane.b32.xlu0 %v1165_v54, %s2578_s19  ;;  %1345 = vrot.lane.b32.xlu1 %v1340_v55, %s2580_s13 }
 0x4e8   : > { %v1323_v61 = vpack.c.bf16 %v1322_v59, %v1322_v59  ;;  %v868_v62 = vpack.c.bf16 %v867_v60, %v867_v60 }
 0x4e9   : > { %v851_v63 = vpop.permute.xlu0 %850 }
 0x4ea   : > { %v880_v1 = vsel %vm875_vm5, %v868_v62, 0  ;;  %1342 = vrot.lane.b32.xlu0 %v1323_v61, %s2580_s13  ;;  %v853_v25 = vadd.f32 %v851_v63, %v836_v3 }
 0x4eb   : > { %2013 = vmatpush3.bf16.xpose.msra.mxu1 %v880_v1 }
 0x4ec   : > { %2024 = vmatprep.subr.bf16.mxu1 %v2576_v9  ;;  %v854_v4 = vpack.c.bf16 %v853_v25, %v853_v25 }
 0x4f2   : > { %2015 = vmatmul.mubr.msk.bf16.vlgmr.msra.gmra.mrb[4].mxu1 %vm875_vm5, %v854_v4 }
 0x4f3   : > { %2026 = vmatprep.mubr.msk.bf16.mxu1 %vm2577_vm1, %v2576_v9 }
 0x54c   : > { %v1029_v5 = vpop.permute.xlu1 %1028 }
 0x54d   : > { %v1034_v6 = vsel %vm875_vm5, %v1029_v5, 0 }
 0x54e   : > { %2025 = vmatpush3.bf16.xpose.msra.mxu1 %v1034_v6 }
 0x54f   : > { %2036 = vmatprep.subr.bf16.mxu1 %v2576_v9 }
 0x550   : > { %v1026_v7 = vpop.permute.xlu0 %1025 }
 0x554   : > { %v1188_v24 = vpop.permute.xlu1 %1187 }
 0x555   : > { %v1193_v2 = vsel %vm875_vm5, %v1188_v24, 0  ;;  %2027 = vmatmul.mubr.msk.bf16.vlgmr.msra.gmra.mrb[8].mxu1 %vm875_vm5, %v1026_v7 }
 0x556   : > { %2037 = vmatpush3.bf16.xpose.msra.mxu1 %v1193_v2  ;;  %2038 = vmatprep.mubr.msk.bf16.mxu1 %vm2577_vm1, %v2576_v9 }
 0x557   : > { %2048 = vmatprep.subr.bf16.mxu1 %v2576_v9 }
 0x558   : > { %v1346_v8 = vpop.permute.xlu1 %1345  ;;  %v1185_v10 = vpop.permute.xlu0 %1184 }
 0x559   : > { %v1351_v11 = vsel %vm875_vm5, %v1346_v8, 0 }
 0x55c   : > { %v1343_v12 = vpop.permute.xlu0 %1342 }
 0x55d   : > { %2039 = vmatmul.mubr.msk.bf16.vlgmr.msra.gmra.mrb[12].mxu1 %vm875_vm5, %v1185_v10 }
 0x55e   : > { %2049 = vmatpush3.bf16.xpose.msra.mxu1 %v1351_v11  ;;  %2050 = vmatprep.mubr.msk.bf16.mxu1 %vm2577_vm1, %v2576_v9 }
 0x55f   : > { %2060 = vmatprep.subr.bf16.mxu1 %v2576_v9 }
 0x565   : > { %2051 = vmatmul.mubr.msk.bf16.vlgmr.msra.gmra.mrb[16].mxu1 %vm875_vm5, %v1343_v12 }
 0x566   : > { %2064 = vmatprep.mubr.msk.bf16.mxu1 %vm2577_vm1, %v2576_v9 }
 0x5c5   : > { %v916_v14 = vpop.f32.mrb[4].mxu1 }
 0x5c6   : > { %v917_v15 = vadd.f32 %v1920_v13, %v916_v14  ;;  %v2016_v16 = vpop.f32.mrb[5].mxu1 }
 0x5c7   : > { %v919_v17 = vpop.f32.mrb[6].mxu1 }
 0x5c8   : > { %v2017_v18 = vpop.f32.mrb[7].mxu1  ;;  %v922_v19 = vsel %vm875_vm5, %v917_v15, -inf }
 0x5c9   : > { %923 = vmax.xlane.f32.xlu1 %v922_v19 }
 0x5da   : > { %1246 = vrot.lane.b32.xlu1 %v2974_v33, %s2578_s19 }
 0x628   : > { %v1070_v20 = vpop.f32.mrb[8].mxu1 }
 0x629   : > { %v1071_v21 = vadd.f32 %v1920_v13, %v1070_v20  ;;  %v2028_v22 = vpop.f32.mrb[9].mxu1 }
 0x62a   : > { %v1073_v23 = vpop.f32.mrb[10].mxu1 }
 0x62b   : > { %v2029_v26 = vpop.f32.mrb[11].mxu1  ;;  %v1076_v27 = vsel %vm875_vm5, %v1071_v21, -inf }
 0x62c   : > { %1077 = vmax.xlane.f32.xlu0 %v1076_v27 }
 0x630   : > { %v1229_v28 = vpop.f32.mrb[12].mxu1 }
 0x631   : > { %v1230_v29 = vadd.f32 %v1920_v13, %v1229_v28  ;;  %v2040_v30 = vpop.f32.mrb[13].mxu1  ;;  %v2228_v28 = vld [vmem:[#allocation14] sm:$0xff]  }
 0x632   : > { %v1232_v31 = vpop.f32.mrb[14].mxu1  ;;  %2061 = vmatpush3.bf16.msra.mxu1 %v2228_v28 }
 0x633   : > { %v2041_v32 = vpop.f32.mrb[15].mxu1  ;;  %v1235_v34 = vsel %vm875_vm5, %v1230_v29, -inf  ;;  %2062 = vmatprep.subr.bf16.mxu1 %v2576_v9 }
 0x634   : > { %1236 = vmax.xlane.f32.xlu0 %v1235_v34  ;;  %v2229_v32 = vld [vmem:[#allocation14 + $0x8] sm:$0xff]  }
 0x636   : > { %2063 = vmatpush3.bf16.msra.mxu1 %v2229_v32 }
 0x637   : > { %2076 = vmatprep.subr.bf16.mxu1 %v2576_v9 }
 0x638   : > { %v1387_v35 = vpop.f32.mrb[16].mxu1 }
 0x639   : > { %v1388_v36 = vadd.f32 %v1920_v13, %v1387_v35  ;;  %v2052_v37 = vpop.f32.mrb[17].mxu1 }
 0x63a   : > { %v1390_v38 = vpop.f32.mrb[18].mxu1 }
 0x63b   : > { %v2053_v39 = vpop.f32.mrb[19].mxu1  ;;  %v1393_v40 = vsel %vm875_vm5, %v1388_v36, -inf }
 0x63c   : > { %1394 = vmax.xlane.f32.xlu1 %v1393_v40 }
 0x64a   : > { %1088 = vrot.lane.b32.xlu0 %v2974_v33, %s2579_s5  ;;  %s3264_s5 = sld [smem:[#allocation34_spill]] }
 0x64d   : > { %1404 = vrot.lane.b32.xlu1 %v2974_v33, %s2580_s13  ;;  %s2482_s13 = scalar_lea.vmem %s3164_s26, 128 }
 0x64e   : > { %p2483_p8 = scmp.ne.s32.totalorder %s3164_s26, %s2482_s13 }
 0x656   : > { %v924_v41 = vpop.xlane.xlu1 %923 }
 0x657   : > { %v925_v42 = vsub.f32 %v917_v15, %v924_v41 }
 0x659   : > { %v926_v43 = vmul.f32 1.442695, %v925_v42 }
 0x65a   : > { %v1247_v52 = vpop.permute.xlu1 %1246 }
 0x65b   : > { %2238 = vpow2.f32 %v926_v43  ;;  %v1252_v59 = vsel %vm936_vm2, %v1247_v52, 0 }
 0x665   : > { %v2239_v44 = vpop.eup %2238 }
 0x666   : > { %v932_v45 = vpack.c.bf16 %v2239_v44, %v2239_v44  ;;  %v928_v6 = vsel %vm875_vm5, %v2239_v44, 0.0 }
 0x668   : > { %2021 = vmatmul.mubr.msk.bf16.vlgmr.msra.gmra.mrb[8].mxu0 %vm875_vm5, %v932_v45 }
 0x669   : > { %2032 = vmatprep.mubr.msk.bf16.mxu0 %vm2577_vm1, %v2576_v9 }
 0x6b9   : > { %v1078_v46 = vpop.xlane.xlu0 %1077 }
 0x6ba   : > { %v1079_v47 = vsub.f32 %v1071_v21, %v1078_v46 }
 0x6bc   : > { %v1080_v48 = vmul.f32 1.442695, %v1079_v47 }
 0x6be   : > { %2240 = vpow2.f32 %v1080_v48 }
 0x6c1   : > { %v1237_v49 = vpop.xlane.xlu0 %1236 }
 0x6c2   : > { %v1238_v50 = vsub.f32 %v1230_v29, %v1237_v49 }
 0x6c4   : > { %v1239_v51 = vmul.f32 1.442695, %v1238_v50 }
 0x6c5   : > { %v1089_v33 = vpop.permute.xlu0 %1088 }
 0x6c6   : > { %2242 = vpow2.f32 %v1239_v51  ;;  %v1094_v53 = vsel %vm936_vm2, %v1089_v33, 0 }
 0x6c7   : > { %2031 = vmatpush3.bf16.msra.mxu0 %v1094_v53 }
 0x6c8   : > { %v2241_v54 = vpop.eup %2240  ;;  %2042 = vmatprep.subr.bf16.mxu0 %v2576_v9 }
 0x6c9   : > { %v1395_v55 = vpop.xlane.xlu1 %1394  ;;  %v1082_v56 = vsel %vm875_vm5, %v2241_v54, 0.0  ;;  %v1086_v57 = vpack.c.bf16 %v2241_v54, %v2241_v54 }
 0x6ca   : > { %v1396_v58 = vsub.f32 %v1388_v36, %v1395_v55  ;;  %1083 = vadd.xlane.f32.xlu0 %v1082_v56 }
 0x6cb   : > { %2033 = vmatmul.mubr.msk.bf16.vlgmr.msra.gmra.mrb[12].mxu0 %vm875_vm5, %v1086_v57  ;;  %v2230_v57 = vld [vmem:[#allocation15] sm:$0xff]  }
 0x6cc   : > { %v1397_v60 = vmul.f32 1.442695, %v1396_v58  ;;  %2043 = vmatpush3.bf16.msra.mxu0 %v1252_v59  ;;  %2044 = vmatprep.mubr.msk.bf16.mxu0 %vm2577_vm1, %v2576_v9  ;;  %v2231_v58 = vld [vmem:[#allocation15 + $0x8] sm:$0xff]  }
 0x6cd   : > { %2054 = vmatprep.subr.bf16.mxu0 %v2576_v9  ;;  %v1405_v62 = vpop.permute.xlu1 %1404 }
 0x6ce   : > { %2244 = vpow2.f32 %v1397_v60  ;;  %v1410_v3 = vsel %vm936_vm2, %v1405_v62, 0  ;;  %v1935_v62 = vld [vmem:[#allocation8] ss:$0 sm:$0xff] }
 0x6d0   : > { %v2243_v61 = vpop.eup %2242 }
 0x6d1   : > { %v1241_v63 = vsel %vm875_vm5, %v2243_v61, 0.0  ;;  %v1245_v1 = vpack.c.bf16 %v2243_v61, %v2243_v61 }
 0x6d2   : > { %1242 = vadd.xlane.f32.xlu1 %v1241_v63 }
 0x6d3   : > { %2045 = vmatmul.mubr.msk.bf16.vlgmr.msra.gmra.mrb[16].mxu0 %vm875_vm5, %v1245_v1  ;;  %v1936_v1 = vld [vmem:[#allocation9] ss:$0 sm:$0xff] }
 0x6d4   : > { %2055 = vmatpush3.bf16.msra.mxu0 %v1410_v3  ;;  %2056 = vmatprep.mubr.msk.bf16.mxu0 %vm2577_vm1, %v2576_v9 }
 0x6d5   : > { %2068 = vmatprep.subr.bf16.mxu0 %v2576_v9 }
 0x6d8   : > { %v2245_v25 = vpop.eup %2244 }
 0x6d9   : > { %v1399_v4 = vsel %vm875_vm5, %v2245_v25, 0.0  ;;  %v1403_v5 = vpack.c.bf16 %v2245_v25, %v2245_v25 }
 0x6da   : > { %1400 = vadd.xlane.f32.xlu0 %v1399_v4 }
 0x6db   : > { %2057 = vmatmul.mubr.msk.bf16.vlgmr.msra.gmra.mrb[20].mxu0 %vm875_vm5, %v1403_v5  ;;  %v2232_v5 = vld [vmem:[%s3264_s5] sm:$0xff]  }
 0x6dc   : > { %2072 = vmatprep.mubr.msk.bf16.mxu0 %vm2577_vm1, %v2576_v9  ;;  %2069 = vmatpush3.bf16.msra.mxu0 %v2230_v57 }
 0x6dd   : > { %2070 = vmatprep.subr.bf16.mxu0 %v2576_v9 }
 0x6de   : > { %929 = vadd.xlane.f32.xlu0 %v928_v6  ;;  %v2233_v6 = vld [vmem:[%s3264_s5 + $0x8] sm:$0xff]  }
 0x6e0   : > { %2071 = vmatpush3.bf16.msra.mxu0 %v2231_v58 }
 0x73b   : > { %v974_v7 = vpop.f32.mrb[8].mxu0 }
 0x73c   : > { %v2022_v24 = vpop.f32.mrb[9].mxu0 }
 0x73d   : > { %v977_v2 = vpop.f32.mrb[10].mxu0  ;;  %v2235_v24 = vld [vmem:[%s3264_s5 + $0x18] sm:$0xff]  }
 0x73e   : > { %v2023_v8 = vpop.f32.mrb[11].mxu0 }
 0x757   : > { %v1084_v10 = vpop.xlane.xlu0 %1083 }
 0x75f   : > { %v1243_v16 = vpop.xlane.xlu1 %1242 }
 0x767   : > { %v1401_v11 = vpop.xlane.xlu0 %1400 }
 0x76b   : > { %v930_v12 = vpop.xlane.xlu0 %929 }
 0x76c   : > { %2246 = vrcp.f32 %v930_v12 }
 0x76d   : > { %2248 = vrcp.f32 %v1084_v10 }
 0x76e   : > { %2250 = vrcp.f32 %v1243_v16 }
 0x76f   : > { %2252 = vrcp.f32 %v1401_v11 }
 0x776   : > { %v2247_v13 = vpop.eup %2246 }
 0x777   : > { %v980_v14 = vmul.f32 %v2247_v13, %v974_v7  ;;  %v2249_v17 = vpop.eup %2248  ;;  %v2234_v7 = vld [vmem:[%s3264_s5 + $0x10] sm:$0xff]  }
 0x778   : > { %v2251_v26 = vpop.eup %2250 }
 0x779   : > { %v981_v15 = vpack.c.bf16 %v980_v14, %v980_v14  ;;  %v2253_v36 = vpop.eup %2252 }
 0x77b   : > { %983 = vst.msk [vmem:[#allocation2] sm:$0xf] %vm982_vm6, %v981_v15 }
 0x79e   : > { %v1130_v18 = vpop.f32.mrb[12].mxu0 }
 0x79f   : > { %v1136_v19 = vmul.f32 %v2249_v17, %v1130_v18  ;;  %v2034_v20 = vpop.f32.mrb[13].mxu0 }
 0x7a0   : > { %v1133_v21 = vpop.f32.mrb[14].mxu0 }
 0x7a1   : > { %v1949_v22 = vpack.c.bf16 %v1136_v19, %v1136_v19  ;;  %v2035_v23 = vpop.f32.mrb[15].mxu0 }
 0x7a3   : > { %1141 = vrot.lane.b32.xlu1 %v1949_v22, %s2581_s24  ;;  %s2588_s24 = smov [#allocation17]  }
 0x7a4   : > { %s2486_s21 = sshll.u32 %s2588_s24, 4  ;;  %s2487_s21 = int_to_ptr.vmem [resolvable:$false] %s2486_s21 }
 0x7a5   : > { %s2488_s29 = scalar_lea.vmem %s2487_s21, 256  ;;  %p2489_p1 = scmp.lt.s32.totalorder %s3164_s26, %s2487_s21 }
 0x7a6   : > { %v1288_v27 = vpop.f32.mrb[16].mxu0  ;;  %p2490_p6 = scmp.lt.s32.totalorder %s2488_s29, %s2482_s13 }
 0x7a7   : > { %v1294_v29 = vmul.f32 %v2251_v26, %v1288_v27  ;;  %v2046_v30 = vpop.f32.mrb[17].mxu0 }
 0x7a8   : > { %v1291_v31 = vpop.f32.mrb[18].mxu0  ;;  %p2491_p5 = por %p2490_p6, %p2489_p1 }
 0x7a9   : > { %v1950_v34 = vpack.c.bf16 %v1294_v29, %v1294_v29  ;;  %v2047_v35 = vpop.f32.mrb[19].mxu0 }
 0x7ab   : > { %1299 = vrot.lane.b32.xlu0 %v1950_v34, %s2583_s18  ;;  %s3266_s18 = sld [smem:[#allocation30_spill]] }
 0x7ae   : > { %v1446_v37 = vpop.f32.mrb[20].mxu0 }
 0x7af   : > { %v1452_v38 = vmul.f32 %v2253_v36, %v1446_v37  ;;  %v2058_v39 = vpop.f32.mrb[21].mxu0 }
 0x7b0   : > { %v1449_v40 = vpop.f32.mrb[22].mxu0 }
 0x7b1   : > { %v1951_v41 = vpack.c.bf16 %v1452_v38, %v1452_v38  ;;  %v2059_v42 = vpop.f32.mrb[23].mxu0  ;;  %p3269_p11 = scmp.ne.s32.totalorder %s3266_s18, 0 }
 0x7b3   : > { %1457 = vrot.lane.b32.xlu1 %v1951_v41, %s2585_s23  ;;  %s1946_s23 = sshll.u32 %s2685_s17, 7  ;;  %s1701_s17 = scalar_lea.sflag [#allocation5], %s602_s28 }
 0x7b4   : > { %s3162_s19 = scalar_lea.hbm %s3267_s16, %s1946_s23  ;;  %p2484_p13 = pnand %p2483_p8, %p3269_p11 }
 0x7b6   : > { %p2485_p0 = pneg %p2484_p13 }
 0x7b8   : > { %p2492_p9 = pnand %p2491_p5, %p2485_p0 }
 0x815   : > { %v1142_v43 = vpop.permute.xlu1 %1141 }
 0x816   : > { %1145 = vst.msk [vmem:[#allocation2] sm:$0xf] %vm1144_vm7, %v1142_v43 }
 0x81d   : > { %v1300_v44 = vpop.permute.xlu0 %1299 }
 0x81e   : > { %1303 = vst.msk [vmem:[#allocation2] sm:$0xf] %vm1302_vm8, %v1300_v44 }
 0x825   : > { %v1458_v45 = vpop.permute.xlu1 %1457 }
 0x826   : > { %1461 = vst.msk [vmem:[#allocation2] sm:$0xf] %vm1460_vm9, %v1458_v45 }
 0x82d   : > { %v1462_v46 = vld [vmem:[#allocation2] sm:$0xf] }
 0x82e   : > { %2065 = vmatmul.mubr.msk.bf16.vlgmr.msra.gmra.mrb[20].mxu1 %vm624_vm0, %v1462_v46 }
 0x82f   : > { %2084 = vmatprep.mubr.msk.bf16.mxu1 %vm2577_vm1, %v2576_v9  ;;  %2077 = vmatpush3.bf16.msra.mxu1 %v2232_v5 }
 0x830   : > { %2078 = vmatprep.subr.bf16.mxu1 %v2576_v9 }
 0x833   : > { %2079 = vmatpush3.bf16.msra.mxu1 %v2233_v6 }
 0x834   : > { %2080 = vmatprep.subr.bf16.mxu1 %v2576_v9 }
 0x837   : > { %2081 = vmatpush3.bf16.msra.mxu1 %v2234_v7 }
 0x838   : > { %2082 = vmatprep.subr.bf16.mxu1 %v2576_v9 }
 0x83b   : > { %2083 = vmatpush3.bf16.msra.mxu1 %v2235_v24 }
 0x901   : > { %v1516_v47 = vpop.f32.mrb[20].mxu1 }
 0x902   : > { %v3133_v48 = vadd.f32 %v1516_v47, %v2931_v0  ;;  %v2066_v49 = vpop.f32.mrb[21].mxu1 }
 0x903   : > { %v1519_v50 = vpop.f32.mrb[22].mxu1 }
 0x904   : > { %v2067_v51 = vpop.f32.mrb[23].mxu1  ;;  %v1525_v52 = vsel %vm624_vm0, %v3133_v48, 0.0 }
 0x905   : > { %1526 = vadd.xlane.f32.xlu1 %v1525_v52 }
 0x992   : > { %v1527_v33 = vpop.xlane.xlu1 %1526 }
 0x993   : > { %v1528_v53 = vmul.f32 0.03125, %v1527_v33 }
 0x995   : > { %v1529_v54 = vsub.f32 %v3133_v48, %v1528_v53 }
 0x997   : > { %v1530_v55 = vmul.f32 %v1529_v54, %v1529_v54 }
 0x999   : > { %v1531_v56 = vsel %vm624_vm0, %v1530_v55, 0.0 }
 0x99a   : > { %1532 = vadd.xlane.f32.xlu0 %v1531_v56 }
 0xa27   : > { %v1533_v0 = vpop.xlane.xlu0 %1532 }
 0xa28   : > { %v1534_v59 = vmul.f32 0.03125, %v1533_v0 }
 0xa2a   : > { %v1535_v60 = vadd.f32 1e-05, %v1534_v59 }
 0xa2c   : > { %2254 = vrsqrt.f32 %v1535_v60 }
 0xa36   : > { %v2255_v61 = vpop.eup %2254 }
 0xa37   : > { %v1537_v63 = vmul.f32 %v2255_v61, %v1529_v54 }
 0xa39   : > { %v1544_v3 = vmul.f32 %v1935_v62, %v1537_v63 }
 0xa3b   : > { %v1551_v25 = vadd.f32 %v1936_v1, %v1544_v3 }
 0xa3d   : > { %v1552_v4 = vpack.c.bf16 %v1551_v25, %v1551_v25 }
 0xa3f   : > { %2073 = vmatmul.mubr.msk.bf16.vlgmr.msra.gmra.mrb[24].mxu0 %vm624_vm0, %v1552_v4 }
 0xb12   : > { %v1606_v2 = vpop.f32.mrb[24].mxu0 }
 0xb13   : > { %v1612_v8 = vmul.f32 %v1606_v2, %v1606_v2  ;;  %v2074_v10 = vpop.f32.mrb[25].mxu0 }
 0xb14   : > { %v1609_v11 = vpop.f32.mrb[26].mxu0 }
 0xb15   : > { %v1613_v12 = vmul.f32 %v1612_v8, %v1606_v2  ;;  %v2075_v13 = vpop.f32.mrb[27].mxu0 }
 0xb17   : > { %v1614_v14 = vmul.f32 0.044715, %v1613_v12 }
 0xb19   : > { %v1615_v15 = vadd.f32 %v1614_v14, %v1606_v2 }
 0xb1b   : > { %v1616_v16 = vmul.f32 0.7978846, %v1615_v15 }
 0xb1d   : > { %2256 = vtanh.f32 %v1616_v16 }
 0xb27   : > { %v2257_v17 = vpop.eup %2256 }
 0xb28   : > { %v1618_v18 = vadd.f32 1.0, %v2257_v17 }
 0xb2a   : > { %v1619_v9 = vmul.f32 0.5, %v1618_v18 }
 0xb2c   : > { %v1620_v19 = vmul.f32 %v1619_v9, %v1606_v2 }
 0xb2e   : > { %v1621_v20 = vpack.c.bf16 %v1620_v19, %v1620_v19 }
 0xb30   : > { %2085 = vmatmul.mubr.msk.bf16.vlgmr.msra.gmra.mrb[24].mxu1 %vm1654_vm10, %v1621_v20 }
 0xc03   : > { %v1692_v21 = vpop.f32.mrb[24].mxu1 }
 0xc04   : > { %v1698_v22 = vadd.f32 %v1692_v21, %v3133_v48  ;;  %v2086_v23 = vpop.f32.mrb[25].mxu1 }
 0xc05   : > { %v1695_v26 = vpop.f32.mrb[26].mxu1 }
 0xc06   : > { %v2087_v27 = vpop.f32.mrb[27].mxu1  ;;  %1699 = vst.msk [vmem:[%s604_s7] sm:$0xff] %vm624_vm0, %v1698_v22 }
 0xc07   : > { %2495 = shalt.err (!%p2492_p9)
}
 0xc08   : > { %s2496_s30 = scalar_lea.hbm %s3162_s19, 128  ;;  %s2500_s28 = scalar_lea.hbm %s3268_s25, 256 }
 0xc09   : > { %p2497_p12 = scmp.ne.s32.totalorder %s3162_s19, %s2496_s30  ;;  %p2501_p3 = scmp.lt.u32.totalorder %s3162_s19, %s3268_s25 }
 0xc0a   : > { %p2502_p4 = scmp.lt.u32.totalorder %s2500_s28, %s2496_s30  ;;  %p2504_p8 = scmp.lt.u32.totalorder %s2496_s30, %s3162_s19 }
 0xc0b   : > { %p2498_p10 = pnand %p2497_p12, %p3269_p11 }
 0xc0c   : > { %p2503_p7 = por %p2502_p4, %p2501_p3 }
 0xc0d   : > { %p2499_p2 = pneg %p2498_p10 }
 0xc0e   : > { %p2505_p13 = por %p2504_p8, %p2503_p7 }
 0xc10   : > { %p2506_p0 = pnand %p2505_p13, %p2499_p2 }
 0xc12   : > { %2509 = shalt.err (!%p2506_p0)
}
 0xc13   : > { %2120 = dma.vmem_to_hbm [thread:$0]  (%p3269_p11), %s3164_s26, 128, %s3162_s19, %s1701_s17  }
 0xc14 PF: > { %s3270_s7 = sld [smem:[#allocation27_spill]]  ;;  %s3271_s15 = sld [smem:[#allocation24_spill]] }
 0xc15   : > { %s3272_s22 = sld [smem:[#allocation31_spill]] }
 0xc1a   : > { %p2167_p1 = scmp.ge.s32.totalorder %s3270_s7, 2  ;;  %s1726_s16 = sand.u32 1, %s3271_s15  }
 0xc1b   : > { %p3273_p6 = scmp.ne.s32.totalorder %s3272_s22, 0  ;;  %s1727_s13 = scalar_lea.sflag [#allocation5], %s1726_s16 }
 0xc1d   : > { %p2148_p5 = pnand %p2167_p1, %p3273_p6 }
 0xc1f   : > { %2547 = dma.done.wait (!%p2148_p5), %s1727_s13, 128  }
 0xc20   : > { %2549 = vsyncadd (!%p2148_p5), %s1727_s13, 4294967168  ;;  %s3274_s16 = sld [smem:[#allocation28_spill]]  ;;  %s3275_s29 = sld [smem:[#allocation25_spill]] }
 0xc21   : > { %s3276_s30 = sld [smem:[#allocation26_spill]]  ;;  %s3277_s15 = sld [smem:[#allocation29_spill]] }
 0xc26   : > { %p29_p9 = scmp.ge.s32.totalorder %s3274_s16, 4  }
 0xc28   :  { %31 = sbr.rel (!%p29_p9) target bundleno = 13 (0xd), region = 153 }
 0xc2f   :  { %1732 = vsyncpa [#allocation4], 1 }
 0xc30   :  { %1734 = vsyncpa [#allocation4 + $0x1], 1 }
 0xc31   :  { %1735 = vsyncpa [#allocation7], 1 }
 0xc32   :  { %1736 = vsyncpa [#allocation10], 1 }
 0xc33   :  { %1737 = vsyncpa [#allocation13], 1 }
 0xc34   :  { %1738 = vsyncpa [#allocation16], 1 }
 0xc35   :  { %1739 = vsyncpa [#allocation5], 1 }
 0xc36   :  { %1741 = vsyncpa [#allocation5 + $0x1], 1 }

// kernel: tpu_custom_call.1
= control target key start
LH: loop header
LB: loop body
LE: loop exit
PB: predicated region body
PF: predicated region fallthrough
CT: control target
= control target key end

     0   :  { %s3205_s0 = inlined_call_operand.vmem [shape: f32[2,8,32], index: 0, kind: input, shape index: {}]   ;;  %s3206_s1 = inlined_call_operand.vmem [shape: f32[2,1,8], index: 1, kind: input, shape index: {}]   ;;  %s3207_s2 = inlined_call_operand.vmem [shape: f32[2,8,8], index: 2, kind: input, shape index: {}]   ;;  %s3208_s3 = inlined_call_operand.vmem [shape: f32[2,8,8], index: 3, kind: input, shape index: {}]   ;;  %s3209_s4 = inlined_call_operand.hbm [shape: f32[1,32], index: 4, kind: input, shape index: {}]   ;;  %s3210_s5 = inlined_call_operand.hbm [shape: f32[1,32], index: 5, kind: input, shape index: {}]   ;;  %s3211_s6 = inlined_call_operand.hbm [shape: f32[1,32], index: 6, kind: input, shape index: {}]   ;;  %s3212_s7 = inlined_call_operand.hbm [shape: f32[1,32], index: 7, kind: input, shape index: {}]   ;;  %s3213_s8 = inlined_call_operand.hbm [shape: bf16[32,32], index: 8, kind: input, shape index: {}]   ;;  %s3214_s9 = inlined_call_operand.vmem [shape: bf16[32,32], index: 9, kind: input, shape index: {}]   ;;  %s3215_s10 = inlined_call_operand.hbm [shape: bf16[32,32], index: 10, kind: input, shape index: {}]   ;;  %s3216_s11 = inlined_call_operand.hbm [shape: bf16[32,32], index: 11, kind: input, shape index: {}]   ;;  %s3217_s12 = inlined_call_operand.hbm [shape: bf16[32,64], index: 12, kind: input, shape index: {}]   ;;  %s3218_s13 = inlined_call_operand.vmem [shape: bf16[64,32], index: 13, kind: input, shape index: {}]   ;;  %s3219_s14 = inlined_call_operand.hbm [shape: f32[2,8,32], index: 14, kind: output, shape index: {}]  }
   0x1   :  { %3234 = sst [smem:[#allocation32_spill]] %s3210_s5 }
   0x2   :  { %3235 = sst [smem:[#allocation33_spill]] %s3212_s7 }
   0x3   :  { %3236 = sst [smem:[#allocation34_spill]] %s3218_s13 }
   0x4   :  { %3237 = sst [smem:[#allocation35_spill]] %s3219_s14 }
   0x5   :  { %19 = vsyncpa [#allocation4], 0 }
   0x6   :  { %20 = vsyncpa [#allocation7], 0 }
   0x7   :  { %21 = vsyncpa [#allocation10], 0 }
   0x8   :  { %22 = vsyncpa [#allocation13], 0 }
   0x9   :  { %23 = vsyncpa [#allocation16], 0 }
   0xa   :  { %24 = vsyncpa [#allocation5], 0 }
   0xb   :  { %26 = vsyncpa [#allocation5 + $0x1], 0  ;;  %s2664_s29 = smov 0   ;;  %s2666_s30 = smov 0  }
   0xc   :  { %s2668_s15 = smov 0   ;;  %s2670_s16 = smov 0  }
   0xd LB: > { %3238 = sst [smem:[#allocation24_spill]] %s2552_s29  ;;  %s2685_s17 = sadd.s32 4294967295, %s2564_s16   ;;  %s2564_s16 = sphi %s2670_s16, %s3274_s16   ;;  %s2560_s15 = sphi %s2668_s15, %s3277_s15   ;;  %s2556_s30 = sphi %s2666_s30, %s3276_s30   ;;  %s2552_s29 = sphi %s2664_s29, %s3275_s29  }
   0xe   : > { %3239 = sst [smem:[#allocation25_spill]] %s2556_s30  ;;  %s1885_s18 = sadd.s32 4294967294, %s2564_s16  }
   0xf   : > { %3240 = sst [smem:[#allocation26_spill]] %s2560_s15  ;;  %s2689_s19 = sadd.s32 1, %s2564_s16  }
  0x10   : > { %3241 = sst [smem:[#allocation27_spill]] %s2564_s16  ;;  %s353_s20 = sadd.s32 1, %s2560_s15 }
  0x11   : > { %3242 = sst [smem:[#allocation28_spill]] %s2689_s19  ;;  %s350_s21 = ssub.s32 %s2564_s16, %s2689_s19 }
  0x12   : > { %p363_p0 = scmp.ne.s32.totalorder %s2560_s15, %s2556_s30  ;;  %p351_p1 = scmp.eq.s32.totalorder %s350_s21, 0 }
  0x13   : > { %p364_p2 = scmp.eq.s32.totalorder %s2685_s17, 1  ;;  %p369_p3 = scmp.ne.s32.totalorder %s2556_s30, %s2552_s29 }
  0x14   : > { %p370_p4 = scmp.eq.s32.totalorder %s1885_s18, 1  ;;  %p1886_p7 = scmp.ge.s32.totalorder %s2564_s16, 1 }
  0x15   : > { %s2700_s22 = scalar_select %p351_p1, %s2560_s15, %s353_s20  }
  0x16   : > { %p2702_p5 = por %p364_p2, %p363_p0  ;;  %p2706_p6 = por %p370_p4, %p369_p3 }
  0x17   : > { %3243 = sst [smem:[#allocation29_spill]] %s2700_s22  ;;  %p377_p8 = scmp.lt.s32.totalorder %s2564_s16, 3 }
  0x18   : > { %s3244_s23 = scalar_select %p2702_p5, 1, 0 }
  0x19   : > { %s3246_s24 = scalar_select %p2706_p6, 1, 0 }
  0x1a   : > { %3245 = sst [smem:[#allocation30_spill]] %s3244_s23  ;;  %p3226_p9 = scmp.eq.s32.totalorder %s2685_s17, 0 }
  0x1b   : > { %3247 = sst [smem:[#allocation31_spill]] %s3246_s24  ;;  %p2713_p10 = pnand %p1886_p7, %p377_p8 }
  0x1c   : > { %s2566_s26 = smov [#allocation6]   ;;  %s2567_s28 = smov [#allocation9]  }
  0x1d   : > { %s3248_s25 = scalar_select %p2713_p10, 1, 0 }
  0x1e   : > { %s401_s27 = sshll.u32 %s2566_s26, 4  ;;  %p2122_p11 = pneg %p2713_p10  ;;  %s402_s27 = int_to_ptr.vmem [resolvable:$true] %s401_s27 }
  0x1f   : > { %s423_s18 = sshll.u32 %s2567_s28, 4  ;;  %s2568_s21 = smov [#allocation12]   ;;  %s2725_s18 = int_to_ptr.vmem [resolvable:$true] %s423_s18 }
  0x20   : > { %p2721_p12 = pnand %p3226_p9, %p2122_p11  ;;  %s2727_s22 = sshll.u32 %s2568_s21, 4  ;;  %s450_s22 = int_to_ptr.vmem [resolvable:$true] %s2727_s22 }
  0x21   : > { %s3250_s5 = sld [smem:[#allocation32_spill]] }
  0x22   : > { %p2737_p0 = pneg %p2721_p12 }
  0x27   : > { %s2258_s26 = scalar_lea.hbm %s3250_s5, 16 }
  0x28   : > { %p2259_p13 = scmp.ne.s32.totalorder %s3250_s5, %s2258_s26  ;;  %p2265_p3 = scmp.lt.u32.totalorder %s2258_s26, %s3250_s5 }
  0x2a   : > { %p2261_p1 = pnand %p2737_p0, %p2259_p13 }
  0x2c   : > { %p2262_p2 = pneg %p2261_p1 }
  0x2e   : > { %p2267_p4 = pnand %p2265_p3, %p2262_p2 }
  0x30   : > { %2270 = shalt.err (!%p2267_p4)
}
  0x31   : > { %s2271_s15 = scalar_lea.vmem %s402_s27, 16  ;;  %s2278_s29 = scalar_lea.vmem %s402_s27, 32 }
  0x32   : > { %p2272_p7 = scmp.ne.s32.totalorder %s402_s27, %s2271_s15  ;;  %p2279_p9 = scmp.lt.s32.totalorder %s402_s27, %s402_s27 }
  0x33   : > { %p2280_p6 = scmp.lt.s32.totalorder %s2278_s29, %s2271_s15 }
  0x34   : > { %p2274_p8 = pnand %p2272_p7, %p2737_p0 }
  0x35   : > { %p2281_p5 = por %p2280_p6, %p2279_p9 }
  0x36   : > { %p2275_p11 = pneg %p2274_p8 }
  0x38   : > { %p2282_p10 = pnand %p2281_p5, %p2275_p11 }
  0x3a   : > { %2285 = shalt.err (!%p2282_p10)
}
  0x3b   : > { %2128 = dma.hbm_to_vmem [thread:$0]  (!%p2721_p12), %s3250_s5, 16, %s402_s27, [#allocation7]  }
  0x3c   : > { %s3252_s7 = sld [smem:[#allocation33_spill]] }
  0x42   : > { %s2286_s21 = scalar_lea.hbm %s3252_s7, 16 }
  0x43   : > { %p2287_p13 = scmp.ne.s32.totalorder %s3252_s7, %s2286_s21  ;;  %p2293_p5 = scmp.lt.u32.totalorder %s2286_s21, %s3252_s7 }
  0x45   : > { %p2289_p1 = pnand %p2287_p13, %p2737_p0 }
  0x47   : > { %p2290_p6 = pneg %p2289_p1 }
  0x49   : > { %p2295_p9 = pnand %p2293_p5, %p2290_p6 }
  0x4b   : > { %2298 = shalt.err (!%p2295_p9)
}
  0x4c   : > { %s2299_s27 = scalar_lea.vmem %s2725_s18, 16  ;;  %s2306_s14 = scalar_lea.vmem %s2725_s18, 32 }
  0x4d   : > { %p2300_p10 = scmp.ne.s32.totalorder %s2725_s18, %s2299_s27  ;;  %p2307_p4 = scmp.lt.s32.totalorder %s2725_s18, %s2725_s18 }
  0x4e   : > { %p2308_p7 = scmp.lt.s32.totalorder %s2306_s14, %s2299_s27 }
  0x4f   : > { %p2302_p2 = pnand %p2300_p10, %p2737_p0 }
  0x50   : > { %p2309_p8 = por %p2308_p7, %p2307_p4 }
  0x51   : > { %p2303_p3 = pneg %p2302_p2 }
  0x53   : > { %p2310_p11 = pnand %p2309_p8, %p2303_p3 }
  0x55   : > { %2313 = shalt.err (!%p2310_p11)
}
  0x56   : > { %2134 = dma.hbm_to_vmem [thread:$0]  (!%p2721_p12), %s3252_s7, 16, %s2725_s18, [#allocation10]  }
  0x57   : > { %s2314_s26 = scalar_lea.hbm %s3215_s10, 256 }
  0x58   : > { %p2315_p13 = scmp.ne.s32.totalorder %s3215_s10, %s2314_s26  ;;  %p2321_p5 = scmp.lt.u32.totalorder %s2314_s26, %s3215_s10 }
  0x5a   : > { %p2317_p1 = pnand %p2315_p13, %p2737_p0 }
  0x5c   : > { %p2318_p6 = pneg %p2317_p1 }
  0x5e   : > { %p2323_p9 = pnand %p2321_p5, %p2318_p6 }
  0x60   : > { %2326 = shalt.err (!%p2323_p9)
}
  0x61   : > { %s2327_s14 = scalar_lea.vmem %s450_s22, 256  ;;  %p2335_p4 = scmp.lt.s32.totalorder %s450_s22, %s450_s22 }
  0x62   : > { %p2328_p10 = scmp.ne.s32.totalorder %s450_s22, %s2327_s14  ;;  %p2336_p7 = scmp.lt.s32.totalorder %s2327_s14, %s2327_s14 }
  0x64   : > { %p2330_p2 = pnand %p2328_p10, %p2737_p0  ;;  %p2337_p8 = por %p2336_p7, %p2335_p4 }
  0x66   : > { %p2331_p3 = pneg %p2330_p2 }
  0x68   : > { %p2338_p11 = pnand %p2337_p8, %p2331_p3 }
  0x6a   : > { %2341 = shalt.err (!%p2338_p11)
}
  0x6b   : > { %s2569_s18 = smov 64   ;;  %s2570_s23 = smov 4  }
  0x6c   : > { %2140 = dma.hbm_to_vmem [thread:$0]  (!%p2721_p12), %s3215_s10, 256, %s450_s22, [#allocation13], %s2569_s18, %s2569_s18, %s2570_s23  }
  0x6d   : > { %s2571_s16 = smov [#allocation3]   ;;  %s2572_s21 = smov [#allocation8]  }
  0x6e   : > { %s390_s26 = sshll.u32 %s2571_s16, 4  ;;  %s412_s15 = sshll.u32 %s2572_s21, 4  ;;  %s391_s26 = int_to_ptr.vmem [resolvable:$true] %s390_s26  ;;  %s413_s15 = int_to_ptr.vmem [resolvable:$true] %s412_s15 }
  0x6f   : > { %s2342_s14 = scalar_lea.hbm %s3209_s4, 16 }
  0x70   : > { %p2343_p13 = scmp.ne.s32.totalorder %s3209_s4, %s2342_s14  ;;  %p2349_p5 = scmp.lt.u32.totalorder %s2342_s14, %s3209_s4 }
  0x72   : > { %p2345_p1 = pnand %p2343_p13, %p2737_p0 }
  0x74   : > { %p2346_p6 = pneg %p2345_p1 }
  0x76   : > { %p2351_p9 = pnand %p2349_p5, %p2346_p6 }
  0x78   : > { %2354 = shalt.err (!%p2351_p9)
}
  0x79   : > { %s2355_s22 = scalar_lea.vmem %s391_s26, 16  ;;  %s2362_s19 = scalar_lea.vmem %s391_s26, 32 }
  0x7a   : > { %p2356_p10 = scmp.ne.s32.totalorder %s391_s26, %s2355_s22  ;;  %p2363_p4 = scmp.lt.s32.totalorder %s391_s26, %s391_s26 }
  0x7b   : > { %p2364_p7 = scmp.lt.s32.totalorder %s2362_s19, %s2355_s22 }
  0x7c   : > { %p2358_p2 = pnand %p2356_p10, %p2737_p0 }
  0x7d   : > { %p2365_p8 = por %p2364_p7, %p2363_p4 }
  0x7e   : > { %p2359_p3 = pneg %p2358_p2 }
  0x80   : > { %p2366_p11 = pnand %p2365_p8, %p2359_p3 }
  0x82   : > { %2369 = shalt.err (!%p2366_p11)
}
  0x83   : > { %2125 = dma.hbm_to_vmem [thread:$0]  (!%p2721_p12), %s3209_s4, 16, %s391_s26, [#allocation4]  }
  0x84   : > { %s2370_s24 = scalar_lea.hbm %s3211_s6, 16 }
  0x85   : > { %p2371_p13 = scmp.ne.s32.totalorder %s3211_s6, %s2370_s24  ;;  %p2377_p5 = scmp.lt.u32.totalorder %s2370_s24, %s3211_s6 }
  0x87   : > { %p2373_p1 = pnand %p2371_p13, %p2737_p0 }
  0x89   : > { %p2374_p6 = pneg %p2373_p1 }
  0x8b   : > { %p2379_p9 = pnand %p2377_p5, %p2374_p6 }
  0x8d   : > { %2382 = shalt.err (!%p2379_p9)
}
  0x8e   : > { %s2383_s14 = scalar_lea.vmem %s413_s15, 16  ;;  %s2390_s26 = scalar_lea.vmem %s413_s15, 32 }
  0x8f   : > { %p2384_p10 = scmp.ne.s32.totalorder %s413_s15, %s2383_s14  ;;  %p2391_p4 = scmp.lt.s32.totalorder %s413_s15, %s413_s15 }
  0x90   : > { %p2392_p7 = scmp.lt.s32.totalorder %s2390_s26, %s2383_s14 }
  0x91   : > { %p2386_p2 = pnand %p2384_p10, %p2737_p0 }
  0x92   : > { %p2393_p8 = por %p2392_p7, %p2391_p4 }
  0x93   : > { %p2387_p3 = pneg %p2386_p2 }
  0x95   : > { %p2394_p11 = pnand %p2393_p8, %p2387_p3 }
  0x97   : > { %2397 = shalt.err (!%p2394_p11)
}
  0x98   : > { %2131 = dma.hbm_to_vmem [thread:$0]  (!%p2721_p12), %s3211_s6, 16, %s413_s15, [#allocation7]  }
  0x99   : > { %s2573_s5 = smov [#allocation11]   ;;  %s2574_s13 = smov [#allocation14]  }
  0x9a   : > { %s433_s7 = sshll.u32 %s2573_s5, 4  ;;  %s462_s30 = sshll.u32 %s2574_s13, 4  ;;  %s434_s7 = int_to_ptr.vmem [resolvable:$true] %s433_s7  ;;  %s463_s30 = int_to_ptr.vmem [resolvable:$true] %s462_s30 }
  0x9b   : > { %s2398_s21 = scalar_lea.hbm %s3213_s8, 256 }
  0x9c   : > { %p2399_p13 = scmp.ne.s32.totalorder %s3213_s8, %s2398_s21  ;;  %p2405_p5 = scmp.lt.u32.totalorder %s2398_s21, %s3213_s8 }
  0x9e   : > { %p2401_p1 = pnand %p2399_p13, %p2737_p0 }
  0xa0   : > { %p2402_p6 = pneg %p2401_p1 }
  0xa2   : > { %p2407_p9 = pnand %p2405_p5, %p2402_p6 }
  0xa4   : > { %2410 = shalt.err (!%p2407_p9)
}
  0xa5   : > { %s2411_s15 = scalar_lea.vmem %s434_s7, 256  ;;  %p2419_p4 = scmp.lt.s32.totalorder %s434_s7, %s434_s7 }
  0xa6   : > { %p2412_p10 = scmp.ne.s32.totalorder %s434_s7, %s2411_s15  ;;  %p2420_p7 = scmp.lt.s32.totalorder %s2411_s15, %s2411_s15 }
  0xa8   : > { %p2414_p2 = pnand %p2412_p10, %p2737_p0  ;;  %p2421_p8 = por %p2420_p7, %p2419_p4 }
  0xaa   : > { %p2415_p3 = pneg %p2414_p2 }
  0xac   : > { %p2422_p11 = pnand %p2421_p8, %p2415_p3 }
  0xae   : > { %2425 = shalt.err (!%p2422_p11)
}
  0xaf   : > { %2137 = dma.hbm_to_vmem [thread:$0]  (!%p2721_p12), %s3213_s8, 256, %s434_s7, [#allocation10], %s2569_s18, %s2569_s18, %s2570_s23  }
  0xb0   : > { %s2426_s24 = scalar_lea.hbm %s3216_s11, 256 }
  0xb1   : > { %p2427_p13 = scmp.ne.s32.totalorder %s3216_s11, %s2426_s24  ;;  %p2433_p5 = scmp.lt.u32.totalorder %s2426_s24, %s3216_s11 }
  0xb3   : > { %p2429_p1 = pnand %p2427_p13, %p2737_p0 }
  0xb5   : > { %p2430_p6 = pneg %p2429_p1 }
  0xb7   : > { %p2435_p9 = pnand %p2433_p5, %p2430_p6 }
  0xb9   : > { %2438 = shalt.err (!%p2435_p9)
}
  0xba   : > { %s2439_s14 = scalar_lea.vmem %s463_s30, 256  ;;  %p2447_p4 = scmp.lt.s32.totalorder %s463_s30, %s463_s30 }
  0xbb   : > { %p2440_p10 = scmp.ne.s32.totalorder %s463_s30, %s2439_s14  ;;  %p2448_p7 = scmp.lt.s32.totalorder %s2439_s14, %s2439_s14 }
  0xbd   : > { %p2442_p2 = pnand %p2440_p10, %p2737_p0  ;;  %p2449_p8 = por %p2448_p7, %p2447_p4 }
  0xbf   : > { %p2443_p3 = pneg %p2442_p2 }
  0xc1   : > { %p2450_p11 = pnand %p2449_p8, %p2443_p3 }
  0xc3   : > { %2453 = shalt.err (!%p2450_p11)
}
  0xc4   : > { %2143 = dma.hbm_to_vmem [thread:$0]  (!%p2721_p12), %s3216_s11, 256, %s463_s30, [#allocation13], %s2569_s18, %s2569_s18, %s2570_s23  }
  0xc5   : > { %s2575_s15 = smov [#allocation15]   ;;  %s2454_s13 = scalar_lea.hbm %s3217_s12, 256 }
  0xc6   : > { %s475_s22 = sshll.u32 %s2575_s15, 4  ;;  %p2455_p13 = scmp.ne.s32.totalorder %s3217_s12, %s2454_s13  ;;  %s476_s22 = int_to_ptr.vmem [resolvable:$true] %s475_s22 }
  0xc7   : > { %p2461_p5 = scmp.lt.u32.totalorder %s2454_s13, %s3217_s12 }
  0xc8   : > { %p2457_p1 = pnand %p2455_p13, %p2737_p0 }
  0xca   : > { %p2458_p6 = pneg %p2457_p1 }
  0xcc   : > { %p2463_p9 = pnand %p2461_p5, %p2458_p6 }
  0xce   : > { %2466 = shalt.err (!%p2463_p9)
}
  0xcf   : > { %s2467_s30 = scalar_lea.vmem %s476_s22, 256  ;;  %p2475_p4 = scmp.lt.s32.totalorder %s476_s22, %s476_s22 }
  0xd0   : > { %p2468_p10 = scmp.ne.s32.totalorder %s476_s22, %s2467_s30  ;;  %p2476_p7 = scmp.lt.s32.totalorder %s2467_s30, %s2467_s30 }
  0xd2   : > { %p2470_p2 = pnand %p2468_p10, %p2737_p0  ;;  %p2477_p8 = por %p2476_p7, %p2475_p4 }
  0xd4   : > { %p2471_p3 = pneg %p2470_p2 }
  0xd6   : > { %p2478_p11 = pnand %p2477_p8, %p2471_p3 }
  0xd8   : > { %2481 = shalt.err (!%p2478_p11)
}
  0xd9   : > { %2146 = dma.hbm_to_vmem [thread:$0]  (!%p2721_p12), %s3217_s12, 256, %s476_s22, [#allocation16], %s2569_s18, %s2569_s18, %s2570_s23  }
  0xda   : > { %p3253_p13 = scmp.ne.s32.totalorder %s3248_s25, 0 }
  0xdb   : > { %p3254_p0 = scmp.eq.s32.totalorder (!%p3253_p13), %s2685_s17, 0 }
  0xdc   : > { %521 = sbr.rel (%p3253_p13) target bundleno = 3092 (0xc14), region = 76 }
  0xe3   : > { %2527 = dma.done.wait (%p3254_p0), [#allocation4], 16   ;;  %p3255_p1 = pmov %p3254_p0 }
  0xe4   : > { %p3256_p6 = pmov %p3254_p0 }
  0xe5   : > { %2529 = vsyncadd (%p3255_p1), [#allocation4], 4294967280 }
  0xe6   : > { %2531 = dma.done.wait (%p3256_p6), [#allocation7], 32   ;;  %p3257_p5 = pmov %p3254_p0 }
  0xe7   : > { %p3258_p9 = pmov %p3254_p0 }
  0xe8   : > { %2533 = vsyncadd (%p3257_p5), [#allocation7], 4294967264 }
  0xe9   : > { %2535 = dma.done.wait (%p3258_p9), [#allocation10], 272   ;;  %p3259_p12 = pmov %p3254_p0 }
  0xea   : > { %p3260_p10 = pmov %p3254_p0 }
  0xeb   : > { %2537 = vsyncadd (%p3259_p12), [#allocation10], 4294967024 }
  0xec   : > { %2539 = dma.done.wait (%p3260_p10), [#allocation13], 512   ;;  %p3261_p2 = pmov %p3254_p0 }
  0xed   : > { %p3262_p3 = pmov %p3254_p0 }
  0xee   : > { %2541 = vsyncadd (%p3261_p2), [#allocation13], 4294966784 }
  0xef   : > { %2543 = dma.done.wait (%p3262_p3), [#allocation16], 256   ;;  %p3263_p4 = pmov %p3254_p0 }
  0xf0   : > { %p605_p7 = scmp.lt.s32.totalorder %s2685_s17, 1  ;;  %vm624_vm0 = vcmask 261120   ;;  %v2222_v7 = vld [vmem:[#allocation11] sm:$0xff]   ;;  %v2223_v8 = vld [vmem:[%s3214_s9] sm:$0xff]   ;;  %v2576_v9 = vmov 0.0   ;;  %v2224_v10 = vld [vmem:[#allocation11 + $0x8] sm:$0xff]   ;;  %v827_v42 = vlaneseq }
  0xf1   : > { %2545 = vsyncadd (%p3263_p4), [#allocation16], 4294967040  ;;  %1988 = vmatprep.subr.bf16.mxu0 %v2576_v9  ;;  %1996 = vmatprep.subr.bf16.mxu1 %v2576_v9  ;;  %v2225_v11 = vld [vmem:[%s3214_s9 + $0x8] sm:$0xff]   ;;  %vm2577_vm1 = vmmov 0   ;;  %v1909_v16 = vld [vmem:[#allocation3] ss:$0 sm:$0xff] }
  0xf2   : > { %s2922_s25 = scalar_select %p605_p7, %s2685_s17, 1  ;;  %1989 = vmatpush3.bf16.msra.mxu0 %v2222_v7  ;;  %1997 = vmatpush3.bf16.msra.mxu1 %v2223_v8  ;;  %v1910_v18 = vld [vmem:[#allocation6] ss:$0 sm:$0xff]  ;;  %v2226_v21 = vld [vmem:[#allocation12] sm:$0xff]   ;;  %vm936_vm2 = vcmask 1043456   ;;  %v828_v44 = vand.u32 127, %v827_v42 }
  0xf3   : > { %1990 = vmatprep.subr.bf16.mxu0 %v2576_v9  ;;  %1998 = vmatprep.subr.bf16.mxu1 %v2576_v9  ;;  %v2227_v23 = vld [vmem:[#allocation12 + $0x8] sm:$0xff]   ;;  %s2578_s19 = smov 112   ;;  %s2579_s5 = smov 120   ;;  %vm837_vm4 = vcmask 1047616   ;;  %vm875_vm5 = vcmask 64512   ;;  %vm982_vm6 = vcmask 60416  }
  0xf4   : > { %s2925_s20 = sshll.u32 %s2922_s25, 3  ;;  %1992 = vmatprep.mubr.msk.bf16.mxu0 %vm2577_vm1, %v2576_v9  ;;  %2000 = vmatprep.mubr.msk.bf16.mxu1 %vm2577_vm1, %v2576_v9  ;;  %s2580_s13 = smov 104   ;;  %vm829_vm3 = vcmp.lt.s32.totalorder %v828_v44, 4  ;;  %vm1144_vm7 = vcmask 126016   ;;  %vm1302_vm8 = vcmask 191616   ;;  %vm1460_vm9 = vcmask 257216  }
  0xf5   : > { %s608_s23 = scalar_lea.vmem %s3205_s0, %s2925_s20  ;;  %s2581_s24 = smov 8   ;;  %vm1654_vm10 = vcmask 523264  }
  0xf6   : > { %v2931_v0 = vld [vmem:[%s608_s23] sm:$0xff]  ;;  %1991 = vmatpush3.bf16.msra.mxu0 %v2224_v10  ;;  %1999 = vmatpush3.bf16.msra.mxu1 %v2225_v11  ;;  %s619_s29 = scalar_lea.vmem %s3208_s3, %s2925_s20  ;;  %s2582_s30 = smov 4  }
  0xf7   : > { %v625_v1 = vsel %vm624_vm0, %v2931_v0, 0.0  ;;  %2004 = vmatprep.subr.bf16.mxu0 %v2576_v9  ;;  %2012 = vmatprep.subr.bf16.mxu1 %v2576_v9  ;;  %v830_v45 = vld [vmem:[%s619_s29] sm:$0xff]  ;;  %s615_s28 = scalar_lea.vmem %s3207_s2, %s2925_s20  ;;  %s2583_s18 = smov 16  }
  0xf8   : > { %626 = vadd.xlane.f32.xlu0 %v625_v1  ;;  %v831_v47 = vsub.f32 0.0, %v830_v45  ;;  %s2584_s20 = smov 12   ;;  %s2585_s23 = smov 24  }
  0xf9   : > { %s2586_s7 = smov 20   ;;  %s2587_s26 = smov 124  }
  0xfa   : > { %v834_v48 = vsel %vm829_vm3, %v831_v47, %v830_v45  ;;  %s611_s16 = scalar_lea.vmem %s3206_s1, %s2922_s25  ;;  %s3265_s14 = sld [smem:[#allocation25_spill]] }
 0x185   : > { %v627_v2 = vpop.xlane.xlu0 %626 }
 0x186   : > { %v629_v3 = vmul.f32 0.03125, %v627_v2  ;;  %v3029_v2 = vld [vmem:[%s615_s28] sm:$0xff]  ;;  %s602_s28 = sand.u32 1, %s3265_s14  }
 0x188   : > { %v630_v4 = vsub.f32 %v2931_v0, %v629_v3 }
 0x18a   : > { %v631_v5 = vmul.f32 %v630_v4, %v630_v4 }
 0x18c   : > { %v632_v6 = vsel %vm624_vm0, %v631_v5, 0.0 }
 0x18d   : > { %633 = vadd.xlane.f32.xlu0 %v632_v6 }
 0x21a   : > { %v634_v12 = vpop.xlane.xlu0 %633 }
 0x21b   : > { %v635_v13 = vmul.f32 0.03125, %v634_v12 }
 0x21d   : > { %v636_v14 = vadd.f32 1e-05, %v635_v13 }
 0x21f   : > { %2236 = vrsqrt.f32 %v636_v14 }
 0x229   : > { %v2237_v15 = vpop.eup %2236 }
 0x22a   : > { %v638_v17 = vmul.f32 %v2237_v15, %v630_v4 }
 0x22c   : > { %v645_v19 = vmul.f32 %v1909_v16, %v638_v17 }
 0x22e   : > { %v652_v20 = vadd.f32 %v1910_v18, %v645_v19 }
 0x230   : > { %v653_v22 = vpack.c.bf16 %v652_v20, %v652_v20 }
 0x232   : > { %1993 = vmatmul.mubr.msk.bf16.vlgmr.msra.gmra.mrb[0].mxu0 %vm624_vm0, %v653_v22  ;;  %2001 = vmatmul.mubr.msk.bf16.vlgmr.msra.gmra.mrb[0].mxu1 %vm624_vm0, %v653_v22 }
 0x233   : > { %2005 = vmatpush3.bf16.msra.mxu0 %v2226_v21  ;;  %2008 = vmatprep.mubr.msk.bf16.mxu0 %vm2577_vm1, %v2576_v9 }
 0x234   : > { %2006 = vmatprep.subr.bf16.mxu0 %v2576_v9  ;;  %2014 = vmatprep.mubr.msk.bf16.mxu1 %vm2577_vm1, %v2576_v9 }
 0x237   : > { %2007 = vmatpush3.bf16.msra.mxu0 %v2227_v23 }
 0x238   : > { %2018 = vmatprep.subr.bf16.mxu0 %v2576_v9 }
 0x23a   : > { %2009 = vmatmul.mubr.msk.bf16.vlgmr.msra.gmra.mrb[4].mxu0 %vm624_vm0, %v653_v22 }
 0x23b   : > { %2020 = vmatprep.mubr.msk.bf16.mxu0 %vm2577_vm1, %v2576_v9 }
 0x305   : > { %v2964_v24 = vpop.f32.mrb[0].mxu0  ;;  %v2966_v25 = vpop.f32.mrb[0].mxu1 }
 0x306   : > { %1167 = vrot.lane.b32.xlu0 %v2966_v25, %s2578_s19  ;;  %1008 = vrot.lane.b32.xlu1 %v2966_v25, %s2579_s5  ;;  %v1994_v26 = vpop.f32.mrb[1].mxu0  ;;  %v2002_v27 = vpop.f32.mrb[1].mxu1 }
 0x307   : > { %v710_v28 = vpop.f32.mrb[2].mxu0  ;;  %v766_v29 = vpop.f32.mrb[2].mxu1 }
 0x308   : > { %v1995_v30 = vpop.f32.mrb[3].mxu0  ;;  %v2003_v31 = vpop.f32.mrb[3].mxu1 }
 0x30a   : > { %990 = vrot.lane.b32.xlu1 %v2964_v24, %s2579_s5 }
 0x30d   : > { %v819_v32 = vpop.f32.mrb[4].mxu0 }
 0x30e   : > { %v2974_v33 = vpack.c.bf16 %v819_v32, %v819_v32  ;;  %1150 = vrot.lane.b32.xlu1 %v2964_v24, %s2578_s19  ;;  %v2010_v34 = vpop.f32.mrb[5].mxu0 }
 0x30f   : > { %v822_v35 = vpop.f32.mrb[6].mxu0 }
 0x310   : > { %v2011_v36 = vpop.f32.mrb[7].mxu0  ;;  %v938_v37 = vsel %vm936_vm2, %v2974_v33, 0 }
 0x311   : > { %2019 = vmatpush3.bf16.msra.mxu0 %v938_v37 }
 0x312   : > { %1325 = vrot.lane.b32.xlu1 %v2966_v25, %s2580_s13  ;;  %2030 = vmatprep.subr.bf16.mxu0 %v2576_v9 }
 0x316   : > { %1308 = vrot.lane.b32.xlu1 %v2964_v24, %s2580_s13 }
 0x378   : > { %v1009_v38 = vpop.permute.xlu1 %1008  ;;  %v1168_v40 = vpop.permute.xlu0 %1167 }
 0x379   : > { %1011 = vrot.lane.b32.xlu1 %v1009_v38, %s2581_s24 }
 0x37c   : > { %v991_v39 = vpop.permute.xlu1 %990 }
 0x37d   : > { %993 = vrot.lane.b32.xlu1 %v991_v39, %s2581_s24 }
 0x380   : > { %v1151_v41 = vpop.permute.xlu1 %1150 }
 0x381   : > { %1170 = vrot.lane.b32.xlu1 %v1168_v40, %s2581_s24  ;;  %1153 = vrot.lane.b32.xlu0 %v1151_v41, %s2581_s24 }
 0x384   : > { %v2989_v43 = vpop.permute.xlu1 %1325 }
 0x385   : > { %1328 = vrot.lane.b32.xlu1 %v2989_v43, %s2581_s24 }
 0x388   : > { %v2997_v46 = vpop.permute.xlu1 %1308 }
 0x389   : > { %856 = vrot.lane.b32.xlu1 %v2966_v25, %s2581_s24  ;;  %1311 = vrot.lane.b32.xlu0 %v2997_v46, %s2581_s24 }
 0x38d   : > { %838 = vrot.lane.b32.xlu0 %v2964_v24, %s2581_s24 }
 0x391   : > { %845 = vrot.lane.b32.xlu0 %v834_v48, %s2582_s30 }
 0x3eb   : > { %v1012_v49 = vpop.permute.xlu1 %1011 }
 0x3ec   : > { %v1013_v50 = vsel %vm837_vm4, %v1012_v49, %v1009_v38 }
 0x3ed   : > { %1014 = vrot.lane.b32.xlu1 %v1013_v50, %s2581_s24 }
 0x3ef   : > { %v994_v51 = vpop.permute.xlu1 %993 }
 0x3f0   : > { %v995_v52 = vsel %vm837_vm4, %v994_v51, %v991_v39 }
 0x3f1   : > { %996 = vrot.lane.b32.xlu1 %v995_v52, %s2581_s24 }
 0x3f3   : > { %v1154_v53 = vpop.permute.xlu0 %1153  ;;  %v1171_v54 = vpop.permute.xlu1 %1170 }
 0x3f4   : > { %v1155_v55 = vsel %vm837_vm4, %v1154_v53, %v1151_v41  ;;  %v1172_v56 = vsel %vm837_vm4, %v1171_v54, %v1168_v40 }
 0x3f5   : > { %1156 = vrot.lane.b32.xlu1 %v1155_v55, %s2581_s24  ;;  %1173 = vrot.lane.b32.xlu0 %v1172_v56, %s2581_s24  ;;  %v855_v56 = vmul.f32 %v3029_v2, %v2966_v25 }
 0x3f7   : > { %v1329_v57 = vpop.permute.xlu1 %1328 }
 0x3f8   : > { %v1330_v58 = vsel %vm837_vm4, %v1329_v57, %v2989_v43 }
 0x3f9   : > { %1331 = vrot.lane.b32.xlu0 %v1330_v58, %s2581_s24 }
 0x3fb   : > { %v1312_v59 = vpop.permute.xlu0 %1311  ;;  %v857_v60 = vpop.permute.xlu1 %856 }
 0x3fc   : > { %v1313_v61 = vsel %vm837_vm4, %v1312_v59, %v2997_v46  ;;  %v858_v62 = vsel %vm837_vm4, %v857_v60, %v2966_v25 }
 0x3fd   : > { %1314 = vrot.lane.b32.xlu1 %v1313_v61, %s2581_s24  ;;  %859 = vrot.lane.b32.xlu0 %v858_v62, %s2581_s24 }
 0x3ff   : > { %v839_v63 = vpop.permute.xlu0 %838 }
 0x400   : > { %v840_v1 = vsel %vm837_vm4, %v839_v63, %v2964_v24 }
 0x401   : > { %841 = vrot.lane.b32.xlu1 %v840_v1, %s2581_s24  ;;  %985 = vrot.lane.b32.xlu0 %v3029_v2, %s2581_s24 }
 0x403   : > { %v846_v3 = vpop.permute.xlu0 %845 }
 0x405   : > { %1146 = vrot.lane.b32.xlu0 %v3029_v2, %s2583_s18 }
 0x45f   : > { %v1015_v4 = vpop.permute.xlu1 %1014 }
 0x460   : > { %v1016_v5 = vsel %vm837_vm4, %v1015_v4, %v1009_v38 }
 0x461   : > { %v1017_v6 = vmul.f32 %v1016_v5, %v846_v3 }
 0x463   : > { %1019 = vrot.lane.b32.xlu1 %v1017_v6, %s2582_s30  ;;  %v997_v7 = vpop.permute.xlu1 %996 }
 0x464   : > { %v998_v8 = vsel %vm837_vm4, %v997_v7, %v991_v39 }
 0x465   : > { %v999_v10 = vmul.f32 %v998_v8, %v846_v3 }
 0x467   : > { %v1174_v11 = vpop.permute.xlu0 %1173  ;;  %1001 = vrot.lane.b32.xlu1 %v999_v10, %s2582_s30  ;;  %v1157_v12 = vpop.permute.xlu1 %1156 }
 0x468   : > { %v1175_v13 = vsel %vm837_vm4, %v1174_v11, %v1168_v40  ;;  %v1158_v15 = vsel %vm837_vm4, %v1157_v12, %v1151_v41 }
 0x469   : > { %v1176_v14 = vmul.f32 %v1175_v13, %v846_v3  ;;  %v1159_v18 = vmul.f32 %v1158_v15, %v846_v3  ;;  %v1920_v13 = vld [vmem:[%s611_s16] ss:$0 sm:$0xff]  ;;  %s3267_s16 = sld [smem:[#allocation35_spill]] }
 0x46b   : > { %v1332_v16 = vpop.permute.xlu0 %1331  ;;  %1178 = vrot.lane.b32.xlu0 %v1176_v14, %s2584_s20  ;;  %1304 = vrot.lane.b32.xlu1 %v3029_v2, %s2585_s23 }
 0x46c   : > { %v1333_v17 = vsel %vm837_vm4, %v1332_v16, %v2989_v43 }
 0x46d   : > { %v1334_v19 = vmul.f32 %v1333_v17, %v846_v3 }
 0x46f   : > { %v860_v20 = vpop.permute.xlu0 %859  ;;  %1336 = vrot.lane.b32.xlu1 %v1334_v19, %s2586_s7  ;;  %1161 = vrot.lane.b32.xlu0 %v1159_v18, %s2584_s20  ;;  %v1315_v21 = vpop.permute.xlu1 %1314  ;;  %s1905_s20 = sshll.u32 %s602_s28, 3  ;;  %s3268_s25 = smov %s3267_s16 }
 0x470   : > { %v861_v22 = vsel %vm837_vm4, %v860_v20, %v2966_v25  ;;  %v1316_v23 = vsel %vm837_vm4, %v1315_v21, %v2997_v46 }
 0x471   : > { %v862_v26 = vmul.f32 %v861_v22, %v846_v3  ;;  %v1317_v27 = vmul.f32 %v1316_v23, %v846_v3 }
 0x473   : > { %864 = vrot.lane.b32.xlu1 %v862_v26, %s2587_s26  ;;  %1319 = vrot.lane.b32.xlu0 %v1317_v27, %s2586_s7  ;;  %v842_v28 = vpop.permute.xlu1 %841  ;;  %v986_v31 = vpop.permute.xlu0 %985  ;;  %s604_s7 = scalar_lea.vmem [#allocation17], %s1905_s20 }
 0x474   : > { %v843_v29 = vsel %vm837_vm4, %v842_v28, %v2964_v24  ;;  %v1006_v32 = vmul.f32 %v986_v31, %v2966_v25  ;;  %v988_v36 = vmul.f32 %v986_v31, %v2964_v24 }
 0x475   : > { %v848_v30 = vmul.f32 %v846_v3, %v843_v29  ;;  %v836_v3 = vmul.f32 %v3029_v2, %v2964_v24 }
 0x477   : > { %850 = vrot.lane.b32.xlu0 %v848_v30, %s2587_s26  ;;  %v1147_v38 = vpop.permute.xlu0 %1146  ;;  %s1714_s26 = sshll.u32 %s604_s7, 4  ;;  %s3164_s26 = int_to_ptr.vmem [resolvable:$true] %s1714_s26 }
 0x478   : > { %v1166_v41 = vmul.f32 %v1147_v38, %v2966_v25  ;;  %v1149_v46 = vmul.f32 %v1147_v38, %v2964_v24 }
 0x4d5   : > { %v1020_v34 = vpop.permute.xlu1 %1019 }
 0x4d6   : > { %v1022_v35 = vadd.f32 %v1020_v34, %v1006_v32 }
 0x4d8   : > { %v1023_v37 = vpack.c.bf16 %v1022_v35, %v1022_v35 }
 0x4d9   : > { %v1002_v39 = vpop.permute.xlu1 %1001 }
 0x4da   : > { %v1004_v40 = vadd.f32 %v1002_v39, %v988_v36  ;;  %1028 = vrot.lane.b32.xlu1 %v1023_v37, %s2579_s5 }
 0x4dc   : > { %v1005_v42 = vpack.c.bf16 %v1004_v40, %v1004_v40 }
 0x4dd   : > { %v1179_v43 = vpop.permute.xlu0 %1178  ;;  %v1305_v44 = vpop.permute.xlu1 %1304 }
 0x4de   : > { %v1181_v45 = vadd.f32 %v1179_v43, %v1166_v41  ;;  %1025 = vrot.lane.b32.xlu0 %v1005_v42, %s2579_s5  ;;  %v1324_v48 = vmul.f32 %v1305_v44, %v2966_v25  ;;  %v1307_v53 = vmul.f32 %v1305_v44, %v2964_v24 }
 0x4e0   : > { %v1182_v47 = vpack.c.bf16 %v1181_v45, %v1181_v45 }
 0x4e1   : > { %v1162_v49 = vpop.permute.xlu0 %1161  ;;  %v1337_v50 = vpop.permute.xlu1 %1336 }
 0x4e2   : > { %v1164_v51 = vadd.f32 %v1162_v49, %v1149_v46  ;;  %v1339_v52 = vadd.f32 %v1337_v50, %v1324_v48  ;;  %1187 = vrot.lane.b32.xlu1 %v1182_v47, %s2578_s19 }
 0x4e4   : > { %v1165_v54 = vpack.c.bf16 %v1164_v51, %v1164_v51  ;;  %v1340_v55 = vpack.c.bf16 %v1339_v52, %v1339_v52 }
 0x4e5   : > { %v1320_v57 = vpop.permute.xlu0 %1319  ;;  %v865_v58 = vpop.permute.xlu1 %864 }
 0x4e6   : > { %v1322_v59 = vadd.f32 %v1320_v57, %v1307_v53  ;;  %v867_v60 = vadd.f32 %v865_v58, %v855_v56  ;;  %1184 = vrot.lane.b32.xlu0 %v1165_v54, %s2578_s19  ;;  %1345 = vrot.lane.b32.xlu1 %v1340_v55, %s2580_s13 }
 0x4e8   : > { %v1323_v61 = vpack.c.bf16 %v1322_v59, %v1322_v59  ;;  %v868_v62 = vpack.c.bf16 %v867_v60, %v867_v60 }
 0x4e9   : > { %v851_v63 = vpop.permute.xlu0 %850 }
 0x4ea   : > { %v880_v1 = vsel %vm875_vm5, %v868_v62, 0  ;;  %1342 = vrot.lane.b32.xlu0 %v1323_v61, %s2580_s13  ;;  %v853_v25 = vadd.f32 %v851_v63, %v836_v3 }
 0x4eb   : > { %2013 = vmatpush3.bf16.xpose.msra.mxu1 %v880_v1 }
 0x4ec   : > { %2024 = vmatprep.subr.bf16.mxu1 %v2576_v9  ;;  %v854_v4 = vpack.c.bf16 %v853_v25, %v853_v25 }
 0x4f2   : > { %2015 = vmatmul.mubr.msk.bf16.vlgmr.msra.gmra.mrb[4].mxu1 %vm875_vm5, %v854_v4 }
 0x4f3   : > { %2026 = vmatprep.mubr.msk.bf16.mxu1 %vm2577_vm1, %v2576_v9 }
 0x54c   : > { %v1029_v5 = vpop.permute.xlu1 %1028 }
 0x54d   : > { %v1034_v6 = vsel %vm875_vm5, %v1029_v5, 0 }
 0x54e   : > { %2025 = vmatpush3.bf16.xpose.msra.mxu1 %v1034_v6 }
 0x54f   : > { %2036 = vmatprep.subr.bf16.mxu1 %v2576_v9 }
 0x550   : > { %v1026_v7 = vpop.permute.xlu0 %1025 }
 0x554   : > { %v1188_v24 = vpop.permute.xlu1 %1187 }
 0x555   : > { %v1193_v2 = vsel %vm875_vm5, %v1188_v24, 0  ;;  %2027 = vmatmul.mubr.msk.bf16.vlgmr.msra.gmra.mrb[8].mxu1 %vm875_vm5, %v1026_v7 }
 0x556   : > { %2037 = vmatpush3.bf16.xpose.msra.mxu1 %v1193_v2  ;;  %2038 = vmatprep.mubr.msk.bf16.mxu1 %vm2577_vm1, %v2576_v9 }
 0x557   : > { %2048 = vmatprep.subr.bf16.mxu1 %v2576_v9 }
 0x558   : > { %v1346_v8 = vpop.permute.xlu1 %1345  ;;  %v1185_v10 = vpop.permute.xlu0 %1184 }
 0x559   : > { %v1351_v11 = vsel %vm875_vm5, %v1346_v8, 0 }
 0x55c   : > { %v1343_v12 = vpop.permute.xlu0 %1342 }
 0x55d   : > { %2039 = vmatmul.mubr.msk.bf16.vlgmr.msra.gmra.mrb[12].mxu1 %vm875_vm5, %v1185_v10 }
 0x55e   : > { %2049 = vmatpush3.bf16.xpose.msra.mxu1 %v1351_v11  ;;  %2050 = vmatprep.mubr.msk.bf16.mxu1 %vm2577_vm1, %v2576_v9 }
 0x55f   : > { %2060 = vmatprep.subr.bf16.mxu1 %v2576_v9 }
 0x565   : > { %2051 = vmatmul.mubr.msk.bf16.vlgmr.msra.gmra.mrb[16].mxu1 %vm875_vm5, %v1343_v12 }
 0x566   : > { %2064 = vmatprep.mubr.msk.bf16.mxu1 %vm2577_vm1, %v2576_v9 }
 0x5c5   : > { %v916_v14 = vpop.f32.mrb[4].mxu1 }
 0x5c6   : > { %v917_v15 = vadd.f32 %v1920_v13, %v916_v14  ;;  %v2016_v16 = vpop.f32.mrb[5].mxu1 }
 0x5c7   : > { %v919_v17 = vpop.f32.mrb[6].mxu1 }
 0x5c8   : > { %v2017_v18 = vpop.f32.mrb[7].mxu1  ;;  %v922_v19 = vsel %vm875_vm5, %v917_v15, -inf }
 0x5c9   : > { %923 = vmax.xlane.f32.xlu1 %v922_v19 }
 0x5da   : > { %1246 = vrot.lane.b32.xlu1 %v2974_v33, %s2578_s19 }
 0x628   : > { %v1070_v20 = vpop.f32.mrb[8].mxu1 }
 0x629   : > { %v1071_v21 = vadd.f32 %v1920_v13, %v1070_v20  ;;  %v2028_v22 = vpop.f32.mrb[9].mxu1 }
 0x62a   : > { %v1073_v23 = vpop.f32.mrb[10].mxu1 }
 0x62b   : > { %v2029_v26 = vpop.f32.mrb[11].mxu1  ;;  %v1076_v27 = vsel %vm875_vm5, %v1071_v21, -inf }
 0x62c   : > { %1077 = vmax.xlane.f32.xlu0 %v1076_v27 }
 0x630   : > { %v1229_v28 = vpop.f32.mrb[12].mxu1 }
 0x631   : > { %v1230_v29 = vadd.f32 %v1920_v13, %v1229_v28  ;;  %v2040_v30 = vpop.f32.mrb[13].mxu1  ;;  %v2228_v28 = vld [vmem:[#allocation14] sm:$0xff]  }
 0x632   : > { %v1232_v31 = vpop.f32.mrb[14].mxu1  ;;  %2061 = vmatpush3.bf16.msra.mxu1 %v2228_v28 }
 0x633   : > { %v2041_v32 = vpop.f32.mrb[15].mxu1  ;;  %v1235_v34 = vsel %vm875_vm5, %v1230_v29, -inf  ;;  %2062 = vmatprep.subr.bf16.mxu1 %v2576_v9 }
 0x634   : > { %1236 = vmax.xlane.f32.xlu0 %v1235_v34  ;;  %v2229_v32 = vld [vmem:[#allocation14 + $0x8] sm:$0xff]  }
 0x636   : > { %2063 = vmatpush3.bf16.msra.mxu1 %v2229_v32 }
 0x637   : > { %2076 = vmatprep.subr.bf16.mxu1 %v2576_v9 }
 0x638   : > { %v1387_v35 = vpop.f32.mrb[16].mxu1 }
 0x639   : > { %v1388_v36 = vadd.f32 %v1920_v13, %v1387_v35  ;;  %v2052_v37 = vpop.f32.mrb[17].mxu1 }
 0x63a   : > { %v1390_v38 = vpop.f32.mrb[18].mxu1 }
 0x63b   : > { %v2053_v39 = vpop.f32.mrb[19].mxu1  ;;  %v1393_v40 = vsel %vm875_vm5, %v1388_v36, -inf }
 0x63c   : > { %1394 = vmax.xlane.f32.xlu1 %v1393_v40 }
 0x64a   : > { %1088 = vrot.lane.b32.xlu0 %v2974_v33, %s2579_s5  ;;  %s3264_s5 = sld [smem:[#allocation34_spill]] }
 0x64d   : > { %1404 = vrot.lane.b32.xlu1 %v2974_v33, %s2580_s13  ;;  %s2482_s13 = scalar_lea.vmem %s3164_s26, 128 }
 0x64e   : > { %p2483_p8 = scmp.ne.s32.totalorder %s3164_s26, %s2482_s13 }
 0x656   : > { %v924_v41 = vpop.xlane.xlu1 %923 }
 0x657   : > { %v925_v42 = vsub.f32 %v917_v15, %v924_v41 }
 0x659   : > { %v926_v43 = vmul.f32 1.442695, %v925_v42 }
 0x65a   : > { %v1247_v52 = vpop.permute.xlu1 %1246 }
 0x65b   : > { %2238 = vpow2.f32 %v926_v43  ;;  %v1252_v59 = vsel %vm936_vm2, %v1247_v52, 0 }
 0x665   : > { %v2239_v44 = vpop.eup %2238 }
 0x666   : > { %v932_v45 = vpack.c.bf16 %v2239_v44, %v2239_v44  ;;  %v928_v6 = vsel %vm875_vm5, %v2239_v44, 0.0 }
 0x668   : > { %2021 = vmatmul.mubr.msk.bf16.vlgmr.msra.gmra.mrb[8].mxu0 %vm875_vm5, %v932_v45 }
 0x669   : > { %2032 = vmatprep.mubr.msk.bf16.mxu0 %vm2577_vm1, %v2576_v9 }
 0x6b9   : > { %v1078_v46 = vpop.xlane.xlu0 %1077 }
 0x6ba   : > { %v1079_v47 = vsub.f32 %v1071_v21, %v1078_v46 }
 0x6bc   : > { %v1080_v48 = vmul.f32 1.442695, %v1079_v47 }
 0x6be   : > { %2240 = vpow2.f32 %v1080_v48 }
 0x6c1   : > { %v1237_v49 = vpop.xlane.xlu0 %1236 }
 0x6c2   : > { %v1238_v50 = vsub.f32 %v1230_v29, %v1237_v49 }
 0x6c4   : > { %v1239_v51 = vmul.f32 1.442695, %v1238_v50 }
 0x6c5   : > { %v1089_v33 = vpop.permute.xlu0 %1088 }
 0x6c6   : > { %2242 = vpow2.f32 %v1239_v51  ;;  %v1094_v53 = vsel %vm936_vm2, %v1089_v33, 0 }
 0x6c7   : > { %2031 = vmatpush3.bf16.msra.mxu0 %v1094_v53 }
 0x6c8   : > { %v2241_v54 = vpop.eup %2240  ;;  %2042 = vmatprep.subr.bf16.mxu0 %v2576_v9 }
 0x6c9   : > { %v1395_v55 = vpop.xlane.xlu1 %1394  ;;  %v1082_v56 = vsel %vm875_vm5, %v2241_v54, 0.0  ;;  %v1086_v57 = vpack.c.bf16 %v2241_v54, %v2241_v54 }
 0x6ca   : > { %v1396_v58 = vsub.f32 %v1388_v36, %v1395_v55  ;;  %1083 = vadd.xlane.f32.xlu0 %v1082_v56 }
 0x6cb   : > { %2033 = vmatmul.mubr.msk.bf16.vlgmr.msra.gmra.mrb[12].mxu0 %vm875_vm5, %v1086_v57  ;;  %v2230_v57 = vld [vmem:[#allocation15] sm:$0xff]  }
 0x6cc   : > { %v1397_v60 = vmul.f32 1.442695, %v1396_v58  ;;  %2043 = vmatpush3.bf16.msra.mxu0 %v1252_v59  ;;  %2044 = vmatprep.mubr.msk.bf16.mxu0 %vm2577_vm1, %v2576_v9  ;;  %v2231_v58 = vld [vmem:[#allocation15 + $0x8] sm:$0xff]  }
 0x6cd   : > { %2054 = vmatprep.subr.bf16.mxu0 %v2576_v9  ;;  %v1405_v62 = vpop.permute.xlu1 %1404 }
 0x6ce   : > { %2244 = vpow2.f32 %v1397_v60  ;;  %v1410_v3 = vsel %vm936_vm2, %v1405_v62, 0  ;;  %v1935_v62 = vld [vmem:[#allocation8] ss:$0 sm:$0xff] }
 0x6d0   : > { %v2243_v61 = vpop.eup %2242 }
 0x6d1   : > { %v1241_v63 = vsel %vm875_vm5, %v2243_v61, 0.0  ;;  %v1245_v1 = vpack.c.bf16 %v2243_v61, %v2243_v61 }
 0x6d2   : > { %1242 = vadd.xlane.f32.xlu1 %v1241_v63 }
 0x6d3   : > { %2045 = vmatmul.mubr.msk.bf16.vlgmr.msra.gmra.mrb[16].mxu0 %vm875_vm5, %v1245_v1  ;;  %v1936_v1 = vld [vmem:[#allocation9] ss:$0 sm:$0xff] }
 0x6d4   : > { %2055 = vmatpush3.bf16.msra.mxu0 %v1410_v3  ;;  %2056 = vmatprep.mubr.msk.bf16.mxu0 %vm2577_vm1, %v2576_v9 }
 0x6d5   : > { %2068 = vmatprep.subr.bf16.mxu0 %v2576_v9 }
 0x6d8   : > { %v2245_v25 = vpop.eup %2244 }
 0x6d9   : > { %v1399_v4 = vsel %vm875_vm5, %v2245_v25, 0.0  ;;  %v1403_v5 = vpack.c.bf16 %v2245_v25, %v2245_v25 }
 0x6da   : > { %1400 = vadd.xlane.f32.xlu0 %v1399_v4 }
 0x6db   : > { %2057 = vmatmul.mubr.msk.bf16.vlgmr.msra.gmra.mrb[20].mxu0 %vm875_vm5, %v1403_v5  ;;  %v2232_v5 = vld [vmem:[%s3264_s5] sm:$0xff]  }
 0x6dc   : > { %2072 = vmatprep.mubr.msk.bf16.mxu0 %vm2577_vm1, %v2576_v9  ;;  %2069 = vmatpush3.bf16.msra.mxu0 %v2230_v57 }
 0x6dd   : > { %2070 = vmatprep.subr.bf16.mxu0 %v2576_v9 }
 0x6de   : > { %929 = vadd.xlane.f32.xlu0 %v928_v6  ;;  %v2233_v6 = vld [vmem:[%s3264_s5 + $0x8] sm:$0xff]  }
 0x6e0   : > { %2071 = vmatpush3.bf16.msra.mxu0 %v2231_v58 }
 0x73b   : > { %v974_v7 = vpop.f32.mrb[8].mxu0 }
 0x73c   : > { %v2022_v24 = vpop.f32.mrb[9].mxu0 }
 0x73d   : > { %v977_v2 = vpop.f32.mrb[10].mxu0  ;;  %v2235_v24 = vld [vmem:[%s3264_s5 + $0x18] sm:$0xff]  }
 0x73e   : > { %v2023_v8 = vpop.f32.mrb[11].mxu0 }
 0x757   : > { %v1084_v10 = vpop.xlane.xlu0 %1083 }
 0x75f   : > { %v1243_v16 = vpop.xlane.xlu1 %1242 }
 0x767   : > { %v1401_v11 = vpop.xlane.xlu0 %1400 }
 0x76b   : > { %v930_v12 = vpop.xlane.xlu0 %929 }
 0x76c   : > { %2246 = vrcp.f32 %v930_v12 }
 0x76d   : > { %2248 = vrcp.f32 %v1084_v10 }
 0x76e   : > { %2250 = vrcp.f32 %v1243_v16 }
 0x76f   : > { %2252 = vrcp.f32 %v1401_v11 }
 0x776   : > { %v2247_v13 = vpop.eup %2246 }
 0x777   : > { %v980_v14 = vmul.f32 %v2247_v13, %v974_v7  ;;  %v2249_v17 = vpop.eup %2248  ;;  %v2234_v7 = vld [vmem:[%s3264_s5 + $0x10] sm:$0xff]  }
 0x778   : > { %v2251_v26 = vpop.eup %2250 }
 0x779   : > { %v981_v15 = vpack.c.bf16 %v980_v14, %v980_v14  ;;  %v2253_v36 = vpop.eup %2252 }
 0x77b   : > { %983 = vst.msk [vmem:[#allocation2] sm:$0xf] %vm982_vm6, %v981_v15 }
 0x79e   : > { %v1130_v18 = vpop.f32.mrb[12].mxu0 }
 0x79f   : > { %v1136_v19 = vmul.f32 %v2249_v17, %v1130_v18  ;;  %v2034_v20 = vpop.f32.mrb[13].mxu0 }
 0x7a0   : > { %v1133_v21 = vpop.f32.mrb[14].mxu0 }
 0x7a1   : > { %v1949_v22 = vpack.c.bf16 %v1136_v19, %v1136_v19  ;;  %v2035_v23 = vpop.f32.mrb[15].mxu0 }
 0x7a3   : > { %1141 = vrot.lane.b32.xlu1 %v1949_v22, %s2581_s24  ;;  %s2588_s24 = smov [#allocation17]  }
 0x7a4   : > { %s2486_s21 = sshll.u32 %s2588_s24, 4  ;;  %s2487_s21 = int_to_ptr.vmem [resolvable:$false] %s2486_s21 }
 0x7a5   : > { %s2488_s29 = scalar_lea.vmem %s2487_s21, 256  ;;  %p2489_p1 = scmp.lt.s32.totalorder %s3164_s26, %s2487_s21 }
 0x7a6   : > { %v1288_v27 = vpop.f32.mrb[16].mxu0  ;;  %p2490_p6 = scmp.lt.s32.totalorder %s2488_s29, %s2482_s13 }
 0x7a7   : > { %v1294_v29 = vmul.f32 %v2251_v26, %v1288_v27  ;;  %v2046_v30 = vpop.f32.mrb[17].mxu0 }
 0x7a8   : > { %v1291_v31 = vpop.f32.mrb[18].mxu0  ;;  %p2491_p5 = por %p2490_p6, %p2489_p1 }
 0x7a9   : > { %v1950_v34 = vpack.c.bf16 %v1294_v29, %v1294_v29  ;;  %v2047_v35 = vpop.f32.mrb[19].mxu0 }
 0x7ab   : > { %1299 = vrot.lane.b32.xlu0 %v1950_v34, %s2583_s18  ;;  %s3266_s18 = sld [smem:[#allocation30_spill]] }
 0x7ae   : > { %v1446_v37 = vpop.f32.mrb[20].mxu0 }
 0x7af   : > { %v1452_v38 = vmul.f32 %v2253_v36, %v1446_v37  ;;  %v2058_v39 = vpop.f32.mrb[21].mxu0 }
 0x7b0   : > { %v1449_v40 = vpop.f32.mrb[22].mxu0 }
 0x7b1   : > { %v1951_v41 = vpack.c.bf16 %v1452_v38, %v1452_v38  ;;  %v2059_v42 = vpop.f32.mrb[23].mxu0  ;;  %p3269_p11 = scmp.ne.s32.totalorder %s3266_s18, 0 }
 0x7b3   : > { %1457 = vrot.lane.b32.xlu1 %v1951_v41, %s2585_s23  ;;  %s1946_s23 = sshll.u32 %s2685_s17, 7  ;;  %s1701_s17 = scalar_lea.sflag [#allocation5], %s602_s28 }
 0x7b4   : > { %s3162_s19 = scalar_lea.hbm %s3267_s16, %s1946_s23  ;;  %p2484_p13 = pnand %p2483_p8, %p3269_p11 }
 0x7b6   : > { %p2485_p0 = pneg %p2484_p13 }
 0x7b8   : > { %p2492_p9 = pnand %p2491_p5, %p2485_p0 }
 0x815   : > { %v1142_v43 = vpop.permute.xlu1 %1141 }
 0x816   : > { %1145 = vst.msk [vmem:[#allocation2] sm:$0xf] %vm1144_vm7, %v1142_v43 }
 0x81d   : > { %v1300_v44 = vpop.permute.xlu0 %1299 }
 0x81e   : > { %1303 = vst.msk [vmem:[#allocation2] sm:$0xf] %vm1302_vm8, %v1300_v44 }
 0x825   : > { %v1458_v45 = vpop.permute.xlu1 %1457 }
 0x826   : > { %1461 = vst.msk [vmem:[#allocation2] sm:$0xf] %vm1460_vm9, %v1458_v45 }
 0x82d   : > { %v1462_v46 = vld [vmem:[#allocation2] sm:$0xf] }
 0x82e   : > { %2065 = vmatmul.mubr.msk.bf16.vlgmr.msra.gmra.mrb[20].mxu1 %vm624_vm0, %v1462_v46 }
 0x82f   : > { %2084 = vmatprep.mubr.msk.bf16.mxu1 %vm2577_vm1, %v2576_v9  ;;  %2077 = vmatpush3.bf16.msra.mxu1 %v2232_v5 }
 0x830   : > { %2078 = vmatprep.subr.bf16.mxu1 %v2576_v9 }
 0x833   : > { %2079 = vmatpush3.bf16.msra.mxu1 %v2233_v6 }
 0x834   : > { %2080 = vmatprep.subr.bf16.mxu1 %v2576_v9 }
 0x837   : > { %2081 = vmatpush3.bf16.msra.mxu1 %v2234_v7 }
 0x838   : > { %2082 = vmatprep.subr.bf16.mxu1 %v2576_v9 }
 0x83b   : > { %2083 = vmatpush3.bf16.msra.mxu1 %v2235_v24 }
 0x901   : > { %v1516_v47 = vpop.f32.mrb[20].mxu1 }
 0x902   : > { %v3133_v48 = vadd.f32 %v1516_v47, %v2931_v0  ;;  %v2066_v49 = vpop.f32.mrb[21].mxu1 }
 0x903   : > { %v1519_v50 = vpop.f32.mrb[22].mxu1 }
 0x904   : > { %v2067_v51 = vpop.f32.mrb[23].mxu1  ;;  %v1525_v52 = vsel %vm624_vm0, %v3133_v48, 0.0 }
 0x905   : > { %1526 = vadd.xlane.f32.xlu1 %v1525_v52 }
 0x992   : > { %v1527_v33 = vpop.xlane.xlu1 %1526 }
 0x993   : > { %v1528_v53 = vmul.f32 0.03125, %v1527_v33 }
 0x995   : > { %v1529_v54 = vsub.f32 %v3133_v48, %v1528_v53 }
 0x997   : > { %v1530_v55 = vmul.f32 %v1529_v54, %v1529_v54 }
 0x999   : > { %v1531_v56 = vsel %vm624_vm0, %v1530_v55, 0.0 }
 0x99a   : > { %1532 = vadd.xlane.f32.xlu0 %v1531_v56 }
 0xa27   : > { %v1533_v0 = vpop.xlane.xlu0 %1532 }
 0xa28   : > { %v1534_v59 = vmul.f32 0.03125, %v1533_v0 }
 0xa2a   : > { %v1535_v60 = vadd.f32 1e-05, %v1534_v59 }
 0xa2c   : > { %2254 = vrsqrt.f32 %v1535_v60 }
 0xa36   : > { %v2255_v61 = vpop.eup %2254 }
 0xa37   : > { %v1537_v63 = vmul.f32 %v2255_v61, %v1529_v54 }
 0xa39   : > { %v1544_v3 = vmul.f32 %v1935_v62, %v1537_v63 }
 0xa3b   : > { %v1551_v25 = vadd.f32 %v1936_v1, %v1544_v3 }
 0xa3d   : > { %v1552_v4 = vpack.c.bf16 %v1551_v25, %v1551_v25 }
 0xa3f   : > { %2073 = vmatmul.mubr.msk.bf16.vlgmr.msra.gmra.mrb[24].mxu0 %vm624_vm0, %v1552_v4 }
 0xb12   : > { %v1606_v2 = vpop.f32.mrb[24].mxu0 }
 0xb13   : > { %v1612_v8 = vmul.f32 %v1606_v2, %v1606_v2  ;;  %v2074_v10 = vpop.f32.mrb[25].mxu0 }
 0xb14   : > { %v1609_v11 = vpop.f32.mrb[26].mxu0 }
 0xb15   : > { %v1613_v12 = vmul.f32 %v1612_v8, %v1606_v2  ;;  %v2075_v13 = vpop.f32.mrb[27].mxu0 }
 0xb17   : > { %v1614_v14 = vmul.f32 0.044715, %v1613_v12 }
 0xb19   : > { %v1615_v15 = vadd.f32 %v1614_v14, %v1606_v2 }
 0xb1b   : > { %v1616_v16 = vmul.f32 0.7978846, %v1615_v15 }
 0xb1d   : > { %2256 = vtanh.f32 %v1616_v16 }
 0xb27   : > { %v2257_v17 = vpop.eup %2256 }
 0xb28   : > { %v1618_v18 = vadd.f32 1.0, %v2257_v17 }
 0xb2a   : > { %v1619_v9 = vmul.f32 0.5, %v1618_v18 }
 0xb2c   : > { %v1620_v19 = vmul.f32 %v1619_v9, %v1606_v2 }
 0xb2e   : > { %v1621_v20 = vpack.c.bf16 %v1620_v19, %v1620_v19 }
 0xb30   : > { %2085 = vmatmul.mubr.msk.bf16.vlgmr.msra.gmra.mrb[24].mxu1 %vm1654_vm10, %v1621_v20 }
 0xc03   : > { %v1692_v21 = vpop.f32.mrb[24].mxu1 }
 0xc04   : > { %v1698_v22 = vadd.f32 %v1692_v21, %v3133_v48  ;;  %v2086_v23 = vpop.f32.mrb[25].mxu1 }
 0xc05   : > { %v1695_v26 = vpop.f32.mrb[26].mxu1 }
 0xc06   : > { %v2087_v27 = vpop.f32.mrb[27].mxu1  ;;  %1699 = vst.msk [vmem:[%s604_s7] sm:$0xff] %vm624_vm0, %v1698_v22 }
 0xc07   : > { %2495 = shalt.err (!%p2492_p9)
}
 0xc08   : > { %s2496_s30 = scalar_lea.hbm %s3162_s19, 128  ;;  %s2500_s28 = scalar_lea.hbm %s3268_s25, 256 }
 0xc09   : > { %p2497_p12 = scmp.ne.s32.totalorder %s3162_s19, %s2496_s30  ;;  %p2501_p3 = scmp.lt.u32.totalorder %s3162_s19, %s3268_s25 }
 0xc0a   : > { %p2502_p4 = scmp.lt.u32.totalorder %s2500_s28, %s2496_s30  ;;  %p2504_p8 = scmp.lt.u32.totalorder %s2496_s30, %s3162_s19 }
 0xc0b   : > { %p2498_p10 = pnand %p2497_p12, %p3269_p11 }
 0xc0c   : > { %p2503_p7 = por %p2502_p4, %p2501_p3 }
 0xc0d   : > { %p2499_p2 = pneg %p2498_p10 }
 0xc0e   : > { %p2505_p13 = por %p2504_p8, %p2503_p7 }
 0xc10   : > { %p2506_p0 = pnand %p2505_p13, %p2499_p2 }
 0xc12   : > { %2509 = shalt.err (!%p2506_p0)
}
 0xc13   : > { %2120 = dma.vmem_to_hbm [thread:$0]  (%p3269_p11), %s3164_s26, 128, %s3162_s19, %s1701_s17  }
 0xc14 PF: > { %s3270_s7 = sld [smem:[#allocation27_spill]]  ;;  %s3271_s15 = sld [smem:[#allocation24_spill]] }
 0xc15   : > { %s3272_s22 = sld [smem:[#allocation31_spill]] }
 0xc1a   : > { %p2167_p1 = scmp.ge.s32.totalorder %s3270_s7, 2  ;;  %s1726_s16 = sand.u32 1, %s3271_s15  }
 0xc1b   : > { %p3273_p6 = scmp.ne.s32.totalorder %s3272_s22, 0  ;;  %s1727_s13 = scalar_lea.sflag [#allocation5], %s1726_s16 }
 0xc1d   : > { %p2148_p5 = pnand %p2167_p1, %p3273_p6 }
 0xc1f   : > { %2547 = dma.done.wait (!%p2148_p5), %s1727_s13, 128  }
 0xc20   : > { %2549 = vsyncadd (!%p2148_p5), %s1727_s13, 4294967168  ;;  %s3274_s16 = sld [smem:[#allocation28_spill]]  ;;  %s3275_s29 = sld [smem:[#allocation25_spill]] }
 0xc21   : > { %s3276_s30 = sld [smem:[#allocation26_spill]]  ;;  %s3277_s15 = sld [smem:[#allocation29_spill]] }
 0xc26   : > { %p29_p9 = scmp.ge.s32.totalorder %s3274_s16, 4  }
 0xc28   :  { %31 = sbr.rel (!%p29_p9) target bundleno = 13 (0xd), region = 153 }
 0xc2f   :  { %1732 = vsyncpa [#allocation4], 1 }
 0xc30   :  { %1734 = vsyncpa [#allocation4 + $0x1], 1 }
 0xc31   :  { %1735 = vsyncpa [#allocation7], 1 }
 0xc32   :  { %1736 = vsyncpa [#allocation10], 1 }
 0xc33   :  { %1737 = vsyncpa [#allocation13], 1 }
 0xc34   :  { %1738 = vsyncpa [#allocation16], 1 }
 0xc35   :  { %1739 = vsyncpa [#allocation5], 1 }
 0xc36   :  { %1741 = vsyncpa [#allocation5 + $0x1], 1 }

</bundles_post_ra>
